<compile_context>
chip_gen: v5e
topology: v5e:2x2
jax: 0.10.0
libtpu: 0.0.40
codegen_flags: <defaults>
</compile_context>

<pallas_src>
import numpy as np

import jax
import jax.numpy as jnp
from jax.experimental import pallas as pl
from jax.experimental.pallas import tpu as pltpu


_PAD_ROWS = 8       # staging tail (>= max row shift used, which is 4)
_STAGE_W = 64       # widest channel count staged (conv4 input)


def _round_up(v, m):
    return (v + m - 1) // m * m


# ----------------------------------------------------------------------------
# Pallas kernel: forward pass for one block of B_BLK batch elements.
# ----------------------------------------------------------------------------
def _onedcnn_kernel(x_ref,              # (B*L, 2)
                    w1_ref, b1_ref,     # (3*2, 32),   (1, 32)
                    w2_ref, b2_ref,     # (3*32, 32),  (1, 32)
                    w3_ref, b3_ref,     # (3*32, 64),  (1, 64)
                    w4_ref, b4_ref,     # (3*64, 64),  (1, 64)
                    wl1_ref, bl1_ref,   # (64, 256),   (1, 256)
                    wc_ref, bc_ref,     # (256, 128),  (1, 128)   (class-padded)
                    pool_ref,           # (B, B*L)  masked-mean matrix
                    out_ref,            # (B, 128)
                    stage_ref):         # VMEM scratch (B*L + 8, 64)
    rows = x_ref.shape[0]               # B * L

    # Zero the staging tail once per invocation so row-shifted reads that run
    # past the valid rows only ever see finite data (garbage rows are later
    # masked out by pool_ref, and 0 * finite == 0).
    stage_ref[rows:rows + _PAD_ROWS, :] = jnp.zeros(
        (_PAD_ROWS, _STAGE_W), jnp.float32)

    def conv_relu(h, w_ref, b_ref, dil):
        # h: (rows, Cin).  Valid conv with K=3 taps at row offsets 0, dil, 2*dil,
        # fused into a single matmul with a (3*Cin, Cout) weight.
        cin = h.shape[1]
        stage_ref[0:rows, 0:cin] = h
        cols = jnp.concatenate(
            [h,
             stage_ref[dil:dil + rows, 0:cin],
             stage_ref[2 * dil:2 * dil + rows, 0:cin]],
            axis=1)                                            # (rows, 3*Cin)
        y = jnp.dot(cols, w_ref[...], preferred_element_type=jnp.float32)
        return jnp.maximum(y + b_ref[...], 0.0)

    h = conv_relu(x_ref[...], w1_ref, b1_ref, 1)               # (rows, 32)
    h = conv_relu(h, w2_ref, b2_ref, 1)                        # (rows, 32)

    # MaxPool1d(2, 2): max of each row with the next row; valid pooled values
    # end up at EVEN in-slot rows (hence dilation 2 in conv3/conv4).
    stage_ref[0:rows, 0:32] = h
    h = jnp.maximum(h, stage_ref[1:1 + rows, 0:32])            # (rows, 32)

    h = conv_relu(h, w3_ref, b3_ref, 2)                        # (rows, 64)
    h = conv_relu(h, w4_ref, b4_ref, 2)                        # (rows, 64)

    # AdaptiveAvgPool1d(1) + flatten: masked per-example mean of the valid
    # rows via the constant pooling matrix (B, rows) -> (B, 64).
    feat = jnp.dot(pool_ref[...], h, preferred_element_type=jnp.float32)

    # linear1 + relu -> clf (class dim padded to 128 for a lane-dense store).
    xf = jnp.maximum(
        jnp.dot(feat, wl1_ref[...], preferred_element_type=jnp.float32)
        + bl1_ref[...], 0.0)                                   # (B, 256)
    out_ref[...] = (jnp.dot(xf, wc_ref[...],
                            preferred_element_type=jnp.float32)
                    + bc_ref[...])                             # (B, 128)


# ----------------------------------------------------------------------------
# Wrapper: parameter reshaping / padding (layout plumbing) + pallas_call.
# ----------------------------------------------------------------------------
def onedcnn_forward(x, params, n_classes=5, block_b=64):
    """x: (N, 2, L) float32, NCW like PyTorch.  Returns (N, n_classes)."""
    n, c_in, l = x.shape

    # Valid lengths after each stage (matches PyTorch exactly, incl. floor).
    l1 = l - 2
    l2 = l1 - 2
    lp = l2 // 2
    l3 = lp - 2
    l4 = l3 - 2
    assert l4 >= 1, "input length too short for this architecture"

    nc_pad = max(128, _round_up(n_classes, 128))   # lane-dense logits

    # Batch block: multiple of 8, pad N up to a whole number of blocks.
    b_blk = min(_round_up(block_b, 8), _round_up(n, 8))
    n_pad = _round_up(n, b_blk)
    grid = (n_pad // b_blk,)
    rows = b_blk * l

    # Input: (N, 2, L) -> flat (n_pad*L, 2): batch*time on rows, channels on lanes.
    x_t = jnp.transpose(x, (0, 2, 1)).astype(jnp.float32).reshape(n * l, c_in)
    x_flat = jnp.pad(x_t, ((0, (n_pad - n) * l), (0, 0)))

    def conv_w(w):   # PyTorch (O, I, K) -> fused (K*I, O)
        o, i, k = w.shape
        return jnp.transpose(w, (2, 1, 0)).reshape(k * i, o).astype(jnp.float32)

    def lin_w(w):    # PyTorch (out, in) -> (in, out)
        return jnp.transpose(w).astype(jnp.float32)

    def as_row(b, width=None):
        b = b.astype(jnp.float32).reshape(1, -1)
        if width is not None:
            b = jnp.pad(b, ((0, 0), (0, width - b.shape[1])))
        return b

    wc_pad = jnp.pad(lin_w(params['wc']),
                     ((0, 0), (0, nc_pad - n_classes)))
    bc_pad = as_row(params['bc'], nc_pad)

    # Constant pooling matrix: P[b, b*L + t] = 1/l4 for the l4 valid rows
    # (even in-slot offsets 0, 2, ..., 2*(l4-1)); zero elsewhere.  Hoisted to
    # the wrapper so it is built once, not per grid step.
    p_np = np.zeros((b_blk, rows), np.float32)
    valid_t = 2 * np.arange(l4)
    for b in range(b_blk):
        p_np[b, b * l + valid_t] = 1.0 / l4
    pool_mat = jnp.asarray(p_np)

    ins = (
        x_flat,
        conv_w(params['w1']), as_row(params['b1']),
        conv_w(params['w2']), as_row(params['b2']),
        conv_w(params['w3']), as_row(params['b3']),
        conv_w(params['w4']), as_row(params['b4']),
        lin_w(params['wl1']), as_row(params['bl1']),
        wc_pad, bc_pad,
        pool_mat,
    )

    def const_spec(a):   # full-array block, resident across all grid steps
        return pl.BlockSpec(a.shape, lambda i: (0, 0))

    in_specs = [pl.BlockSpec((rows, c_in), lambda i: (i, 0))]
    in_specs += [const_spec(a) for a in ins[1:]]

    # Advisory cost estimate for the XLA scheduler.
    per_ex_macs = (l1 * 3 * c_in * 32 + l2 * 3 * 32 * 32 +
                   l3 * 3 * 32 * 64 + l4 * 3 * 64 * 64 +
                   64 * 256 + 256 * nc_pad)
    pool_macs = n_pad * rows * 64
    flops = 2 * (n_pad * per_ex_macs + pool_macs)
    bytes_accessed = 4 * (int(x_flat.size)
                          + sum(int(a.size) for a in ins[1:])
                          + n_pad * nc_pad)

    out = pl.pallas_call(
        _onedcnn_kernel,
        out_shape=jax.ShapeDtypeStruct((n_pad, nc_pad), jnp.float32),
        grid=grid,
        in_specs=in_specs,
        out_specs=pl.BlockSpec((b_blk, nc_pad), lambda i: (i, 0)),
        scratch_shapes=[pltpu.VMEM((rows + _PAD_ROWS, _STAGE_W), jnp.float32)],
        compiler_params=pltpu.CompilerParams(
            dimension_semantics=("parallel",)),
        cost_estimate=pl.CostEstimate(flops=flops, transcendentals=0,
                                      bytes_accessed=bytes_accessed),
    )(*ins)

    return out[:n, :n_classes]


# ----------------------------------------------------------------------------
# Pure-JAX reference (for the correctness check).
# ----------------------------------------------------------------------------
def onedcnn_reference(x, p):
    def conv(h, w, b):
        y = jax.lax.conv_general_dilated(
            h, w, window_strides=(1,), padding='VALID',
            dimension_numbers=('NCH', 'OIH', 'NCH'))
        return jax.nn.relu(y + b[None, :, None])

    h = conv(x, p['w1'], p['b1'])
    h = conv(h, p['w2'], p['b2'])
    n, c, length = h.shape
    h = jnp.max(h[:, :, :(length // 2) * 2].reshape(n, c, length // 2, 2),
                axis=-1)                               # MaxPool1d(2,2)
    h = conv(h, p['w3'], p['b3'])
    h = conv(h, p['w4'], p['b4'])
    feat = jnp.mean(h, axis=-1)                        # AdaptiveAvgPool1d(1)+flatten
    xf = jax.nn.relu(feat @ p['wl1'].T + p['bl1'])
    return xf @ p['wc'].T + p['bc']


# ----------------------------------------------------------------------------
# Deterministic parameter initialization (shapes from OneDCNN.__init__).
# NOTE: linear2 exists in the module but is unused in forward(); projection /
# SoftmaxMargin branches are disabled by default and not implemented here.
# ----------------------------------------------------------------------------
def init_params(key, n_classes=5):
    ks = jax.random.split(key, 12)
    s = 0.1
    return {
        'w1': jax.random.normal(ks[0], (32, 2, 3), jnp.float32) * s,
        'b1': jax.random.normal(ks[1], (32,), jnp.float32) * s,
        'w2': jax.random.normal(ks[2], (32, 32, 3), jnp.float32) * s,
        'b2': jax.random.normal(ks[3], (32,), jnp.float32) * s,
        'w3': jax.random.normal(ks[4], (64, 32, 3), jnp.float32) * s,
        'b3': jax.random.normal(ks[5], (64,), jnp.float32) * s,
        'w4': jax.random.normal(ks[6], (64, 64, 3), jnp.float32) * s,
        'b4': jax.random.normal(ks[7], (64,), jnp.float32) * s,
        'wl1': jax.random.normal(ks[8], (256, 64), jnp.float32) * s,
        'bl1': jax.random.normal(ks[9], (256,), jnp.float32) * s,
        'wc': jax.random.normal(ks[10], (n_classes, 256), jnp.float32) * s,
        'bc': jax.random.normal(ks[11], (n_classes,), jnp.float32) * s,
    }


if __name__ == "__main__":
    key = jax.random.PRNGKey(0)
    k_x, k_p = jax.random.split(key)

    N, C_IN, L = 2, 2, 32          # L=32 -> 30 -> 28 -> pool 14 -> 12 -> 10
    N_CLASSES = 5

    x = jax.random.normal(k_x, (N, C_IN, L), jnp.float32)
    params = init_params(k_p, N_CLASSES)

    out = jax.block_until_ready(onedcnn_forward(x, params, n_classes=N_CLASSES))
    ref = jax.block_until_ready(onedcnn_reference(x, params))

    if not bool(jnp.allclose(out, ref, atol=1e-3, rtol=1e-3)):
        max_err = float(jnp.max(jnp.abs(out - ref)))
        raise AssertionError(
            f"Pallas output does not match JAX reference (max err {max_err})")

    print("KERNEL_OK")
</pallas_src>

<mosaic_0001>
module attributes {stable_mosaic.version = 11 : i64} {
  func.func @_onedcnn_kernel(%arg0: i32, %arg1: memref<256x2xf32, #tpu.memory_space<vmem>>, %arg2: memref<6x32xf32, #tpu.memory_space<vmem>>, %arg3: memref<1x32xf32, #tpu.memory_space<vmem>>, %arg4: memref<96x32xf32, #tpu.memory_space<vmem>>, %arg5: memref<1x32xf32, #tpu.memory_space<vmem>>, %arg6: memref<96x64xf32, #tpu.memory_space<vmem>>, %arg7: memref<1x64xf32, #tpu.memory_space<vmem>>, %arg8: memref<192x64xf32, #tpu.memory_space<vmem>>, %arg9: memref<1x64xf32, #tpu.memory_space<vmem>>, %arg10: memref<64x256xf32, #tpu.memory_space<vmem>>, %arg11: memref<1x256xf32, #tpu.memory_space<vmem>>, %arg12: memref<256x128xf32, #tpu.memory_space<vmem>>, %arg13: memref<1x128xf32, #tpu.memory_space<vmem>>, %arg14: memref<8x256xf32, #tpu.memory_space<vmem>>, %arg15: memref<8x128xf32, #tpu.memory_space<vmem>>, %arg16: memref<264x64xf32, #tpu.memory_space<vmem>>) attributes {dimension_semantics = [#tpu.dimension_semantics<parallel>], iteration_bounds = array<i64: 1>, scalar_prefetch = 0 : i64, scratch_operands = 1 : i64, tpu.core_type = #tpu.core_type<tc>, window_params = [{transform_indices = @transform_0, window_bounds = array<i64: 256, 2>}, {pipeline_mode = #tpu.pipeline_mode<synchronous>, transform_indices = @transform_1, window_bounds = array<i64: 6, 32>}, {pipeline_mode = #tpu.pipeline_mode<synchronous>, transform_indices = @transform_2, window_bounds = array<i64: 1, 32>}, {pipeline_mode = #tpu.pipeline_mode<synchronous>, transform_indices = @transform_3, window_bounds = array<i64: 96, 32>}, {pipeline_mode = #tpu.pipeline_mode<synchronous>, transform_indices = @transform_4, window_bounds = array<i64: 1, 32>}, {pipeline_mode = #tpu.pipeline_mode<synchronous>, transform_indices = @transform_5, window_bounds = array<i64: 96, 64>}, {pipeline_mode = #tpu.pipeline_mode<synchronous>, transform_indices = @transform_6, window_bounds = array<i64: 1, 64>}, {pipeline_mode = #tpu.pipeline_mode<synchronous>, transform_indices = @transform_7, window_bounds = array<i64: 192, 64>}, {pipeline_mode = #tpu.pipeline_mode<synchronous>, transform_indices = @transform_8, window_bounds = array<i64: 1, 64>}, {pipeline_mode = #tpu.pipeline_mode<synchronous>, transform_indices = @transform_9, window_bounds = array<i64: 64, 256>}, {pipeline_mode = #tpu.pipeline_mode<synchronous>, transform_indices = @transform_10, window_bounds = array<i64: 1, 256>}, {pipeline_mode = #tpu.pipeline_mode<synchronous>, transform_indices = @transform_11, window_bounds = array<i64: 256, 128>}, {pipeline_mode = #tpu.pipeline_mode<synchronous>, transform_indices = @transform_12, window_bounds = array<i64: 1, 128>}, {pipeline_mode = #tpu.pipeline_mode<synchronous>, transform_indices = @transform_13, window_bounds = array<i64: 8, 256>}, {transform_indices = @transform_14, window_bounds = array<i64: 8, 128>}]} {
    %cst = arith.constant 0.000000e+00 : f32
    %0 = vector.broadcast %cst : f32 to vector<8x64xf32>
    %c256 = arith.constant 256 : index
    %c0 = arith.constant 0 : index
    %1 = vector.load %arg16[%c256, %c0] : memref<264x64xf32, #tpu.memory_space<vmem>>, vector<8x64xf32>
    tpu.vector_store %arg16[%c256, %c0], %0 {strides = array<i32>} : memref<264x64xf32, #tpu.memory_space<vmem>>, vector<8x64xf32>,
    %c0_0 = arith.constant 0 : index
    %c0_1 = arith.constant 0 : index
    %2 = vector.load %arg1[%c0_0, %c0_1] : memref<256x2xf32, #tpu.memory_space<vmem>>, vector<256x2xf32>
    %c0_2 = arith.constant 0 : index
    %c0_3 = arith.constant 0 : index
    %3 = vector.load %arg16[%c0_2, %c0_3] : memref<264x64xf32, #tpu.memory_space<vmem>>, vector<256x2xf32>
    tpu.vector_store %arg16[%c0_2, %c0_3], %2 {strides = array<i32>} : memref<264x64xf32, #tpu.memory_space<vmem>>, vector<256x2xf32>,
    %c1 = arith.constant 1 : index
    %c0_4 = arith.constant 0 : index
    %4 = vector.load %arg16[%c1, %c0_4] : memref<264x64xf32, #tpu.memory_space<vmem>>, vector<256x2xf32>
    %c2 = arith.constant 2 : index
    %c0_5 = arith.constant 0 : index
    %5 = vector.load %arg16[%c2, %c0_5] : memref<264x64xf32, #tpu.memory_space<vmem>>, vector<256x2xf32>
    %6 = tpu.concatenate %2, %4, %5 in 1 : vector<256x2xf32>, vector<256x2xf32>, vector<256x2xf32> -> vector<256x6xf32>
    %c0_6 = arith.constant 0 : index
    %c0_7 = arith.constant 0 : index
    %7 = vector.load %arg2[%c0_6, %c0_7] : memref<6x32xf32, #tpu.memory_space<vmem>>, vector<6x32xf32>
    %cst_8 = arith.constant dense<0.000000e+00> : vector<256x32xf32>
    %8 = tpu.matmul %6, %7, %cst_8 {dimension_numbers = #tpu.dot_dimension_numbers<[1], [0], [0], [1], [0, 0, 1, 1], [], []>} : vector<256x6xf32>, vector<6x32xf32>, vector<256x32xf32> -> vector<256x32xf32>
    %c0_9 = arith.constant 0 : index
    %c0_10 = arith.constant 0 : index
    %9 = vector.load %arg3[%c0_9, %c0_10] : memref<1x32xf32, #tpu.memory_space<vmem>>, vector<1x32xf32>
    %10 = vector.broadcast %9 : vector<1x32xf32> to vector<256x32xf32>
    %11 = arith.addf %8, %10 : vector<256x32xf32>
    %cst_11 = arith.constant 0.000000e+00 : f32
    %12 = vector.broadcast %cst_11 : f32 to vector<256x32xf32>
    %13 = arith.maximumf %11, %12 : vector<256x32xf32>
    %c0_12 = arith.constant 0 : index
    %c0_13 = arith.constant 0 : index
    %14 = vector.load %arg16[%c0_12, %c0_13] : memref<264x64xf32, #tpu.memory_space<vmem>>, vector<256x32xf32>
    tpu.vector_store %arg16[%c0_12, %c0_13], %13 {strides = array<i32>} : memref<264x64xf32, #tpu.memory_space<vmem>>, vector<256x32xf32>,
    %c1_14 = arith.constant 1 : index
    %c0_15 = arith.constant 0 : index
    %15 = vector.load %arg16[%c1_14, %c0_15] : memref<264x64xf32, #tpu.memory_space<vmem>>, vector<256x32xf32>
    %c2_16 = arith.constant 2 : index
    %c0_17 = arith.constant 0 : index
    %16 = vector.load %arg16[%c2_16, %c0_17] : memref<264x64xf32, #tpu.memory_space<vmem>>, vector<256x32xf32>
    %17 = tpu.concatenate %13, %15, %16 in 1 : vector<256x32xf32>, vector<256x32xf32>, vector<256x32xf32> -> vector<256x96xf32>
    %c0_18 = arith.constant 0 : index
    %c0_19 = arith.constant 0 : index
    %18 = vector.load %arg4[%c0_18, %c0_19] : memref<96x32xf32, #tpu.memory_space<vmem>>, vector<96x32xf32>
    %cst_20 = arith.constant dense<0.000000e+00> : vector<256x32xf32>
    %19 = tpu.matmul %17, %18, %cst_20 {dimension_numbers = #tpu.dot_dimension_numbers<[1], [0], [0], [1], [0, 0, 1, 1], [], []>} : vector<256x96xf32>, vector<96x32xf32>, vector<256x32xf32> -> vector<256x32xf32>
    %c0_21 = arith.constant 0 : index
    %c0_22 = arith.constant 0 : index
    %20 = vector.load %arg5[%c0_21, %c0_22] : memref<1x32xf32, #tpu.memory_space<vmem>>, vector<1x32xf32>
    %21 = vector.broadcast %20 : vector<1x32xf32> to vector<256x32xf32>
    %22 = arith.addf %19, %21 : vector<256x32xf32>
    %cst_23 = arith.constant 0.000000e+00 : f32
    %23 = vector.broadcast %cst_23 : f32 to vector<256x32xf32>
    %24 = arith.maximumf %22, %23 : vector<256x32xf32>
    %c0_24 = arith.constant 0 : index
    %c0_25 = arith.constant 0 : index
    %25 = vector.load %arg16[%c0_24, %c0_25] : memref<264x64xf32, #tpu.memory_space<vmem>>, vector<256x32xf32>
    tpu.vector_store %arg16[%c0_24, %c0_25], %24 {strides = array<i32>} : memref<264x64xf32, #tpu.memory_space<vmem>>, vector<256x32xf32>,
    %c1_26 = arith.constant 1 : index
    %c0_27 = arith.constant 0 : index
    %26 = vector.load %arg16[%c1_26, %c0_27] : memref<264x64xf32, #tpu.memory_space<vmem>>, vector<256x32xf32>
    %27 = arith.maximumf %24, %26 : vector<256x32xf32>
    %c0_28 = arith.constant 0 : index
    %c0_29 = arith.constant 0 : index
    %28 = vector.load %arg16[%c0_28, %c0_29] : memref<264x64xf32, #tpu.memory_space<vmem>>, vector<256x32xf32>
    tpu.vector_store %arg16[%c0_28, %c0_29], %27 {strides = array<i32>} : memref<264x64xf32, #tpu.memory_space<vmem>>, vector<256x32xf32>,
    %c2_30 = arith.constant 2 : index
    %c0_31 = arith.constant 0 : index
    %29 = vector.load %arg16[%c2_30, %c0_31] : memref<264x64xf32, #tpu.memory_space<vmem>>, vector<256x32xf32>
    %c4 = arith.constant 4 : index
    %c0_32 = arith.constant 0 : index
    %30 = vector.load %arg16[%c4, %c0_32] : memref<264x64xf32, #tpu.memory_space<vmem>>, vector<256x32xf32>
    %31 = tpu.concatenate %27, %29, %30 in 1 : vector<256x32xf32>, vector<256x32xf32>, vector<256x32xf32> -> vector<256x96xf32>
    %c0_33 = arith.constant 0 : index
    %c0_34 = arith.constant 0 : index
    %32 = vector.load %arg6[%c0_33, %c0_34] : memref<96x64xf32, #tpu.memory_space<vmem>>, vector<96x64xf32>
    %cst_35 = arith.constant dense<0.000000e+00> : vector<256x64xf32>
    %33 = tpu.matmul %31, %32, %cst_35 {dimension_numbers = #tpu.dot_dimension_numbers<[1], [0], [0], [1], [0, 0, 1, 1], [], []>} : vector<256x96xf32>, vector<96x64xf32>, vector<256x64xf32> -> vector<256x64xf32>
    %c0_36 = arith.constant 0 : index
    %c0_37 = arith.constant 0 : index
    %34 = vector.load %arg7[%c0_36, %c0_37] : memref<1x64xf32, #tpu.memory_space<vmem>>, vector<1x64xf32>
    %35 = vector.broadcast %34 : vector<1x64xf32> to vector<256x64xf32>
    %36 = arith.addf %33, %35 : vector<256x64xf32>
    %cst_38 = arith.constant 0.000000e+00 : f32
    %37 = vector.broadcast %cst_38 : f32 to vector<256x64xf32>
    %38 = arith.maximumf %36, %37 : vector<256x64xf32>
    %c0_39 = arith.constant 0 : index
    %c0_40 = arith.constant 0 : index
    %39 = vector.load %arg16[%c0_39, %c0_40] : memref<264x64xf32, #tpu.memory_space<vmem>>, vector<256x64xf32>
    tpu.vector_store %arg16[%c0_39, %c0_40], %38 {strides = array<i32>} : memref<264x64xf32, #tpu.memory_space<vmem>>, vector<256x64xf32>,
    %c2_41 = arith.constant 2 : index
    %c0_42 = arith.constant 0 : index
    %40 = vector.load %arg16[%c2_41, %c0_42] : memref<264x64xf32, #tpu.memory_space<vmem>>, vector<256x64xf32>
    %c4_43 = arith.constant 4 : index
    %c0_44 = arith.constant 0 : index
    %41 = vector.load %arg16[%c4_43, %c0_44] : memref<264x64xf32, #tpu.memory_space<vmem>>, vector<256x64xf32>
    %42 = tpu.concatenate %38, %40, %41 in 1 : vector<256x64xf32>, vector<256x64xf32>, vector<256x64xf32> -> vector<256x192xf32>
    %c0_45 = arith.constant 0 : index
    %c0_46 = arith.constant 0 : index
    %43 = vector.load %arg8[%c0_45, %c0_46] : memref<192x64xf32, #tpu.memory_space<vmem>>, vector<192x64xf32>
    %cst_47 = arith.constant dense<0.000000e+00> : vector<256x64xf32>
    %44 = tpu.matmul %42, %43, %cst_47 {dimension_numbers = #tpu.dot_dimension_numbers<[1], [0], [0], [1], [0, 0, 1, 1], [], []>} : vector<256x192xf32>, vector<192x64xf32>, vector<256x64xf32> -> vector<256x64xf32>
    %c0_48 = arith.constant 0 : index
    %c0_49 = arith.constant 0 : index
    %45 = vector.load %arg9[%c0_48, %c0_49] : memref<1x64xf32, #tpu.memory_space<vmem>>, vector<1x64xf32>
    %46 = vector.broadcast %45 : vector<1x64xf32> to vector<256x64xf32>
    %47 = arith.addf %44, %46 : vector<256x64xf32>
    %cst_50 = arith.constant 0.000000e+00 : f32
    %48 = vector.broadcast %cst_50 : f32 to vector<256x64xf32>
    %49 = arith.maximumf %47, %48 : vector<256x64xf32>
    %c0_51 = arith.constant 0 : index
    %c0_52 = arith.constant 0 : index
    %50 = vector.load %arg14[%c0_51, %c0_52] : memref<8x256xf32, #tpu.memory_space<vmem>>, vector<8x256xf32>
    %cst_53 = arith.constant dense<0.000000e+00> : vector<8x64xf32>
    %51 = tpu.matmul %50, %49, %cst_53 {dimension_numbers = #tpu.dot_dimension_numbers<[1], [0], [0], [1], [0, 0, 1, 1], [], []>} : vector<8x256xf32>, vector<256x64xf32>, vector<8x64xf32> -> vector<8x64xf32>
    %c0_54 = arith.constant 0 : index
    %c0_55 = arith.constant 0 : index
    %52 = vector.load %arg10[%c0_54, %c0_55] : memref<64x256xf32, #tpu.memory_space<vmem>>, vector<64x256xf32>
    %cst_56 = arith.constant dense<0.000000e+00> : vector<8x256xf32>
    %53 = tpu.matmul %51, %52, %cst_56 {dimension_numbers = #tpu.dot_dimension_numbers<[1], [0], [0], [1], [0, 0, 1, 1], [], []>} : vector<8x64xf32>, vector<64x256xf32>, vector<8x256xf32> -> vector<8x256xf32>
    %c0_57 = arith.constant 0 : index
    %c0_58 = arith.constant 0 : index
    %54 = vector.load %arg11[%c0_57, %c0_58] : memref<1x256xf32, #tpu.memory_space<vmem>>, vector<1x256xf32>
    %55 = vector.broadcast %54 : vector<1x256xf32> to vector<8x256xf32>
    %56 = arith.addf %53, %55 : vector<8x256xf32>
    %cst_59 = arith.constant 0.000000e+00 : f32
    %57 = vector.broadcast %cst_59 : f32 to vector<8x256xf32>
    %58 = arith.maximumf %56, %57 : vector<8x256xf32>
    %c0_60 = arith.constant 0 : index
    %c0_61 = arith.constant 0 : index
    %59 = vector.load %arg12[%c0_60, %c0_61] : memref<256x128xf32, #tpu.memory_space<vmem>>, vector<256x128xf32>
    %cst_62 = arith.constant dense<0.000000e+00> : vector<8x128xf32>
    %60 = tpu.matmul %58, %59, %cst_62 {dimension_numbers = #tpu.dot_dimension_numbers<[1], [0], [0], [1], [0, 0, 1, 1], [], []>} : vector<8x256xf32>, vector<256x128xf32>, vector<8x128xf32> -> vector<8x128xf32>
    %c0_63 = arith.constant 0 : index
    %c0_64 = arith.constant 0 : index
    %61 = vector.load %arg13[%c0_63, %c0_64] : memref<1x128xf32, #tpu.memory_space<vmem>>, vector<1x128xf32>
    %62 = vector.broadcast %61 : vector<1x128xf32> to vector<8x128xf32>
    %63 = arith.addf %60, %62 : vector<8x128xf32>
    %c0_65 = arith.constant 0 : index
    %c0_66 = arith.constant 0 : index
    %64 = vector.load %arg15[%c0_65, %c0_66] : memref<8x128xf32, #tpu.memory_space<vmem>>, vector<8x128xf32>
    tpu.vector_store %arg15[%c0_65, %c0_66], %63 {strides = array<i32>} : memref<8x128xf32, #tpu.memory_space<vmem>>, vector<8x128xf32>,
    return
  }
  func.func @transform_0(%arg0: i32) -> (i32, i32) {
    %c0_i32 = arith.constant 0 : i32
    %c0_i32_0 = arith.constant 0 : i32
    return %arg0, %c0_i32 : i32, i32
  }
  func.func @transform_1(%arg0: i32) -> (i32, i32) {
    %c0_i32 = arith.constant 0 : i32
    %c0_i32_0 = arith.constant 0 : i32
    %c0_i32_1 = arith.constant 0 : i32
    return %c0_i32, %c0_i32_0 : i32, i32
  }
  func.func @transform_2(%arg0: i32) -> (i32, i32) {
    %c0_i32 = arith.constant 0 : i32
    %c0_i32_0 = arith.constant 0 : i32
    %c0_i32_1 = arith.constant 0 : i32
    return %c0_i32, %c0_i32_0 : i32, i32
  }
  func.func @transform_3(%arg0: i32) -> (i32, i32) {
    %c0_i32 = arith.constant 0 : i32
    %c0_i32_0 = arith.constant 0 : i32
    %c0_i32_1 = arith.constant 0 : i32
    return %c0_i32, %c0_i32_0 : i32, i32
  }
  func.func @transform_4(%arg0: i32) -> (i32, i32) {
    %c0_i32 = arith.constant 0 : i32
    %c0_i32_0 = arith.constant 0 : i32
    %c0_i32_1 = arith.constant 0 : i32
    return %c0_i32, %c0_i32_0 : i32, i32
  }
  func.func @transform_5(%arg0: i32) -> (i32, i32) {
    %c0_i32 = arith.constant 0 : i32
    %c0_i32_0 = arith.constant 0 : i32
    %c0_i32_1 = arith.constant 0 : i32
    return %c0_i32, %c0_i32_0 : i32, i32
  }
  func.func @transform_6(%arg0: i32) -> (i32, i32) {
    %c0_i32 = arith.constant 0 : i32
    %c0_i32_0 = arith.constant 0 : i32
    %c0_i32_1 = arith.constant 0 : i32
    return %c0_i32, %c0_i32_0 : i32, i32
  }
  func.func @transform_7(%arg0: i32) -> (i32, i32) {
    %c0_i32 = arith.constant 0 : i32
    %c0_i32_0 = arith.constant 0 : i32
    %c0_i32_1 = arith.constant 0 : i32
    return %c0_i32, %c0_i32_0 : i32, i32
  }
  func.func @transform_8(%arg0: i32) -> (i32, i32) {
    %c0_i32 = arith.constant 0 : i32
    %c0_i32_0 = arith.constant 0 : i32
    %c0_i32_1 = arith.constant 0 : i32
    return %c0_i32, %c0_i32_0 : i32, i32
  }
  func.func @transform_9(%arg0: i32) -> (i32, i32) {
    %c0_i32 = arith.constant 0 : i32
    %c0_i32_0 = arith.constant 0 : i32
    %c0_i32_1 = arith.constant 0 : i32
    return %c0_i32, %c0_i32_0 : i32, i32
  }
  func.func @transform_10(%arg0: i32) -> (i32, i32) {
    %c0_i32 = arith.constant 0 : i32
    %c0_i32_0 = arith.constant 0 : i32
    %c0_i32_1 = arith.constant 0 : i32
    return %c0_i32, %c0_i32_0 : i32, i32
  }
  func.func @transform_11(%arg0: i32) -> (i32, i32) {
    %c0_i32 = arith.constant 0 : i32
    %c0_i32_0 = arith.constant 0 : i32
    %c0_i32_1 = arith.constant 0 : i32
    return %c0_i32, %c0_i32_0 : i32, i32
  }
  func.func @transform_12(%arg0: i32) -> (i32, i32) {
    %c0_i32 = arith.constant 0 : i32
    %c0_i32_0 = arith.constant 0 : i32
    %c0_i32_1 = arith.constant 0 : i32
    return %c0_i32, %c0_i32_0 : i32, i32
  }
  func.func @transform_13(%arg0: i32) -> (i32, i32) {
    %c0_i32 = arith.constant 0 : i32
    %c0_i32_0 = arith.constant 0 : i32
    %c0_i32_1 = arith.constant 0 : i32
    return %c0_i32, %c0_i32_0 : i32, i32
  }
  func.func @transform_14(%arg0: i32) -> (i32, i32) {
    %c0_i32 = arith.constant 0 : i32
    %c0_i32_0 = arith.constant 0 : i32
    return %arg0, %c0_i32 : i32, i32
  }
}

</mosaic_0001>

<bundles_post_ra>
// kernel: tpu_custom_call.1
= control target key start
LH: loop header
LB: loop body
LE: loop exit
PB: predicated region body
PF: predicated region fallthrough
CT: control target
= control target key end

     0   :  { %vm82_vm0 = vcmask 15360   ;;  %s5418_s0 = inlined_call_operand.vmem [shape: f32[256,2], index: 0, kind: input, shape index: {}]   ;;  %s5419_s1 = inlined_call_operand.vmem [shape: f32[6,32], index: 1, kind: input, shape index: {}]   ;;  %s5420_s2 = inlined_call_operand.vmem [shape: f32[1,32], index: 2, kind: input, shape index: {}]   ;;  %s5421_s3 = inlined_call_operand.vmem [shape: f32[96,32], index: 3, kind: input, shape index: {}]   ;;  %s5422_s4 = inlined_call_operand.vmem [shape: f32[1,32], index: 4, kind: input, shape index: {}]   ;;  %s5423_s5 = inlined_call_operand.vmem [shape: f32[96,64], index: 5, kind: input, shape index: {}]   ;;  %s5424_s6 = inlined_call_operand.vmem [shape: f32[1,64], index: 6, kind: input, shape index: {}]   ;;  %s5425_s7 = inlined_call_operand.vmem [shape: f32[192,64], index: 7, kind: input, shape index: {}]   ;;  %s5426_s8 = inlined_call_operand.vmem [shape: f32[1,64], index: 8, kind: input, shape index: {}]   ;;  %s5427_s9 = inlined_call_operand.vmem [shape: f32[64,256], index: 9, kind: input, shape index: {}]   ;;  %s5428_s10 = inlined_call_operand.vmem [shape: f32[1,256], index: 10, kind: input, shape index: {}]   ;;  %s5429_s11 = inlined_call_operand.vmem [shape: f32[256,128], index: 11, kind: input, shape index: {}]   ;;  %s5430_s12 = inlined_call_operand.vmem [shape: f32[1,128], index: 12, kind: input, shape index: {}]   ;;  %s5431_s13 = inlined_call_operand.vmem [shape: f32[8,256], index: 13, kind: input, shape index: {}]   ;;  %s5432_s14 = inlined_call_operand.hbm [shape: f32[8,128], index: 14, kind: output, shape index: {}]  }
   0x1   :  { %v3295_v0 = vld [vmem:[%s5418_s0] sm:$0xff]  ;;  %v3300_v1 = vld [vmem:[%s5418_s0 + $0x8] sm:$0xff]  ;;  %v3305_v2 = vld [vmem:[%s5418_s0 + $0x10] sm:$0xff] }
   0x2   :  { %83 = vst.msk [vmem:[#allocation2] sm:$0xff] %vm82_vm0, %v3295_v0  ;;  %v3312_v3 = vld [vmem:[%s5418_s0 + $0x18] sm:$0xff]  ;;  %v3319_v4 = vld [vmem:[%s5418_s0 + $0x20] sm:$0xff]  ;;  %v3326_v5 = vld [vmem:[%s5418_s0 + $0x28] sm:$0xff] }
   0x3   :  { %84 = vst.msk [vmem:[#allocation2 + $0x8] sm:$0xff] %vm82_vm0, %v3300_v1  ;;  %v3333_v6 = vld [vmem:[%s5418_s0 + $0x30] sm:$0xff] }
   0x4   :  { %85 = vst.msk [vmem:[#allocation2 + $0x10] sm:$0xff] %vm82_vm0, %v3305_v2 }
   0x5   :  { %86 = vst.msk [vmem:[#allocation2 + $0x18] sm:$0xff] %vm82_vm0, %v3312_v3 }
   0x6   :  { %19 = vsyncpa [#allocation4], 0  ;;  %87 = vst.msk [vmem:[#allocation2 + $0x20] sm:$0xff] %vm82_vm0, %v3319_v4  ;;  %v3340_v7 = vld [vmem:[%s5418_s0 + $0x38] sm:$0xff]  ;;  %s3211_s29 = smov 2   ;;  %v3353_v11 = vld [vmem:[%s5418_s0 + $0x40] sm:$0xff] }
   0x7   :  { %88 = vst.msk [vmem:[#allocation2 + $0x28] sm:$0xff] %vm82_vm0, %v3326_v5  ;;  %s3212_s16 = smov 4   ;;  %v3362_v15 = vld [vmem:[%s5418_s0 + $0x48] sm:$0xff]  ;;  %v3370_v16 = vld [vmem:[%s5418_s0 + $0x50] sm:$0xff]  ;;  %v3380_v20 = vld [vmem:[%s5418_s0 + $0x58] sm:$0xff]  ;;  %vm602_vm1 = vcmask 1045504  }
   0x8   :  { %89 = vst.msk [vmem:[#allocation2 + $0x30] sm:$0xff] %vm82_vm0, %v3333_v6  ;;  %v3389_v24 = vld [vmem:[%s5418_s0 + $0x60] sm:$0xff]  ;;  %v3397_v25 = vld [vmem:[%s5418_s0 + $0x68] sm:$0xff]  ;;  %v3407_v29 = vld [vmem:[%s5418_s0 + $0x70] sm:$0xff]  ;;  %vm467_vm2 = vcmask 31744   ;;  %vm505_vm3 = vcmask 48128  }
   0x9   :  { %90 = vst.msk [vmem:[#allocation2 + $0x38] sm:$0xff] %vm82_vm0, %v3340_v7  ;;  %v3416_v33 = vld [vmem:[%s5418_s0 + $0x78] sm:$0xff]  ;;  %v3424_v34 = vld [vmem:[%s5418_s0 + $0x80] sm:$0xff]  ;;  %v3435_v38 = vld [vmem:[%s5418_s0 + $0x88] sm:$0xff]  ;;  %vm751_vm4 = vcmask 261120   ;;  %s3214_s21 = smov 32  }
   0xa   :  { %v115_v8 = vld [vmem:[#allocation2 + $0x1] sm:$0xff]  ;;  %91 = vst.msk [vmem:[#allocation2 + $0x40] sm:$0xff] %vm82_vm0, %v3353_v11  ;;  %v3443_v42 = vld [vmem:[%s5418_s0 + $0x90] sm:$0xff]  ;;  %v3458_v51 = vld [vmem:[%s5418_s0 + $0x98] sm:$0xff]  ;;  %vm48_vm5 = vcmask 523264   ;;  %vm1184_vm6 = vcmask 785408  }
   0xb   :  { %211 = vrot.lane.b32.xlu0 %v115_v8, %s3211_s29  ;;  %v116_v9 = vld [vmem:[#allocation2 + $0x9] sm:$0xff]  ;;  %92 = vst.msk [vmem:[#allocation2 + $0x48] sm:$0xff] %vm82_vm0, %v3362_v15  ;;  %v3467_v54 = vld [vmem:[%s5418_s0 + $0xa0] sm:$0xff] }
   0xc   :  { %213 = vrot.lane.b32.xlu1 %v116_v9, %s3211_s29  ;;  %v117_v10 = vld [vmem:[#allocation2 + $0x11] sm:$0xff]  ;;  %v147_v12 = vld [vmem:[#allocation2 + $0x2] sm:$0xff]  ;;  %93 = vst.msk [vmem:[#allocation2 + $0x50] sm:$0xff] %vm82_vm0, %v3370_v16 }
   0xd   :  { %215 = vrot.lane.b32.xlu2 %v117_v10, %s3211_s29  ;;  %v148_v13 = vld [vmem:[#allocation2 + $0xa] sm:$0xff]  ;;  %v149_v14 = vld [vmem:[#allocation2 + $0x12] sm:$0xff]  ;;  %v150_v18 = vld [vmem:[#allocation2 + $0x1a] sm:$0xff]  ;;  %94 = vst.msk [vmem:[#allocation2 + $0x58] sm:$0xff] %vm82_vm0, %v3380_v20 }
   0xe   :  { %v118_v17 = vld [vmem:[#allocation2 + $0x19] sm:$0xff]  ;;  %v119_v19 = vld [vmem:[#allocation2 + $0x21] sm:$0xff]  ;;  %95 = vst.msk [vmem:[#allocation2 + $0x60] sm:$0xff] %vm82_vm0, %v3389_v24  ;;  %v3490_v61 = vld [vmem:[%s5418_s0 + $0xb0] sm:$0xff] }
   0xf   :  { %v151_v21 = vld [vmem:[#allocation2 + $0x22] sm:$0xff]  ;;  %v152_v23 = vld [vmem:[#allocation2 + $0x2a] sm:$0xff]  ;;  %96 = vst.msk [vmem:[#allocation2 + $0x68] sm:$0xff] %vm82_vm0, %v3397_v25  ;;  %v3502_v10 = vld [vmem:[%s5418_s0 + $0xb8] sm:$0xff] }
  0x10   :  { %v120_v22 = vld [vmem:[#allocation2 + $0x29] sm:$0xff]  ;;  %v121_v26 = vld [vmem:[#allocation2 + $0x31] sm:$0xff]  ;;  %97 = vst.msk [vmem:[#allocation2 + $0x70] sm:$0xff] %vm82_vm0, %v3407_v29  ;;  %v500_v56 = vld [vmem:[%s5419_s1] sm:$0x3f] }
  0x11   :  { %v153_v27 = vld [vmem:[#allocation2 + $0x32] sm:$0xff]  ;;  %v154_v30 = vld [vmem:[#allocation2 + $0x3a] sm:$0xff]  ;;  %98 = vst.msk [vmem:[#allocation2 + $0x78] sm:$0xff] %vm82_vm0, %v3416_v33  ;;  %v3475_v55 = vld [vmem:[%s5418_s0 + $0xa8] sm:$0xff]  ;;  %3035 = vmatpush.msk.msra.mxu0 %vm602_vm1, %v500_v56  ;;  %3166 = vmatpush.msk.msra.mxu1 %vm602_vm1, %v500_v56 }
  0x12   :  { %v122_v28 = vld [vmem:[#allocation2 + $0x39] sm:$0xff]  ;;  %v123_v31 = vld [vmem:[#allocation2 + $0x41] sm:$0xff]  ;;  %99 = vst.msk [vmem:[#allocation2 + $0x80] sm:$0xff] %vm82_vm0, %v3424_v34  ;;  %3167 = vmatpush.msk.msra.mxu2 %vm602_vm1, %v500_v56 }
  0x13   :  { %339 = vrot.lane.b32.xlu0 %v147_v12, %s3212_s16  ;;  %v155_v32 = vld [vmem:[#allocation2 + $0x42] sm:$0xff]  ;;  %v156_v36 = vld [vmem:[#allocation2 + $0x4a] sm:$0xff]  ;;  %100 = vst.msk [vmem:[#allocation2 + $0x88] sm:$0xff] %vm82_vm0, %v3435_v38 }
  0x14   :  { %341 = vrot.lane.b32.xlu1 %v148_v13, %s3212_s16  ;;  %v124_v35 = vld [vmem:[#allocation2 + $0x49] sm:$0xff]  ;;  %v125_v37 = vld [vmem:[#allocation2 + $0x51] sm:$0xff]  ;;  %101 = vst.msk [vmem:[#allocation2 + $0x90] sm:$0xff] %vm82_vm0, %v3443_v42  ;;  %v3508_v12 = vld [vmem:[%s5418_s0 + $0xc0] sm:$0xff] }
  0x15   :  { %343 = vrot.lane.b32.xlu2 %v149_v14, %s3212_s16  ;;  %v157_v39 = vld [vmem:[#allocation2 + $0x52] sm:$0xff]  ;;  %v158_v41 = vld [vmem:[#allocation2 + $0x5a] sm:$0xff]  ;;  %102 = vst.msk [vmem:[#allocation2 + $0x98] sm:$0xff] %vm82_vm0, %v3458_v51 }
  0x16   :  { %v126_v40 = vld [vmem:[#allocation2 + $0x59] sm:$0xff]  ;;  %v127_v43 = vld [vmem:[#allocation2 + $0x61] sm:$0xff]  ;;  %103 = vst.msk [vmem:[#allocation2 + $0xa0] sm:$0xff] %vm82_vm0, %v3467_v54 }
  0x17   :  { %v159_v44 = vld [vmem:[#allocation2 + $0x62] sm:$0xff]  ;;  %v160_v46 = vld [vmem:[#allocation2 + $0x6a] sm:$0xff]  ;;  %104 = vst.msk [vmem:[#allocation2 + $0xa8] sm:$0xff] %vm82_vm0, %v3475_v55 }
  0x18   :  { %v128_v45 = vld [vmem:[#allocation2 + $0x69] sm:$0xff]  ;;  %v129_v47 = vld [vmem:[#allocation2 + $0x71] sm:$0xff]  ;;  %105 = vst.msk [vmem:[#allocation2 + $0xb0] sm:$0xff] %vm82_vm0, %v3490_v61 }
  0x19   :  { %v161_v48 = vld [vmem:[#allocation2 + $0x72] sm:$0xff]  ;;  %v162_v50 = vld [vmem:[#allocation2 + $0x7a] sm:$0xff]  ;;  %106 = vst.msk [vmem:[#allocation2 + $0xb8] sm:$0xff] %vm82_vm0, %v3502_v10 }
  0x1a   :  { %v130_v49 = vld [vmem:[#allocation2 + $0x79] sm:$0xff]  ;;  %v163_v52 = vld [vmem:[#allocation2 + $0x82] sm:$0xff]  ;;  %107 = vst.msk [vmem:[#allocation2 + $0xc0] sm:$0xff] %vm82_vm0, %v3508_v12 }
  0x1b   :  { %217 = vrot.lane.b32.xlu0 %v118_v17, %s3211_s29  ;;  %v132_v53 = vld [vmem:[#allocation2 + $0x89] sm:$0xff]  ;;  %v131_v58 = vld [vmem:[#allocation2 + $0x81] sm:$0xff] }
  0x1c   :  { %345 = vrot.lane.b32.xlu1 %v150_v18, %s3212_s16  ;;  %v133_v59 = vld [vmem:[#allocation2 + $0x91] sm:$0xff] }
  0x1d   :  { %219 = vrot.lane.b32.xlu2 %v119_v19, %s3211_s29  ;;  %v165_v60 = vld [vmem:[#allocation2 + $0x92] sm:$0xff]  ;;  %v164_v63 = vld [vmem:[#allocation2 + $0x8a] sm:$0xff]  ;;  %v166_v8 = vld [vmem:[#allocation2 + $0x9a] sm:$0xff] }
  0x1e   :  { %v135_v9 = vld [vmem:[#allocation2 + $0xa1] sm:$0xff]  ;;  %v134_v14 = vld [vmem:[#allocation2 + $0x99] sm:$0xff] }
  0x1f   :  { %v136_v17 = vld [vmem:[#allocation2 + $0xa9] sm:$0xff] }
  0x20   :  { %v168_v18 = vld [vmem:[#allocation2 + $0xaa] sm:$0xff] }
  0x21   :  { %v3521_v19 = vld [vmem:[%s5418_s0 + $0xc8] sm:$0xff] }
  0x22   :  { %108 = vst.msk [vmem:[#allocation2 + $0xc8] sm:$0xff] %vm82_vm0, %v3521_v19 }
  0x23   :  { %347 = vrot.lane.b32.xlu0 %v151_v21, %s3212_s16 }
  0x24   :  { %221 = vrot.lane.b32.xlu1 %v120_v22, %s3211_s29 }
  0x25   :  { %349 = vrot.lane.b32.xlu2 %v152_v23, %s3212_s16  ;;  %v167_v23 = vld [vmem:[#allocation2 + $0xa2] sm:$0xff] }
  0x2b   :  { %223 = vrot.lane.b32.xlu0 %v121_v26, %s3211_s29  ;;  %v169_v26 = vld [vmem:[#allocation2 + $0xb2] sm:$0xff] }
  0x2c   :  { %351 = vrot.lane.b32.xlu1 %v153_v27, %s3212_s16  ;;  %v138_v27 = vld [vmem:[#allocation2 + $0xb9] sm:$0xff] }
  0x2d   :  { %225 = vrot.lane.b32.xlu2 %v122_v28, %s3211_s29 }
  0x33   :  { %353 = vrot.lane.b32.xlu0 %v154_v30, %s3212_s16  ;;  %v3531_v30 = vld [vmem:[%s5418_s0 + $0xd0] sm:$0xff] }
  0x34   :  { %227 = vrot.lane.b32.xlu1 %v123_v31, %s3211_s29  ;;  %109 = vst.msk [vmem:[#allocation2 + $0xd0] sm:$0xff] %vm82_vm0, %v3531_v30 }
  0x35   :  { %355 = vrot.lane.b32.xlu2 %v155_v32, %s3212_s16 }
  0x3b   :  { %229 = vrot.lane.b32.xlu0 %v124_v35, %s3211_s29 }
  0x3c   :  { %357 = vrot.lane.b32.xlu1 %v156_v36, %s3212_s16 }
  0x3d   :  { %231 = vrot.lane.b32.xlu2 %v125_v37, %s3211_s29  ;;  %v137_v37 = vld [vmem:[#allocation2 + $0xb1] sm:$0xff] }
  0x43   :  { %359 = vrot.lane.b32.xlu0 %v157_v39, %s3212_s16  ;;  %v139_v39 = vld [vmem:[#allocation2 + $0xc1] sm:$0xff] }
  0x44   :  { %233 = vrot.lane.b32.xlu1 %v126_v40, %s3211_s29  ;;  %v171_v40 = vld [vmem:[#allocation2 + $0xc2] sm:$0xff] }
  0x45   :  { %361 = vrot.lane.b32.xlu2 %v158_v41, %s3212_s16 }
  0x4b   :  { %235 = vrot.lane.b32.xlu0 %v127_v43, %s3211_s29 }
  0x4c   :  { %363 = vrot.lane.b32.xlu1 %v159_v44, %s3212_s16 }
  0x4d   :  { %237 = vrot.lane.b32.xlu2 %v128_v45, %s3211_s29 }
  0x53   :  { %365 = vrot.lane.b32.xlu0 %v160_v46, %s3212_s16 }
  0x54   :  { %239 = vrot.lane.b32.xlu1 %v129_v47, %s3211_s29  ;;  %v140_v47 = vld [vmem:[#allocation2 + $0xc9] sm:$0xff] }
  0x55   :  { %367 = vrot.lane.b32.xlu2 %v161_v48, %s3212_s16 }
  0x5b   :  { %241 = vrot.lane.b32.xlu0 %v130_v49, %s3211_s29 }
  0x5c   :  { %369 = vrot.lane.b32.xlu1 %v162_v50, %s3212_s16  ;;  %v3561_v50 = vld [vmem:[%s5418_s0 + $0xe0] sm:$0xff] }
  0x5d   :  { %243 = vrot.lane.b32.xlu2 %v131_v58, %s3211_s29  ;;  %111 = vst.msk [vmem:[#allocation2 + $0xe0] sm:$0xff] %vm82_vm0, %v3561_v50 }
  0x63   :  { %371 = vrot.lane.b32.xlu0 %v163_v52, %s3212_s16 }
  0x64   :  { %245 = vrot.lane.b32.xlu1 %v132_v53, %s3211_s29 }
  0x65   :  { %373 = vrot.lane.b32.xlu2 %v164_v63, %s3212_s16 }
  0x67   :  { %v3483_v57 = vpop.permute.xlu2 %215 }
  0x68   :  { %v437_v48 = vsel %vm82_vm0, %v3305_v2, %v3483_v57 }
  0x6b   :  { %247 = vrot.lane.b32.xlu0 %v133_v59, %s3211_s29 }
  0x6c   :  { %375 = vrot.lane.b32.xlu1 %v165_v60, %s3212_s16 }
  0x6d   :  { %249 = vrot.lane.b32.xlu2 %v134_v14, %s3211_s29 }
  0x6f   :  { %v3495_v62 = vpop.permute.xlu2 %343 }
  0x70   :  { %v470_v56 = vsel %vm467_vm2, %v437_v48, %v3495_v62  ;;  %v172_v62 = vld [vmem:[#allocation2 + $0xca] sm:$0xff] }
  0x73   :  { %377 = vrot.lane.b32.xlu0 %v166_v8, %s3212_s16 }
  0x74   :  { %251 = vrot.lane.b32.xlu1 %v135_v9, %s3211_s29 }
  0x75   :  { %379 = vrot.lane.b32.xlu2 %v167_v23, %s3212_s16 }
  0x77   :  { %v3514_v13 = vpop.permute.xlu2 %219 }
  0x7b   :  { %253 = vrot.lane.b32.xlu0 %v136_v17, %s3211_s29 }
  0x7c   :  { %381 = vrot.lane.b32.xlu1 %v168_v18, %s3212_s16 }
  0x7d   :  { %v212_v21 = vpop.permute.xlu0 %211  ;;  %255 = vrot.lane.b32.xlu2 %v137_v37, %s3211_s29 }
  0x7e   :  { %v214_v22 = vpop.permute.xlu1 %213  ;;  %v435_v31 = vsel %vm82_vm0, %v3295_v0, %v212_v21  ;;  %v3547_v0 = vld [vmem:[%s5418_s0 + $0xd8] sm:$0xff] }
  0x7f   :  { %v350_v28 = vpop.permute.xlu2 %349  ;;  %v436_v41 = vsel %vm82_vm0, %v3300_v1, %v214_v22  ;;  %110 = vst.msk [vmem:[#allocation2 + $0xd8] sm:$0xff] %vm82_vm0, %v3547_v0  ;;  %v170_v1 = vld [vmem:[#allocation2 + $0xba] sm:$0xff] }
  0x83   :  { %383 = vrot.lane.b32.xlu0 %v169_v26, %s3212_s16 }
  0x84   :  { %257 = vrot.lane.b32.xlu1 %v138_v27, %s3211_s29 }
  0x85   :  { %v340_v32 = vpop.permute.xlu0 %339  ;;  %385 = vrot.lane.b32.xlu2 %v170_v1, %s3212_s16 }
  0x86   :  { %v342_v35 = vpop.permute.xlu1 %341  ;;  %v468_v36 = vsel %vm467_vm2, %v435_v31, %v340_v32  ;;  %v173_v49 = vld [vmem:[#allocation2 + $0xd2] sm:$0xff]  ;;  %v174_v59 = vld [vmem:[#allocation2 + $0xda] sm:$0xff] }
  0x87   :  { %3036 = vmatmul.msk.f32.vlgmr.msra.gmra.mxu0 %vm505_vm3, %v468_v36  ;;  %v226_v43 = vpop.permute.xlu2 %225  ;;  %v469_v45 = vsel %vm467_vm2, %v436_v41, %v342_v35  ;;  %v142_v57 = vld [vmem:[#allocation2 + $0xd9] sm:$0xff]  ;;  %v141_v21 = vld [vmem:[#allocation2 + $0xd1] sm:$0xff] }
  0x8b   :  { %259 = vrot.lane.b32.xlu0 %v139_v39, %s3211_s29 }
  0x8c   :  { %387 = vrot.lane.b32.xlu1 %v171_v40, %s3212_s16 }
  0x8d   :  { %v218_v44 = vpop.permute.xlu0 %217  ;;  %389 = vrot.lane.b32.xlu2 %v172_v62, %s3212_s16 }
  0x8e   :  { %v346_v46 = vpop.permute.xlu1 %345  ;;  %v438_v2 = vsel %vm82_vm0, %v3312_v3, %v218_v44  ;;  %v439_v3 = vsel %vm82_vm0, %v3319_v4, %v3514_v13 }
  0x8f   :  { %3037 = vmatmul.msk.f32.gmra.mxu0 %vm505_vm3, %v469_v45  ;;  %v356_v53 = vpop.permute.xlu2 %355  ;;  %v471_v60 = vsel %vm467_vm2, %v438_v2, %v346_v46 }
  0x93   :  { %391 = vrot.lane.b32.xlu0 %v173_v49, %s3212_s16 }
  0x94   :  { %261 = vrot.lane.b32.xlu1 %v140_v47, %s3211_s29 }
  0x95   :  { %v348_v52 = vpop.permute.xlu0 %347  ;;  %263 = vrot.lane.b32.xlu2 %v141_v21, %s3211_s29 }
  0x96   :  { %v222_v58 = vpop.permute.xlu1 %221  ;;  %v472_v14 = vsel %vm467_vm2, %v439_v3, %v348_v52 }
  0x97   :  { %3038 = vmatmul.msk.f32.gmra.mxu0 %vm505_vm3, %v470_v56  ;;  %v232_v9 = vpop.permute.xlu2 %231  ;;  %v440_v22 = vsel %vm82_vm0, %v3326_v5, %v222_v58  ;;  %v442_v5 = vsel %vm82_vm0, %v3340_v7, %v226_v43 }
  0x98   :  { %v473_v26 = vsel %vm467_vm2, %v440_v22, %v350_v28 }
  0x9b   :  { %265 = vrot.lane.b32.xlu0 %v142_v57, %s3211_s29 }
  0x9c   :  { %393 = vrot.lane.b32.xlu1 %v174_v59, %s3212_s16 }
  0x9d   :  { %v224_v63 = vpop.permute.xlu0 %223 }
  0x9e   :  { %v352_v8 = vpop.permute.xlu1 %351  ;;  %v441_v4 = vsel %vm82_vm0, %v3333_v6, %v224_v63 }
  0x9f   :  { %3039 = vmatmul.msk.f32.gmra.mxu0 %vm505_vm3, %v471_v60  ;;  %v362_v23 = vpop.permute.xlu2 %361  ;;  %v474_v32 = vsel %vm467_vm2, %v441_v4, %v352_v8 }
  0xa5   :  { %v354_v17 = vpop.permute.xlu0 %353 }
  0xa6   :  { %v228_v18 = vpop.permute.xlu1 %227  ;;  %v475_v37 = vsel %vm467_vm2, %v442_v5, %v354_v17 }
  0xa7   :  { %3040 = vmatmul.msk.f32.gmra.mxu0 %vm505_vm3, %v472_v14  ;;  %v238_v13 = vpop.permute.xlu2 %237  ;;  %v443_v6 = vsel %vm82_vm0, %v3353_v11, %v228_v18 }
  0xa8   :  { %v448_v41 = vsel %vm82_vm0, %v3397_v25, %v238_v13  ;;  %v476_v44 = vsel %vm467_vm2, %v443_v6, %v356_v53  ;;  %v445_v53 = vsel %vm82_vm0, %v3370_v16, %v232_v9 }
  0xad   :  { %v230_v27 = vpop.permute.xlu0 %229 }
  0xae   :  { %v358_v31 = vpop.permute.xlu1 %357  ;;  %v444_v43 = vsel %vm82_vm0, %v3362_v15, %v230_v27 }
  0xaf   :  { %3041 = vmatmul.msk.f32.gmra.mxu0 %vm505_vm3, %v473_v26  ;;  %v368_v39 = vpop.permute.xlu2 %367  ;;  %v477_v47 = vsel %vm467_vm2, %v444_v43, %v358_v31 }
  0xb5   :  { %v360_v35 = vpop.permute.xlu0 %359 }
  0xb6   :  { %v234_v36 = vpop.permute.xlu1 %233  ;;  %v478_v56 = vsel %vm467_vm2, %v445_v53, %v360_v35 }
  0xb7   :  { %3042 = vmatmul.msk.f32.gmra.mxu0 %vm505_vm3, %v474_v32  ;;  %v244_v46 = vpop.permute.xlu2 %243  ;;  %v446_v59 = vsel %vm82_vm0, %v3380_v20, %v234_v36  ;;  %v3649_v32 = vld [vmem:[%s5418_s0 + $0xe8] sm:$0xff] }
  0xb8   :  { %v451_v16 = vsel %vm82_vm0, %v3424_v34, %v244_v46  ;;  %v479_v60 = vsel %vm467_vm2, %v446_v59, %v362_v23  ;;  %112 = vst.msk [vmem:[#allocation2 + $0xe8] sm:$0xff] %vm82_vm0, %v3649_v32 }
  0xbd   :  { %v236_v28 = vpop.permute.xlu0 %235 }
  0xbe   :  { %v364_v40 = vpop.permute.xlu1 %363  ;;  %v447_v9 = vsel %vm82_vm0, %v3389_v24, %v236_v28 }
  0xbf   :  { %3043 = vmatmul.msk.f32.gmra.mxu0 %vm505_vm3, %v475_v37  ;;  %v374_v52 = vpop.permute.xlu2 %373  ;;  %v480_v3 = vsel %vm467_vm2, %v447_v9, %v364_v40  ;;  %v3672_v40 = vld [vmem:[%s5418_s0 + $0xf0] sm:$0xff] }
  0xc0   :  { %113 = vst.msk [vmem:[#allocation2 + $0xf0] sm:$0xff] %vm82_vm0, %v3672_v40 }
  0xc5   :  { %v366_v45 = vpop.permute.xlu0 %365 }
  0xc6   :  { %v481_v1 = vsel %vm467_vm2, %v448_v41, %v366_v45  ;;  %v240_v7 = vpop.permute.xlu1 %239 }
  0xc7   :  { %3044 = vmatmul.msk.f32.gmra.mxu0 %vm505_vm3, %v476_v44  ;;  %3049 = vmatmul.msk.f32.vlgmr.msra.gmra.mxu1 %vm505_vm3, %v481_v1  ;;  %v449_v11 = vsel %vm82_vm0, %v3407_v29, %v240_v7  ;;  %v250_v57 = vpop.permute.xlu2 %249 }
  0xc8   :  { %v482_v25 = vsel %vm467_vm2, %v449_v11, %v368_v39 }
  0xcd   :  { %v242_v48 = vpop.permute.xlu0 %241 }
  0xce   :  { %v370_v49 = vpop.permute.xlu1 %369  ;;  %v450_v15 = vsel %vm82_vm0, %v3416_v33, %v242_v48 }
  0xcf   :  { %3045 = vmatmul.msk.f32.gmra.mxu0 %vm505_vm3, %v477_v47  ;;  %3050 = vmatmul.msk.f32.gmra.mxu1 %vm505_vm3, %v482_v25  ;;  %v483_v29 = vsel %vm467_vm2, %v450_v15, %v370_v49  ;;  %v380_v20 = vpop.permute.xlu2 %379 }
  0xd5   :  { %v372_v58 = vpop.permute.xlu0 %371 }
  0xd6   :  { %v246_v2 = vpop.permute.xlu1 %245  ;;  %v484_v33 = vsel %vm467_vm2, %v451_v16, %v372_v58 }
  0xd7   :  { %3046 = vmatmul.msk.f32.gmra.mxu0 %vm505_vm3, %v478_v56  ;;  %3051 = vmatmul.msk.f32.gmra.mxu1 %vm505_vm3, %v483_v29  ;;  %v452_v62 = vsel %vm82_vm0, %v3435_v38, %v246_v2  ;;  %v256_v21 = vpop.permute.xlu2 %255  ;;  %v454_v38 = vsel %vm82_vm0, %v3458_v51, %v250_v57 }
  0xd8   :  { %v485_v34 = vsel %vm467_vm2, %v452_v62, %v374_v52  ;;  %v457_v43 = vsel %vm82_vm0, %v3490_v61, %v256_v21  ;;  %v176_v62 = vld [vmem:[#allocation2 + $0xea] sm:$0xff]  ;;  %v143_v21 = vld [vmem:[#allocation2 + $0xe1] sm:$0xff] }
  0xdd   :  { %v248_v63 = vpop.permute.xlu0 %247 }
  0xde   :  { %v376_v8 = vpop.permute.xlu1 %375  ;;  %v453_v18 = vsel %vm82_vm0, %v3443_v42, %v248_v63 }
  0xdf   :  { %3047 = vmatmul.msk.f32.gmra.mxu0 %vm505_vm3, %v479_v60  ;;  %3052 = vmatmul.msk.f32.gmra.mxu1 %vm505_vm3, %v484_v33  ;;  %v486_v24 = vsel %vm467_vm2, %v453_v18, %v376_v8  ;;  %v386_v31 = vpop.permute.xlu2 %385  ;;  %v175_v60 = vld [vmem:[#allocation2 + $0xe2] sm:$0xff] }
  0xe5   :  { %v378_v14 = vpop.permute.xlu0 %377 }
  0xe6   :  { %v252_v17 = vpop.permute.xlu1 %251  ;;  %v487_v26 = vsel %vm467_vm2, %v454_v38, %v378_v14  ;;  %v3215_v14 = vmov 0.0  }
  0xe7   :  { %3048 = vmatmul.msk.f32.gmra.mxu0 %vm505_vm3, %v480_v3  ;;  %3053 = vmatmul.msk.f32.gmra.mxu1 %vm505_vm3, %v485_v34  ;;  %v455_v51 = vsel %vm82_vm0, %v3467_v54, %v252_v17  ;;  %v390_v37 = vpop.permute.xlu2 %389  ;;  %v3664_v54 = vld [vmem:[%s5420_s2] ss:$0 sm:$0xff]  ;;  %s3213_s2 = smov 64   ;;  %49 = vst.msk [vmem:[#allocation2 + $0x100] sm:$0xff] %vm48_vm5, %v3215_v14 }
  0xe8   :  { %v488_v35 = vsel %vm467_vm2, %v455_v51, %v380_v20 }
  0xed   :  { %v254_v22 = vpop.permute.xlu0 %253 }
  0xee   :  { %v382_v23 = vpop.permute.xlu1 %381  ;;  %v456_v39 = vsel %vm82_vm0, %v3475_v55, %v254_v22 }
  0xef   :  { %3054 = vmatmul.msk.f32.gmra.mxu1 %vm505_vm3, %v486_v24  ;;  %v489_v6 = vsel %vm467_vm2, %v456_v39, %v382_v23  ;;  %v264_v7 = vpop.permute.xlu2 %263 }
  0xf0   :  { %v461_v11 = vsel %vm82_vm0, %v3531_v30, %v264_v7 }
  0xf5   :  { %v384_v27 = vpop.permute.xlu0 %383 }
  0xf6   :  { %v258_v4 = vpop.permute.xlu1 %257  ;;  %v490_v25 = vsel %vm467_vm2, %v457_v43, %v384_v27 }
  0xf7   :  { %3055 = vmatmul.msk.f32.gmra.mxu1 %vm505_vm3, %v487_v26  ;;  %v458_v42 = vsel %vm82_vm0, %v3502_v10, %v258_v4 }
  0xf8   :  { %v491_v13 = vsel %vm467_vm2, %v458_v42, %v386_v31  ;;  %v144_v31 = vld [vmem:[#allocation2 + $0xe9] sm:$0xff] }
  0xf9   :  { %3059 = vmatmul.msk.f32.vlgmr.msra.gmra.mxu2 %vm505_vm3, %v491_v13 }
  0xfd   :  { %v260_v36 = vpop.permute.xlu0 %259 }
  0xfe   :  { %v388_v5 = vpop.permute.xlu1 %387  ;;  %v459_v10 = vsel %vm82_vm0, %v3508_v12, %v260_v36 }
  0xff   :  { %3056 = vmatmul.msk.f32.gmra.mxu1 %vm505_vm3, %v488_v35  ;;  %v492_v28 = vsel %vm467_vm2, %v459_v10, %v388_v5 }
 0x101   :  { %3060 = vmatmul.msk.f32.gmra.mxu2 %vm505_vm3, %v492_v28 }
 0x104   :  { %v623_v12 = vpop.f32.mrf.mxu0 }
 0x105   :  { %v3678_v41 = vadd.f32 %v3664_v54, %v623_v12  ;;  %v392_v46 = vpop.permute.xlu0 %391 }
 0x106   :  { %v262_v44 = vpop.permute.xlu1 %261  ;;  %v494_v48 = vsel %vm467_vm2, %v461_v11, %v392_v46 }
 0x107   :  { %v719_v55 = vmax.f32 %v3678_v41, 0.0  ;;  %3057 = vmatmul.msk.f32.gmra.mxu1 %vm505_vm3, %v489_v6  ;;  %v460_v45 = vsel %vm82_vm0, %v3521_v19, %v262_v44 }
 0x108   :  { %v493_v1 = vsel %vm467_vm2, %v460_v45, %v390_v37 }
 0x109   :  { %752 = vst.msk [vmem:[#allocation2] sm:$0xff] %vm751_vm4, %v719_v55  ;;  %3061 = vmatmul.msk.f32.gmra.mxu2 %vm505_vm3, %v493_v1 }
 0x10c   :  { %v626_v47 = vpop.f32.mrf.mxu0 }
 0x10d   :  { %v3695_v19 = vadd.f32 %v3664_v54, %v626_v47  ;;  %v266_v61 = vpop.permute.xlu0 %265 }
 0x10e   :  { %v462_v52 = vsel %vm82_vm0, %v3547_v0, %v266_v61  ;;  %v394_v53 = vpop.permute.xlu1 %393  ;;  %v3719_v0 = vld [vmem:[%s5418_s0 + $0xf8] sm:$0xff] }
 0x10f   :  { %v720_v49 = vmax.f32 %v3695_v19, 0.0  ;;  %3058 = vmatmul.msk.f32.gmra.mxu1 %vm505_vm3, %v490_v25  ;;  %v495_v29 = vsel %vm467_vm2, %v462_v52, %v394_v53  ;;  %114 = vst.msk [vmem:[#allocation2 + $0xf8] sm:$0xff] %vm82_vm0, %v3719_v0 }
 0x111   :  { %753 = vst.msk [vmem:[#allocation2 + $0x8] sm:$0xff] %vm751_vm4, %v720_v49  ;;  %3062 = vmatmul.msk.f32.gmra.mxu2 %vm505_vm3, %v494_v48 }
 0x114   :  { %v629_v30 = vpop.f32.mrf.mxu0 }
 0x115   :  { %v3707_v15 = vadd.f32 %v3664_v54, %v629_v30 }
 0x116   :  { %v145_v35 = vld [vmem:[#allocation2 + $0xf1] sm:$0xff]  ;;  %v146_v25 = vld [vmem:[#allocation2 + $0xf9] sm:$0xff] }
 0x117   :  { %v721_v56 = vmax.f32 %v3707_v15, 0.0  ;;  %v177_v6 = vld [vmem:[#allocation2 + $0xf2] sm:$0xff]  ;;  %v178_v61 = vld [vmem:[#allocation2 + $0xfa] sm:$0xff] }
 0x118   :  { %v816_v58 = vld [vmem:[#allocation2 + $0x2] sm:$0xff] }
 0x119   :  { %v784_v2 = vld [vmem:[#allocation2 + $0x1] sm:$0xff]  ;;  %754 = vst.msk [vmem:[#allocation2 + $0x10] sm:$0xff] %vm751_vm4, %v721_v56  ;;  %1008 = vrot.lane.b32.xlu0 %v816_v58, %s3213_s2  ;;  %3063 = vmatmul.msk.f32.gmra.mxu2 %vm505_vm3, %v495_v29  ;;  %v1179_v58 = vld [vmem:[%s5421_s3 + $0x58] sm:$0xff] }
 0x11a   :  { %880 = vrot.lane.b32.xlu2 %v784_v2, %s3214_s21  ;;  %v1178_v2 = vld [vmem:[%s5421_s3 + $0x50] sm:$0xff]  ;;  %1285 = vmatpush.msrb.mxu1 %v1179_v58  ;;  %v1168_v58 = vld [vmem:[%s5421_s3] sm:$0xff] }
 0x11c   :  { %v632_v57 = vpop.f32.mrf.mxu0  ;;  %1286 = vmatpush.msrb.mxu1 %v1178_v2 }
 0x11d   :  { %v3725_v59 = vadd.f32 %v3664_v54, %v632_v57 }
 0x11f   :  { %v722_v16 = vmax.f32 %v3725_v59, 0.0 }
 0x120   :  { %v817_v33 = vld [vmem:[#allocation2 + $0xa] sm:$0xff] }
 0x121   :  { %v785_v63 = vld [vmem:[#allocation2 + $0x9] sm:$0xff]  ;;  %755 = vst.msk [vmem:[#allocation2 + $0x18] sm:$0xff] %vm751_vm4, %v722_v16  ;;  %1010 = vrot.lane.b32.xlu1 %v817_v33, %s3213_s2 }
 0x122   :  { %882 = vrot.lane.b32.xlu0 %v785_v63, %s3214_s21  ;;  %395 = vrot.lane.b32.xlu2 %v175_v60, %s3212_s16 }
 0x124   :  { %v635_v8 = vpop.f32.mrf.mxu0 }
 0x125   :  { %v3735_v9 = vadd.f32 %v3664_v54, %v635_v8 }
 0x127   :  { %v723_v20 = vmax.f32 %v3735_v9, 0.0 }
 0x128   :  { %v818_v3 = vld [vmem:[#allocation2 + $0x12] sm:$0xff] }
 0x129   :  { %v786_v34 = vld [vmem:[#allocation2 + $0x11] sm:$0xff]  ;;  %756 = vst.msk [vmem:[#allocation2 + $0x20] sm:$0xff] %vm751_vm4, %v723_v20 }
 0x12a   :  { %397 = vrot.lane.b32.xlu0 %v176_v62, %s3212_s16  ;;  %884 = vrot.lane.b32.xlu1 %v786_v34, %s3214_s21  ;;  %v1177_v34 = vld [vmem:[%s5421_s3 + $0x48] sm:$0xff] }
 0x12b   :  { %1012 = vrot.lane.b32.xlu2 %v818_v3, %s3213_s2  ;;  %1287 = vmatpush.msrb.mxu1 %v1177_v34 }
 0x12c   :  { %v638_v17 = vpop.f32.mrf.mxu0 }
 0x12d   :  { %v3746_v18 = vadd.f32 %v3664_v54, %v638_v17 }
 0x12f   :  { %v724_v24 = vmax.f32 %v3746_v18, 0.0 }
 0x130   :  { %v819_v22 = vld [vmem:[#allocation2 + $0x1a] sm:$0xff] }
 0x131   :  { %v787_v23 = vld [vmem:[#allocation2 + $0x19] sm:$0xff]  ;;  %757 = vst.msk [vmem:[#allocation2 + $0x28] sm:$0xff] %vm751_vm4, %v724_v24 }
 0x132   :  { %267 = vrot.lane.b32.xlu1 %v143_v21, %s3211_s29  ;;  %1014 = vrot.lane.b32.xlu0 %v819_v22, %s3213_s2  ;;  %v1176_v21 = vld [vmem:[%s5421_s3 + $0x40] sm:$0xff]  ;;  %v1175_v22 = vld [vmem:[%s5421_s3 + $0x38] sm:$0xff] }
 0x133   :  { %886 = vrot.lane.b32.xlu2 %v787_v23, %s3214_s21  ;;  %1288 = vmatpush.msrb.mxu1 %v1176_v21 }
 0x134   :  { %v641_v38 = vpop.f32.mrf.mxu0 }
 0x135   :  { %v3756_v26 = vadd.f32 %v3664_v54, %v641_v38  ;;  %1289 = vmatpush.msrb.mxu1 %v1175_v22 }
 0x137   :  { %v725_v27 = vmax.f32 %v3756_v26, 0.0 }
 0x138   :  { %v820_v4 = vld [vmem:[#allocation2 + $0x22] sm:$0xff] }
 0x139   :  { %v788_v42 = vld [vmem:[#allocation2 + $0x21] sm:$0xff]  ;;  %758 = vst.msk [vmem:[#allocation2 + $0x30] sm:$0xff] %vm751_vm4, %v725_v27 }
 0x13a   :  { %1016 = vrot.lane.b32.xlu1 %v820_v4, %s3213_s2  ;;  %888 = vrot.lane.b32.xlu0 %v788_v42, %s3214_s21 }
 0x13b   :  { %269 = vrot.lane.b32.xlu2 %v144_v31, %s3211_s29  ;;  %v1174_v31 = vld [vmem:[%s5421_s3 + $0x30] sm:$0xff] }
 0x13c   :  { %v644_v13 = vpop.f32.mrf.mxu0  ;;  %1290 = vmatpush.msrb.mxu1 %v1174_v31 }
 0x13d   :  { %v3766_v51 = vadd.f32 %v3664_v54, %v644_v13 }
 0x13f   :  { %v726_v36 = vmax.f32 %v3766_v51, 0.0 }
 0x140   :  { %v821_v5 = vld [vmem:[#allocation2 + $0x2a] sm:$0xff] }
 0x141   :  { %v789_v10 = vld [vmem:[#allocation2 + $0x29] sm:$0xff]  ;;  %759 = vst.msk [vmem:[#allocation2 + $0x38] sm:$0xff] %vm751_vm4, %v726_v36 }
 0x142   :  { %271 = vrot.lane.b32.xlu0 %v145_v35, %s3211_s29  ;;  %890 = vrot.lane.b32.xlu1 %v789_v10, %s3214_s21 }
 0x143   :  { %1018 = vrot.lane.b32.xlu2 %v821_v5, %s3213_s2  ;;  %v1173_v5 = vld [vmem:[%s5421_s3 + $0x28] sm:$0xff] }
 0x144   :  { %v647_v37 = vpop.f32.mrf.mxu0  ;;  %v662_v28 = vpop.f32.mrf.mxu1  ;;  %1291 = vmatpush.msrb.mxu1 %v1173_v5 }
 0x145   :  { %v3776_v39 = vadd.f32 %v3664_v54, %v647_v37  ;;  %v3779_v12 = vadd.f32 %v3664_v54, %v662_v28  ;;  %v1172_v28 = vld [vmem:[%s5421_s3 + $0x20] sm:$0xff] }
 0x146   :  { %1292 = vmatpush.msrb.mxu1 %v1172_v28 }
 0x147   :  { %v727_v44 = vmax.f32 %v3776_v39, 0.0  ;;  %v732_v45 = vmax.f32 %v3779_v12, 0.0  ;;  %v4093_v12 = vld [vmem:[%s5422_s4] ss:$0 sm:$0xff] }
 0x148   :  { %v822_v46 = vld [vmem:[#allocation2 + $0x32] sm:$0xff] }
 0x149   :  { %v790_v1 = vld [vmem:[#allocation2 + $0x31] sm:$0xff]  ;;  %760 = vst.msk [vmem:[#allocation2 + $0x40] sm:$0xff] %vm751_vm4, %v727_v44 }
 0x14a   :  { %399 = vrot.lane.b32.xlu1 %v177_v6, %s3212_s16  ;;  %1020 = vrot.lane.b32.xlu0 %v822_v46, %s3213_s2  ;;  %765 = vst.msk [vmem:[#allocation2 + $0x68] sm:$0xff] %vm751_vm4, %v732_v45  ;;  %v1171_v6 = vld [vmem:[%s5421_s3 + $0x18] sm:$0xff] }
 0x14b   :  { %892 = vrot.lane.b32.xlu2 %v790_v1, %s3214_s21  ;;  %1293 = vmatpush.msrb.mxu1 %v1171_v6 }
 0x14c   :  { %v650_v7 = vpop.f32.mrf.mxu0  ;;  %v665_v43 = vpop.f32.mrf.mxu1 }
 0x14d   :  { %v3793_v11 = vadd.f32 %v3664_v54, %v650_v7  ;;  %v3796_v47 = vadd.f32 %v3664_v54, %v665_v43 }
 0x14f   :  { %v728_v48 = vmax.f32 %v3793_v11, 0.0  ;;  %v733_v30 = vmax.f32 %v3796_v47, 0.0 }
 0x150   :  { %v791_v52 = vld [vmem:[#allocation2 + $0x39] sm:$0xff] }
 0x151   :  { %761 = vst.msk [vmem:[#allocation2 + $0x48] sm:$0xff] %vm751_vm4, %v728_v48  ;;  %v823_v3 = vld [vmem:[#allocation2 + $0x3a] sm:$0xff] }
 0x152   :  { %894 = vrot.lane.b32.xlu0 %v791_v52, %s3214_s21  ;;  %273 = vrot.lane.b32.xlu1 %v146_v25, %s3211_s29  ;;  %766 = vst.msk [vmem:[#allocation2 + $0x70] sm:$0xff] %vm751_vm4, %v733_v30  ;;  %v1170_v25 = vld [vmem:[%s5421_s3 + $0x10] sm:$0xff] }
 0x153   :  { %401 = vrot.lane.b32.xlu2 %v178_v61, %s3212_s16  ;;  %1294 = vmatpush.msrb.mxu1 %v1170_v25 }
 0x154   :  { %v653_v53 = vpop.f32.mrf.mxu0  ;;  %v668_v29 = vpop.f32.mrf.mxu1 }
 0x155   :  { %v3816_v57 = vadd.f32 %v3664_v54, %v653_v53  ;;  %v3819_v60 = vadd.f32 %v3664_v54, %v668_v29  ;;  %v1169_v53 = vld [vmem:[%s5421_s3 + $0x8] sm:$0xff] }
 0x156   :  { %1295 = vmatpush.msrb.mxu1 %v1169_v53 }
 0x157   :  { %v729_v33 = vmax.f32 %v3816_v57, 0.0  ;;  %v734_v63 = vmax.f32 %v3819_v60, 0.0 }
 0x158   :  { %v824_v8 = vld [vmem:[#allocation2 + $0x42] sm:$0xff]  ;;  %1296 = vmatpush.msrb.mxu1 %v1168_v58 }
 0x159   :  { %v792_v62 = vld [vmem:[#allocation2 + $0x41] sm:$0xff]  ;;  %762 = vst.msk [vmem:[#allocation2 + $0x50] sm:$0xff] %vm751_vm4, %v729_v33  ;;  %v797_v21 = vld [vmem:[#allocation2 + $0x69] sm:$0xff] }
 0x15a   :  { %1024 = vrot.lane.b32.xlu0 %v824_v8, %s3213_s2  ;;  %1022 = vrot.lane.b32.xlu1 %v823_v3, %s3213_s2  ;;  %767 = vst.msk [vmem:[#allocation2 + $0x78] sm:$0xff] %vm751_vm4, %v734_v63  ;;  %v829_v31 = vld [vmem:[#allocation2 + $0x6a] sm:$0xff] }
 0x15b   :  { %896 = vrot.lane.b32.xlu2 %v792_v62, %s3214_s21 }
 0x15c   :  { %v656_v14 = vpop.f32.mrf.mxu0  ;;  %v671_v17 = vpop.f32.mrf.mxu1 }
 0x15d   :  { %v3842_v23 = vadd.f32 %v3664_v54, %v656_v14  ;;  %v3845_v38 = vadd.f32 %v3664_v54, %v671_v17 }
 0x15f   :  { %v730_v4 = vmax.f32 %v3842_v23, 0.0  ;;  %v735_v42 = vmax.f32 %v3845_v38, 0.0 }
 0x160   :  { %v793_v13 = vld [vmem:[#allocation2 + $0x49] sm:$0xff] }
 0x161   :  { %v825_v35 = vld [vmem:[#allocation2 + $0x4a] sm:$0xff]  ;;  %763 = vst.msk [vmem:[#allocation2 + $0x58] sm:$0xff] %vm751_vm4, %v730_v4  ;;  %v830_v28 = vld [vmem:[#allocation2 + $0x72] sm:$0xff] }
 0x162   :  { %898 = vrot.lane.b32.xlu1 %v793_v13, %s3214_s21  ;;  %768 = vst.msk [vmem:[#allocation2 + $0x80] sm:$0xff] %vm751_vm4, %v735_v42  ;;  %v798_v6 = vld [vmem:[#allocation2 + $0x71] sm:$0xff] }
 0x163   :  { %1026 = vrot.lane.b32.xlu2 %v825_v35, %s3213_s2 }
 0x164   :  { %v659_v10 = vpop.f32.mrf.mxu0  ;;  %v674_v37 = vpop.f32.mrf.mxu1 }
 0x165   :  { %v3870_v46 = vadd.f32 %v3664_v54, %v659_v10  ;;  %v3873_v1 = vadd.f32 %v3664_v54, %v674_v37 }
 0x167   :  { %v731_v7 = vmax.f32 %v3870_v46, 0.0  ;;  %v736_v43 = vmax.f32 %v3873_v1, 0.0 }
 0x168   :  { %v794_v61 = vld [vmem:[#allocation2 + $0x51] sm:$0xff] }
 0x169   :  { %v826_v52 = vld [vmem:[#allocation2 + $0x52] sm:$0xff]  ;;  %764 = vst.msk [vmem:[#allocation2 + $0x60] sm:$0xff] %vm751_vm4, %v731_v7  ;;  %900 = vrot.lane.b32.xlu0 %v794_v61, %s3214_s21 }
 0x16a   :  { %1028 = vrot.lane.b32.xlu1 %v826_v52, %s3213_s2  ;;  %769 = vst.msk [vmem:[#allocation2 + $0x88] sm:$0xff] %vm751_vm4, %v736_v43  ;;  %v799_v61 = vld [vmem:[#allocation2 + $0x79] sm:$0xff] }
 0x16c   :  { %v677_v29 = vpop.f32.mrf.mxu1 }
 0x16d   :  { %v3895_v2 = vadd.f32 %v3664_v54, %v677_v29 }
 0x16f   :  { %v737_v8 = vmax.f32 %v3895_v2, 0.0 }
 0x170   :  { %v827_v62 = vld [vmem:[#allocation2 + $0x5a] sm:$0xff]  ;;  %v828_v22 = vld [vmem:[#allocation2 + $0x62] sm:$0xff] }
 0x171   :  { %v795_v3 = vld [vmem:[#allocation2 + $0x59] sm:$0xff]  ;;  %v796_v34 = vld [vmem:[#allocation2 + $0x61] sm:$0xff]  ;;  %1030 = vrot.lane.b32.xlu0 %v827_v62, %s3213_s2  ;;  %770 = vst.msk [vmem:[#allocation2 + $0x90] sm:$0xff] %vm751_vm4, %v737_v8 }
 0x172   :  { %902 = vrot.lane.b32.xlu2 %v795_v3, %s3214_s21  ;;  %904 = vrot.lane.b32.xlu1 %v796_v34, %s3214_s21  ;;  %v800_v34 = vld [vmem:[#allocation2 + $0x81] sm:$0xff] }
 0x174   :  { %v680_v14 = vpop.f32.mrf.mxu1  ;;  %v881_v35 = vpop.permute.xlu2 %880 }
 0x175   :  { %v3905_v17 = vadd.f32 %v3664_v54, %v680_v14  ;;  %v831_v14 = vld [vmem:[#allocation2 + $0x7a] sm:$0xff] }
 0x177   :  { %v738_v13 = vmax.f32 %v3905_v17, 0.0 }
 0x179   :  { %906 = vrot.lane.b32.xlu0 %v797_v21, %s3214_s21  ;;  %771 = vst.msk [vmem:[#allocation2 + $0x98] sm:$0xff] %vm751_vm4, %v738_v13 }
 0x17a   :  { %1032 = vrot.lane.b32.xlu2 %v828_v22, %s3213_s2  ;;  %1034 = vrot.lane.b32.xlu1 %v829_v31, %s3213_s2  ;;  %v832_v22 = vld [vmem:[#allocation2 + $0x82] sm:$0xff] }
 0x17c   :  { %v683_v5 = vpop.f32.mrf.mxu1  ;;  %v692_v37 = vpop.f32.mrf.mxu2 }
 0x17d   :  { %v3915_v10 = vadd.f32 %v3664_v54, %v683_v5  ;;  %v3918_v25 = vadd.f32 %v3664_v54, %v692_v37  ;;  %v3934_v3 = vpop.permute.xlu2 %395  ;;  %v1104_v37 = vsel %vm751_vm4, %v719_v55, %v881_v35 }
 0x17f   :  { %v739_v52 = vmax.f32 %v3915_v10, 0.0  ;;  %v5434_v53 = vmax.f32 %v3918_v25, 0.0 }
 0x181   :  { %1036 = vrot.lane.b32.xlu0 %v830_v28, %s3213_s2  ;;  %772 = vst.msk [vmem:[#allocation2 + $0xa0] sm:$0xff] %vm751_vm4, %v739_v52 }
 0x182   :  { %908 = vrot.lane.b32.xlu2 %v798_v6, %s3214_s21  ;;  %910 = vrot.lane.b32.xlu1 %v799_v61, %s3214_s21  ;;  %775 = vst.msk [vmem:[#allocation2 + $0xb8] sm:$0xff] %vm751_vm4, %v5434_v53 }
 0x184   :  { %v686_v29 = vpop.f32.mrf.mxu1  ;;  %v695_v62 = vpop.f32.mrf.mxu2 }
 0x185   :  { %v3932_v58 = vadd.f32 %v3664_v54, %v686_v29  ;;  %v3937_v21 = vadd.f32 %v3664_v54, %v695_v62  ;;  %v1013_v53 = vpop.permute.xlu2 %1012 }
 0x187   :  { %v740_v31 = vmax.f32 %v3932_v58, 0.0  ;;  %v5433_v5 = vmax.f32 %v3937_v21, 0.0 }
 0x189   :  { %912 = vrot.lane.b32.xlu0 %v800_v34, %s3214_s21  ;;  %773 = vst.msk [vmem:[#allocation2 + $0xa8] sm:$0xff] %vm751_vm4, %v740_v31  ;;  %v833_v34 = vld [vmem:[#allocation2 + $0x8a] sm:$0xff] }
 0x18a   :  { %1038 = vrot.lane.b32.xlu2 %v831_v14, %s3213_s2  ;;  %1040 = vrot.lane.b32.xlu1 %v832_v22, %s3213_s2  ;;  %776 = vst.msk [vmem:[#allocation2 + $0xc0] sm:$0xff] %vm751_vm4, %v5433_v5  ;;  %v801_v14 = vld [vmem:[#allocation2 + $0x89] sm:$0xff]  ;;  %v802_v5 = vld [vmem:[#allocation2 + $0x91] sm:$0xff] }
 0x18b   :  { %v1009_v28 = vpop.permute.xlu0 %1008 }
 0x18c   :  { %v1136_v6 = vsel %vm48_vm5, %v1104_v37, %v1009_v28  ;;  %v689_v61 = vpop.f32.mrf.mxu1  ;;  %v698_v62 = vpop.f32.mrf.mxu2 }
 0x18d   :  { %3068 = vmatmul.msk.f32.vlgmr.msrb.gmra.mxu1 %vm1184_vm6, %v1136_v6  ;;  %v3956_v29 = vadd.f32 %v3664_v54, %v689_v61  ;;  %v3959_v22 = vadd.f32 %v3664_v54, %v698_v62  ;;  %v803_v62 = vld [vmem:[#allocation2 + $0x99] sm:$0xff]  ;;  %v887_v19 = vpop.permute.xlu2 %886 }
 0x18e   :  { %v1107_v15 = vsel %vm751_vm4, %v722_v16, %v887_v19 }
 0x18f   :  { %v5435_v41 = vmax.f32 %v3956_v29, 0.0  ;;  %v5436_v55 = vmax.f32 %v3959_v22, 0.0 }
 0x191   :  { %1042 = vrot.lane.b32.xlu0 %v833_v34, %s3213_s2  ;;  %774 = vst.msk [vmem:[#allocation2 + $0xb0] sm:$0xff] %vm751_vm4, %v5435_v41  ;;  %v834_v34 = vld [vmem:[#allocation2 + $0x92] sm:$0xff] }
 0x192   :  { %914 = vrot.lane.b32.xlu2 %v801_v14, %s3214_s21  ;;  %916 = vrot.lane.b32.xlu1 %v802_v5, %s3214_s21  ;;  %777 = vst.msk [vmem:[#allocation2 + $0xc8] sm:$0xff] %vm751_vm4, %v5436_v55  ;;  %v835_v5 = vld [vmem:[#allocation2 + $0x9a] sm:$0xff] }
 0x193   :  { %v1011_v35 = vpop.permute.xlu1 %1010 }
 0x194   :  { %v883_v37 = vpop.permute.xlu0 %882  ;;  %v701_v61 = vpop.f32.mrf.mxu2 }
 0x195   :  { %v1105_v28 = vsel %vm751_vm4, %v720_v49, %v883_v37  ;;  %v3978_v14 = vadd.f32 %v3664_v54, %v701_v61  ;;  %v836_v61 = vld [vmem:[#allocation2 + $0xa2] sm:$0xff] }
 0x196   :  { %v1137_v6 = vsel %vm48_vm5, %v1105_v28, %v1011_v35 }
 0x197   :  { %3069 = vmatmul.msk.f32.gmra.mxu1 %vm1184_vm6, %v1137_v6  ;;  %v745_v41 = vmax.f32 %v3978_v14, 0.0 }
 0x198   :  { %v838_v59 = vld [vmem:[#allocation2 + $0xb2] sm:$0xff] }
 0x199   :  { %918 = vrot.lane.b32.xlu0 %v803_v62, %s3214_s21  ;;  %778 = vst.msk [vmem:[#allocation2 + $0xd0] sm:$0xff] %vm751_vm4, %v745_v41  ;;  %v804_v62 = vld [vmem:[#allocation2 + $0xa1] sm:$0xff] }
 0x19a   :  { %1044 = vrot.lane.b32.xlu2 %v834_v34, %s3213_s2  ;;  %1046 = vrot.lane.b32.xlu1 %v835_v5, %s3213_s2  ;;  %v805_v5 = vld [vmem:[#allocation2 + $0xa9] sm:$0xff] }
 0x19c   :  { %v885_v49 = vpop.permute.xlu1 %884  ;;  %v398_v35 = vpop.permute.xlu0 %397 }
 0x19d   :  { %v1106_v37 = vsel %vm751_vm4, %v721_v56, %v885_v49  ;;  %v704_v6 = vpop.f32.mrf.mxu2  ;;  %v270_v49 = vpop.permute.xlu2 %269 }
 0x19e   :  { %v1138_v28 = vsel %vm48_vm5, %v1106_v37, %v1013_v53  ;;  %v3993_v34 = vadd.f32 %v3664_v54, %v704_v6  ;;  %v464_v16 = vsel %vm82_vm0, %v3649_v32, %v270_v49  ;;  %v808_v32 = vld [vmem:[#allocation2 + $0xc1] sm:$0xff] }
 0x19f   :  { %3070 = vmatmul.msk.f32.gmra.mxu1 %vm1184_vm6, %v1138_v28 }
 0x1a0   :  { %v746_v55 = vmax.f32 %v3993_v34, 0.0 }
 0x1a1   :  { %1048 = vrot.lane.b32.xlu0 %v836_v61, %s3213_s2  ;;  %v806_v61 = vld [vmem:[#allocation2 + $0xb1] sm:$0xff] }
 0x1a2   :  { %920 = vrot.lane.b32.xlu2 %v804_v62, %s3214_s21  ;;  %922 = vrot.lane.b32.xlu1 %v805_v5, %s3214_s21  ;;  %779 = vst.msk [vmem:[#allocation2 + $0xd8] sm:$0xff] %vm751_vm4, %v746_v55  ;;  %v837_v62 = vld [vmem:[#allocation2 + $0xaa] sm:$0xff]  ;;  %v497_v5 = vsel %vm467_vm2, %v464_v16, %v398_v35 }
 0x1a4   :  { %v268_v56 = vpop.permute.xlu1 %267  ;;  %v1015_v53 = vpop.permute.xlu0 %1014 }
 0x1a5   :  { %v463_v37 = vsel %vm82_vm0, %v3561_v50, %v268_v56  ;;  %v1139_v28 = vsel %vm48_vm5, %v1107_v15, %v1015_v53  ;;  %v1019_v56 = vpop.permute.xlu2 %1018  ;;  %v839_v53 = vld [vmem:[#allocation2 + $0xba] sm:$0xff] }
 0x1a6   :  { %v496_v6 = vsel %vm467_vm2, %v463_v37, %v3934_v3  ;;  %v807_v37 = vld [vmem:[#allocation2 + $0xb9] sm:$0xff] }
 0x1a7   :  { %3064 = vmatmul.msk.f32.gmra.mxu2 %vm505_vm3, %v496_v6  ;;  %3071 = vmatmul.msk.f32.gmra.mxu1 %vm1184_vm6, %v1139_v28  ;;  %v809_v28 = vld [vmem:[#allocation2 + $0xc9] sm:$0xff] }
 0x1a8   :  { %v840_v6 = vld [vmem:[#allocation2 + $0xc2] sm:$0xff] }
 0x1a9   :  { %924 = vrot.lane.b32.xlu0 %v806_v61, %s3214_s21  ;;  %v841_v61 = vld [vmem:[#allocation2 + $0xca] sm:$0xff] }
 0x1aa   :  { %1050 = vrot.lane.b32.xlu2 %v837_v62, %s3213_s2  ;;  %1052 = vrot.lane.b32.xlu1 %v838_v59, %s3213_s2 }
 0x1ac   :  { %v1017_v50 = vpop.permute.xlu1 %1016  ;;  %v889_v19 = vpop.permute.xlu0 %888 }
 0x1ad   :  { %v1108_v3 = vsel %vm751_vm4, %v723_v20, %v889_v19  ;;  %v893_v62 = vpop.permute.xlu2 %892 }
 0x1ae   :  { %v1140_v15 = vsel %vm48_vm5, %v1108_v3, %v1017_v50  ;;  %v1110_v18 = vsel %vm751_vm4, %v725_v27, %v893_v62  ;;  %v810_v3 = vld [vmem:[#allocation2 + $0xd1] sm:$0xff] }
 0x1af   :  { %3065 = vmatmul.msk.f32.gmra.mxu2 %vm505_vm3, %v497_v5  ;;  %3072 = vmatmul.msk.f32.gmra.mxu1 %vm1184_vm6, %v1140_v15 }
 0x1b1   :  { %1054 = vrot.lane.b32.xlu0 %v839_v53, %s3213_s2 }
 0x1b2   :  { %926 = vrot.lane.b32.xlu2 %v807_v37, %s3214_s21  ;;  %928 = vrot.lane.b32.xlu1 %v808_v32, %s3214_s21 }
 0x1b4   :  { %v891_v9 = vpop.permute.xlu1 %890  ;;  %v272_v20 = vpop.permute.xlu0 %271 }
 0x1b5   :  { %v1109_v35 = vsel %vm751_vm4, %v724_v24, %v891_v9  ;;  %v465_v59 = vsel %vm82_vm0, %v3672_v40, %v272_v20  ;;  %v842_v40 = vld [vmem:[#allocation2 + $0xd2] sm:$0xff]  ;;  %v402_v26 = vpop.permute.xlu2 %401 }
 0x1b6   :  { %v1141_v49 = vsel %vm48_vm5, %v1109_v35, %v1019_v56 }
 0x1b7   :  { %3073 = vmatmul.msk.f32.gmra.mxu1 %vm1184_vm6, %v1141_v49 }
 0x1b9   :  { %930 = vrot.lane.b32.xlu0 %v809_v28, %s3214_s21 }
 0x1ba   :  { %1056 = vrot.lane.b32.xlu2 %v840_v6, %s3213_s2  ;;  %1058 = vrot.lane.b32.xlu1 %v841_v61, %s3213_s2 }
 0x1bc   :  { %v400_v24 = vpop.permute.xlu1 %399  ;;  %v1021_v16 = vpop.permute.xlu0 %1020 }
 0x1bd   :  { %v498_v50 = vsel %vm467_vm2, %v465_v59, %v400_v24  ;;  %v1142_v19 = vsel %vm48_vm5, %v1110_v18, %v1021_v16  ;;  %v897_v9 = vpop.permute.xlu2 %896 }
 0x1be   :  { %3066 = vmatmul.msk.f32.gmra.mxu2 %vm505_vm3, %v498_v50 }
 0x1bf   :  { %3074 = vmatmul.msk.f32.gmra.mxu1 %vm1184_vm6, %v1142_v19 }
 0x1c2   :  { %1060 = vrot.lane.b32.xlu2 %v842_v40, %s3213_s2  ;;  %932 = vrot.lane.b32.xlu1 %v810_v3, %s3214_s21 }
 0x1c4   :  { %v274_v5 = vpop.permute.xlu1 %273  ;;  %v895_v56 = vpop.permute.xlu0 %894 }
 0x1c5   :  { %v466_v27 = vsel %vm82_vm0, %v3719_v0, %v274_v5  ;;  %v1111_v53 = vsel %vm751_vm4, %v726_v36, %v895_v56  ;;  %v1112_v0 = vsel %vm751_vm4, %v727_v44, %v897_v9  ;;  %v1027_v36 = vpop.permute.xlu2 %1026 }
 0x1c6   :  { %v499_v15 = vsel %vm467_vm2, %v466_v27, %v402_v26 }
 0x1c7   :  { %3067 = vmatmul.msk.f32.gmra.mxu2 %vm505_vm3, %v499_v15 }
 0x1cc   :  { %v1023_v37 = vpop.permute.xlu1 %1022  ;;  %v1025_v20 = vpop.permute.xlu0 %1024 }
 0x1cd   :  { %v1143_v32 = vsel %vm48_vm5, %v1111_v53, %v1023_v37  ;;  %v1144_v35 = vsel %vm48_vm5, %v1112_v0, %v1025_v20  ;;  %v903_v62 = vpop.permute.xlu2 %902 }
 0x1ce   :  { %3075 = vmatmul.msk.f32.gmra.mxu1 %vm1184_vm6, %v1143_v32  ;;  %v1115_v11 = vsel %vm751_vm4, %v730_v4, %v903_v62 }
 0x1d4   :  { %v899_v49 = vpop.permute.xlu1 %898 }
 0x1d5   :  { %v1113_v51 = vsel %vm751_vm4, %v728_v48, %v899_v49 }
 0x1d6   :  { %3076 = vmatmul.msk.f32.gmra.mxu1 %vm1184_vm6, %v1144_v35  ;;  %v1145_v28 = vsel %vm48_vm5, %v1113_v51, %v1027_v36 }
 0x1db   :  { %v901_v6 = vpop.permute.xlu0 %900 }
 0x1dc   :  { %v1114_v39 = vsel %vm751_vm4, %v729_v33, %v901_v6  ;;  %v1029_v44 = vpop.permute.xlu1 %1028  ;;  %v1033_v33 = vpop.permute.xlu2 %1032 }
 0x1dd   :  { %v1146_v61 = vsel %vm48_vm5, %v1114_v39, %v1029_v44 }
 0x1de   :  { %3077 = vmatmul.msk.f32.gmra.mxu1 %vm1184_vm6, %v1145_v28 }
 0x1e3   :  { %v1031_v59 = vpop.permute.xlu0 %1030 }
 0x1e4   :  { %v1147_v48 = vsel %vm48_vm5, %v1115_v11, %v1031_v59  ;;  %v905_v18 = vpop.permute.xlu1 %904  ;;  %v909_v19 = vpop.permute.xlu2 %908 }
 0x1e5   :  { %v1116_v57 = vsel %vm751_vm4, %v731_v7, %v905_v18  ;;  %v1118_v46 = vsel %vm751_vm4, %v733_v30, %v909_v19 }
 0x1e6   :  { %3078 = vmatmul.msk.f32.gmra.mxu1 %vm1184_vm6, %v1146_v61  ;;  %v1148_v24 = vsel %vm48_vm5, %v1116_v57, %v1033_v33 }
 0x1eb   :  { %v907_v16 = vpop.permute.xlu0 %906 }
 0x1ec   :  { %v1117_v23 = vsel %vm751_vm4, %v732_v45, %v907_v16  ;;  %v1035_v4 = vpop.permute.xlu1 %1034  ;;  %v1039_v47 = vpop.permute.xlu2 %1038 }
 0x1ed   :  { %v1149_v50 = vsel %vm48_vm5, %v1117_v23, %v1035_v4 }
 0x1ee   :  { %3079 = vmatmul.msk.f32.gmra.mxu1 %vm1184_vm6, %v1147_v48 }
 0x1f3   :  { %v1037_v40 = vpop.permute.xlu0 %1036 }
 0x1f4   :  { %v1150_v7 = vsel %vm48_vm5, %v1118_v46, %v1037_v40  ;;  %v911_v3 = vpop.permute.xlu1 %910  ;;  %v915_v9 = vpop.permute.xlu2 %914 }
 0x1f5   :  { %v1119_v45 = vsel %vm751_vm4, %v734_v63, %v911_v3  ;;  %v1121_v38 = vsel %vm751_vm4, %v736_v43, %v915_v9 }
 0x1f6   :  { %3080 = vmatmul.msk.f32.gmra.mxu1 %vm1184_vm6, %v1148_v24  ;;  %v1151_v30 = vsel %vm48_vm5, %v1119_v45, %v1039_v47 }
 0x1fb   :  { %v913_v15 = vpop.permute.xlu0 %912 }
 0x1fc   :  { %v1120_v56 = vsel %vm751_vm4, %v735_v42, %v913_v15  ;;  %v1041_v53 = vpop.permute.xlu1 %1040  ;;  %v1045_v43 = vpop.permute.xlu2 %1044 }
 0x1fd   :  { %v1152_v37 = vsel %vm48_vm5, %v1120_v56, %v1041_v53 }
 0x1fe   :  { %3081 = vmatmul.msk.f32.gmra.mxu1 %vm1184_vm6, %v1149_v50 }
 0x203   :  { %v1043_v20 = vpop.permute.xlu0 %1042 }
 0x204   :  { %v1153_v35 = vsel %vm48_vm5, %v1121_v38, %v1043_v20  ;;  %v917_v51 = vpop.permute.xlu1 %916  ;;  %v921_v4 = vpop.permute.xlu2 %920 }
 0x205   :  { %v1122_v6 = vsel %vm751_vm4, %v737_v8, %v917_v51 }
 0x206   :  { %3082 = vmatmul.msk.f32.gmra.mxu1 %vm1184_vm6, %v1150_v7  ;;  %v1154_v44 = vsel %vm48_vm5, %v1122_v6, %v1045_v43  ;;  %v1124_v7 = vsel %vm751_vm4, %v739_v52, %v921_v4 }
 0x20a   :  { %v1298_v5 = vpop.f32.mrf.mxu1 }
 0x20b   :  { %v1299_v26 = vadd.f32 %v4093_v12, %v1298_v5  ;;  %v919_v62 = vpop.permute.xlu0 %918 }
 0x20c   :  { %v1123_v8 = vsel %vm751_vm4, %v738_v13, %v919_v62  ;;  %v1047_v48 = vpop.permute.xlu1 %1046  ;;  %v1051_v53 = vpop.permute.xlu2 %1050 }
 0x20d   :  { %v1394_v27 = vmax.f32 %v1299_v26, 0.0  ;;  %v1155_v16 = vsel %vm48_vm5, %v1123_v8, %v1047_v48  ;;  %v5438_v48 = vmax.f32 %v3918_v25, 0.0 }
 0x20e   :  { %3083 = vmatmul.msk.f32.gmra.mxu1 %vm1184_vm6, %v1151_v30 }
 0x20f   :  { %1426 = vst.msk [vmem:[#allocation2] sm:$0xff] %vm751_vm4, %v1394_v27 }
 0x213   :  { %v1049_v19 = vpop.permute.xlu0 %1048 }
 0x214   :  { %v1301_v60 = vpop.f32.mrf.mxu1  ;;  %v1156_v5 = vsel %vm48_vm5, %v1124_v7, %v1049_v19  ;;  %v923_v10 = vpop.permute.xlu1 %922 }
 0x215   :  { %v1302_v63 = vadd.f32 %v4093_v12, %v1301_v60  ;;  %v1125_v15 = vsel %vm751_vm4, %v740_v31, %v923_v10 }
 0x216   :  { %3084 = vmatmul.msk.f32.gmra.mxu1 %vm1184_vm6, %v1152_v37 }
 0x217   :  { %v1395_v32 = vmax.f32 %v1302_v63, 0.0  ;;  %v1157_v63 = vsel %vm48_vm5, %v1125_v15, %v1051_v53  ;;  %v5440_v53 = vmax.f32 %v3959_v22, 0.0 }
 0x219   :  { %1427 = vst.msk [vmem:[#allocation2 + $0x8] sm:$0xff] %vm751_vm4, %v1395_v32 }
 0x21b   :  { %v925_v31 = vpop.permute.xlu0 %924 }
 0x21c   :  { %v1304_v0 = vpop.f32.mrf.mxu1 }
 0x21d   :  { %v1305_v42 = vadd.f32 %v4093_v12, %v1304_v0 }
 0x21e   :  { %3085 = vmatmul.msk.f32.gmra.mxu1 %vm1184_vm6, %v1153_v35 }
 0x21f   :  { %v1396_v49 = vmax.f32 %v1305_v42, 0.0  ;;  %v1053_v42 = vpop.permute.xlu1 %1052 }
 0x220   :  { %v1458_v36 = vld [vmem:[#allocation2 + $0x1] sm:$0xff] }
 0x221   :  { %1428 = vst.msk [vmem:[#allocation2 + $0x10] sm:$0xff] %vm751_vm4, %v1396_v49  ;;  %v4116_v28 = vmax.f32 %v1394_v27, %v1458_v36 }
 0x223   :  { %1522 = vst.msk [vmem:[#allocation2] sm:$0xff] %vm751_vm4, %v4116_v28  ;;  %v1055_v62 = vpop.permute.xlu0 %1054 }
 0x224   :  { %v1307_v1 = vpop.f32.mrf.mxu1 }
 0x225   :  { %v1308_v39 = vadd.f32 %v4093_v12, %v1307_v1 }
 0x226   :  { %3086 = vmatmul.msk.f32.gmra.mxu1 %vm1184_vm6, %v1154_v44  ;;  %v927_v44 = vpop.permute.xlu2 %926 }
 0x227   :  { %v1397_v61 = vmax.f32 %v1308_v39, 0.0 }
 0x228   :  { %v1459_v59 = vld [vmem:[#allocation2 + $0x9] sm:$0xff] }
 0x229   :  { %1429 = vst.msk [vmem:[#allocation2 + $0x18] sm:$0xff] %vm751_vm4, %v1397_v61  ;;  %v4127_v11 = vmax.f32 %v1395_v32, %v1459_v59 }
 0x22a   :  { %v707_v2 = vpop.f32.mrf.mxu2 }
 0x22b   :  { %v4133_v18 = vadd.f32 %v3664_v54, %v707_v2  ;;  %1523 = vst.msk [vmem:[#allocation2 + $0x8] sm:$0xff] %vm751_vm4, %v4127_v11  ;;  %v929_v2 = vpop.permute.xlu1 %928 }
 0x22c   :  { %v1310_v57 = vpop.f32.mrf.mxu1 }
 0x22d   :  { %v747_v33 = vmax.f32 %v4133_v18, 0.0  ;;  %v1311_v24 = vadd.f32 %v4093_v12, %v1310_v57  ;;  %v1127_v57 = vsel %vm751_vm4, %v5438_v48, %v927_v44 }
 0x22e   :  { %3087 = vmatmul.msk.f32.gmra.mxu1 %vm1184_vm6, %v1155_v16 }
 0x22f   :  { %780 = vst.msk [vmem:[#allocation2 + $0xe0] sm:$0xff] %vm751_vm4, %v747_v33  ;;  %v1398_v17 = vmax.f32 %v1311_v24, 0.0 }
 0x230   :  { %v1460_v13 = vld [vmem:[#allocation2 + $0x11] sm:$0xff] }
 0x231   :  { %1430 = vst.msk [vmem:[#allocation2 + $0x20] sm:$0xff] %vm751_vm4, %v1398_v17  ;;  %v4145_v23 = vmax.f32 %v1396_v49, %v1460_v13  ;;  %v5437_v49 = vmax.f32 %v3956_v29, 0.0  ;;  %v1159_v13 = vsel %vm48_vm5, %v1127_v57, %v1055_v62 }
 0x232   :  { %v710_v50 = vpop.f32.mrf.mxu2  ;;  %v1586_v37 = vld [vmem:[#allocation2 + $0x4] sm:$0xff] }
 0x233   :  { %v4148_v40 = vadd.f32 %v3664_v54, %v710_v50  ;;  %1524 = vst.msk [vmem:[#allocation2 + $0x10] sm:$0xff] %vm751_vm4, %v4145_v23  ;;  %v1554_v58 = vld [vmem:[#allocation2 + $0x2] sm:$0xff]  ;;  %v1126_v51 = vsel %vm751_vm4, %v5437_v49, %v925_v31  ;;  %v5439_v50 = vmax.f32 %v3937_v21, 0.0  ;;  %v931_v21 = vpop.permute.xlu0 %930 }
 0x234   :  { %v1313_v46 = vpop.f32.mrf.mxu1  ;;  %v1158_v6 = vsel %vm48_vm5, %v1126_v51, %v1053_v42 }
 0x235   :  { %v748_v3 = vmax.f32 %v4148_v40, 0.0  ;;  %v1314_v45 = vadd.f32 %v4093_v12, %v1313_v46  ;;  %v1128_v19 = vsel %vm751_vm4, %v5439_v50, %v929_v2  ;;  %v1057_v46 = vpop.permute.xlu2 %1056 }
 0x236   :  { %v843_v26 = vld [vmem:[#allocation2 + $0xda] sm:$0xff]  ;;  %3088 = vmatmul.msk.f32.gmra.mxu1 %vm1184_vm6, %v1156_v5 }
 0x237   :  { %v811_v47 = vld [vmem:[#allocation2 + $0xd9] sm:$0xff]  ;;  %781 = vst.msk [vmem:[#allocation2 + $0xe8] sm:$0xff] %vm751_vm4, %v748_v3  ;;  %v1399_v27 = vmax.f32 %v1314_v45, 0.0  ;;  %1062 = vrot.lane.b32.xlu0 %v843_v26, %s3213_s2  ;;  %v1160_v26 = vsel %vm48_vm5, %v1128_v19, %v1057_v46 }
 0x238   :  { %934 = vrot.lane.b32.xlu2 %v811_v47, %s3214_s21  ;;  %v1461_v52 = vld [vmem:[#allocation2 + $0x19] sm:$0xff]  ;;  %v1059_v47 = vpop.permute.xlu1 %1058 }
 0x239   :  { %1431 = vst.msk [vmem:[#allocation2 + $0x28] sm:$0xff] %vm751_vm4, %v1399_v27  ;;  %v4165_v30 = vmax.f32 %v1397_v61, %v1461_v52 }
 0x23a   :  { %v1555_v1 = vld [vmem:[#allocation2 + $0xa] sm:$0xff] }
 0x23b   :  { %1525 = vst.msk [vmem:[#allocation2 + $0x18] sm:$0xff] %vm751_vm4, %v4165_v30  ;;  %v1587_v43 = vld [vmem:[#allocation2 + $0xc] sm:$0xff] }
 0x23c   :  { %v1316_v56 = vpop.f32.mrf.mxu1 }
 0x23d   :  { %v4173_v60 = vadd.f32 %v4093_v12, %v1316_v56  ;;  %v1061_v51 = vpop.permute.xlu2 %1060 }
 0x23e   :  { %v844_v32 = vld [vmem:[#allocation2 + $0xe2] sm:$0xff]  ;;  %3089 = vmatmul.msk.f32.gmra.mxu1 %vm1184_vm6, %v1157_v63  ;;  %v1129_v63 = vsel %vm751_vm4, %v5440_v53, %v931_v21  ;;  %v1948_v21 = vld [vmem:[%s5423_s5 + $0x50] sm:$0xff] }
 0x23f   :  { %v1400_v9 = vmax.f32 %v4173_v60, 0.0  ;;  %1778 = vrot.lane.b32.xlu0 %v1586_v37, %s3213_s2  ;;  %1064 = vrot.lane.b32.xlu1 %v844_v32, %s3213_s2  ;;  %v1161_v31 = vsel %vm48_vm5, %v1129_v63, %v1059_v47  ;;  %v1949_v47 = vld [vmem:[%s5423_s5 + $0x58] sm:$0xff] }
 0x240   :  { %1650 = vrot.lane.b32.xlu2 %v1554_v58, %s3214_s21  ;;  %v1462_v20 = vld [vmem:[#allocation2 + $0x21] sm:$0xff]  ;;  %v933_v60 = vpop.permute.xlu1 %932  ;;  %2054 = vmatpush.msrb.mxu2 %v1949_v47 }
 0x241   :  { %1432 = vst.msk [vmem:[#allocation2 + $0x30] sm:$0xff] %vm751_vm4, %v1400_v9  ;;  %v713_v0 = vpop.f32.mrf.mxu2  ;;  %v4184_v38 = vmax.f32 %v1398_v17, %v1462_v20  ;;  %v1130_v49 = vsel %vm751_vm4, %v745_v41, %v933_v60 }
 0x242   :  { %v4187_v35 = vadd.f32 %v3664_v54, %v713_v0  ;;  %v1556_v25 = vld [vmem:[#allocation2 + $0x12] sm:$0xff]  ;;  %2055 = vmatpush.msrb.mxu2 %v1948_v21 }
 0x243   :  { %1526 = vst.msk [vmem:[#allocation2 + $0x20] sm:$0xff] %vm751_vm4, %v4184_v38  ;;  %v1588_v5 = vld [vmem:[#allocation2 + $0x14] sm:$0xff] }
 0x244   :  { %v749_v36 = vmax.f32 %v4187_v35, 0.0 }
 0x246   :  { %782 = vst.msk [vmem:[#allocation2 + $0xf0] sm:$0xff] %vm751_vm4, %v749_v36  ;;  %3090 = vmatmul.msk.f32.gmra.mxu1 %vm1184_vm6, %v1158_v6 }
 0x247   :  { %1652 = vrot.lane.b32.xlu0 %v1555_v1, %s3214_s21  ;;  %1780 = vrot.lane.b32.xlu1 %v1587_v43, %s3213_s2 }
 0x248   :  { %v1463_v29 = vld [vmem:[#allocation2 + $0x29] sm:$0xff] }
 0x249   :  { %v4202_v39 = vmax.f32 %v1399_v27, %v1463_v29  ;;  %v1162_v29 = vsel %vm48_vm5, %v1130_v49, %v1061_v51 }
 0x24a   :  { %v716_v61 = vpop.f32.mrf.mxu2  ;;  %v1589_v27 = vld [vmem:[#allocation2 + $0x1c] sm:$0xff] }
 0x24b   :  { %v4205_v59 = vadd.f32 %v3664_v54, %v716_v61  ;;  %1527 = vst.msk [vmem:[#allocation2 + $0x28] sm:$0xff] %vm751_vm4, %v4202_v39  ;;  %v1319_v8 = vpop.f32.mrf.mxu1  ;;  %v812_v54 = vld [vmem:[#allocation2 + $0xe1] sm:$0xff] }
 0x24c   :  { %v1320_v16 = vadd.f32 %v4093_v12, %v1319_v8  ;;  %v1557_v58 = vld [vmem:[#allocation2 + $0x1a] sm:$0xff] }
 0x24d   :  { %v750_v24 = vmax.f32 %v4205_v59, 0.0  ;;  %v845_v17 = vld [vmem:[#allocation2 + $0xea] sm:$0xff] }
 0x24e   :  { %1066 = vrot.lane.b32.xlu2 %v845_v17, %s3213_s2  ;;  %v1401_v4 = vmax.f32 %v1320_v16, 0.0  ;;  %3091 = vmatmul.msk.f32.gmra.mxu1 %vm1184_vm6, %v1159_v13  ;;  %v813_v52 = vld [vmem:[#allocation2 + $0xe9] sm:$0xff] }
 0x24f   :  { %783 = vst.msk [vmem:[#allocation2 + $0xf8] sm:$0xff] %vm751_vm4, %v750_v24  ;;  %936 = vrot.lane.b32.xlu0 %v812_v54, %s3214_s21  ;;  %1654 = vrot.lane.b32.xlu1 %v1556_v25, %s3214_s21 }
 0x250   :  { %1433 = vst.msk [vmem:[#allocation2 + $0x38] sm:$0xff] %vm751_vm4, %v1401_v4 }
 0x252   :  { %v1558_v20 = vld [vmem:[#allocation2 + $0x22] sm:$0xff] }
 0x253   :  { %v1322_v7 = vpop.f32.mrf.mxu1  ;;  %v1590_v22 = vld [vmem:[#allocation2 + $0x24] sm:$0xff] }
 0x254   :  { %v1323_v45 = vadd.f32 %v4093_v12, %v1322_v7 }
 0x256   :  { %1782 = vrot.lane.b32.xlu2 %v1588_v5, %s3213_s2  ;;  %v1402_v10 = vmax.f32 %v1323_v45, 0.0  ;;  %3092 = vmatmul.msk.f32.gmra.mxu1 %vm1184_vm6, %v1160_v26  ;;  %v814_v43 = vld [vmem:[#allocation2 + $0xf1] sm:$0xff]  ;;  %v815_v57 = vld [vmem:[#allocation2 + $0xf9] sm:$0xff] }
 0x257   :  { %1784 = vrot.lane.b32.xlu0 %v1589_v27, %s3213_s2  ;;  %938 = vrot.lane.b32.xlu1 %v813_v52, %s3214_s21  ;;  %v1464_v15 = vld [vmem:[#allocation2 + $0x31] sm:$0xff]  ;;  %v847_v17 = vld [vmem:[#allocation2 + $0xfa] sm:$0xff] }
 0x258   :  { %1434 = vst.msk [vmem:[#allocation2 + $0x40] sm:$0xff] %vm751_vm4, %v1402_v10  ;;  %v4235_v56 = vmax.f32 %v1400_v9, %v1464_v15  ;;  %v846_v44 = vld [vmem:[#allocation2 + $0xf2] sm:$0xff] }
 0x25a   :  { %1528 = vst.msk [vmem:[#allocation2 + $0x30] sm:$0xff] %vm751_vm4, %v4235_v56 }
 0x25b   :  { %v1325_v37 = vpop.f32.mrf.mxu1 }
 0x25c   :  { %v1326_v32 = vadd.f32 %v4093_v12, %v1325_v37  ;;  %v1947_v37 = vld [vmem:[%s5423_s5 + $0x48] sm:$0xff] }
 0x25d   :  { %2056 = vmatpush.msrb.mxu2 %v1947_v37 }
 0x25e   :  { %1656 = vrot.lane.b32.xlu2 %v1557_v58, %s3214_s21  ;;  %v1403_v0 = vmax.f32 %v1326_v32, 0.0  ;;  %3093 = vmatmul.msk.f32.gmra.mxu1 %vm1184_vm6, %v1161_v31  ;;  %v1946_v58 = vld [vmem:[%s5423_s5 + $0x40] sm:$0xff] }
 0x25f   :  { %1658 = vrot.lane.b32.xlu0 %v1558_v20, %s3214_s21  ;;  %1786 = vrot.lane.b32.xlu1 %v1590_v22, %s3213_s2  ;;  %v1465_v9 = vld [vmem:[#allocation2 + $0x39] sm:$0xff] }
 0x260   :  { %1435 = vst.msk [vmem:[#allocation2 + $0x48] sm:$0xff] %vm751_vm4, %v1403_v0  ;;  %v4249_v42 = vmax.f32 %v1401_v4, %v1465_v9  ;;  %2057 = vmatpush.msrb.mxu2 %v1946_v58  ;;  %v1945_v20 = vld [vmem:[%s5423_s5 + $0x38] sm:$0xff]  ;;  %v1944_v9 = vld [vmem:[%s5423_s5 + $0x30] sm:$0xff] }
 0x261   :  { %v1559_v14 = vld [vmem:[#allocation2 + $0x2a] sm:$0xff] }
 0x262   :  { %1529 = vst.msk [vmem:[#allocation2 + $0x38] sm:$0xff] %vm751_vm4, %v4249_v42  ;;  %v1591_v48 = vld [vmem:[#allocation2 + $0x2c] sm:$0xff]  ;;  %2058 = vmatpush.msrb.mxu2 %v1945_v20 }
 0x263   :  { %v1328_v6 = vpop.f32.mrf.mxu1 }
 0x264   :  { %v1329_v1 = vadd.f32 %v4093_v12, %v1328_v6  ;;  %2059 = vmatpush.msrb.mxu2 %v1944_v9  ;;  %v1943_v6 = vld [vmem:[%s5423_s5 + $0x28] sm:$0xff] }
 0x266   :  { %940 = vrot.lane.b32.xlu2 %v814_v43, %s3214_s21  ;;  %v1404_v61 = vmax.f32 %v1329_v1, 0.0  ;;  %3094 = vmatmul.msk.f32.gmra.mxu1 %vm1184_vm6, %v1162_v29  ;;  %v1942_v29 = vld [vmem:[%s5423_s5 + $0x20] sm:$0xff] }
 0x267   :  { %1068 = vrot.lane.b32.xlu0 %v846_v44, %s3213_s2  ;;  %1660 = vrot.lane.b32.xlu1 %v1559_v14, %s3214_s21  ;;  %v1466_v41 = vld [vmem:[#allocation2 + $0x41] sm:$0xff] }
 0x268   :  { %1436 = vst.msk [vmem:[#allocation2 + $0x50] sm:$0xff] %vm751_vm4, %v1404_v61  ;;  %v4263_v62 = vmax.f32 %v1402_v10, %v1466_v41  ;;  %2060 = vmatpush.msrb.mxu2 %v1943_v6 }
 0x269   :  { %v1560_v50 = vld [vmem:[#allocation2 + $0x32] sm:$0xff] }
 0x26a   :  { %1530 = vst.msk [vmem:[#allocation2 + $0x40] sm:$0xff] %vm751_vm4, %v4263_v62  ;;  %v1592_v19 = vld [vmem:[#allocation2 + $0x34] sm:$0xff]  ;;  %2061 = vmatpush.msrb.mxu2 %v1942_v29 }
 0x26b   :  { %v1331_v2 = vpop.f32.mrf.mxu1 }
 0x26c   :  { %v1332_v8 = vadd.f32 %v4093_v12, %v1331_v2  ;;  %v1940_v2 = vld [vmem:[%s5423_s5 + $0x10] sm:$0xff] }
 0x26e   :  { %1788 = vrot.lane.b32.xlu2 %v1591_v48, %s3213_s2  ;;  %v1405_v16 = vmax.f32 %v1332_v8, 0.0 }
 0x26f   :  { %942 = vrot.lane.b32.xlu0 %v815_v57, %s3214_s21  ;;  %1070 = vrot.lane.b32.xlu1 %v847_v17, %s3213_s2  ;;  %v1467_v13 = vld [vmem:[#allocation2 + $0x49] sm:$0xff] }
 0x270   :  { %1437 = vst.msk [vmem:[#allocation2 + $0x58] sm:$0xff] %vm751_vm4, %v1405_v16  ;;  %v4272_v54 = vmax.f32 %v1403_v0, %v1467_v13  ;;  %v1939_v57 = vld [vmem:[%s5423_s5 + $0x8] sm:$0xff] }
 0x271   :  { %v1561_v7 = vld [vmem:[#allocation2 + $0x3a] sm:$0xff] }
 0x272   :  { %1531 = vst.msk [vmem:[#allocation2 + $0x48] sm:$0xff] %vm751_vm4, %v4272_v54  ;;  %v1593_v10 = vld [vmem:[#allocation2 + $0x3c] sm:$0xff] }
 0x273   :  { %v1334_v4 = vpop.f32.mrf.mxu1 }
 0x274   :  { %v1335_v25 = vadd.f32 %v4093_v12, %v1334_v4  ;;  %v1938_v4 = vld [vmem:[%s5423_s5] sm:$0xff] }
 0x276   :  { %1662 = vrot.lane.b32.xlu2 %v1560_v50, %s3214_s21  ;;  %v1406_v46 = vmax.f32 %v1335_v25, 0.0 }
 0x277   :  { %1790 = vrot.lane.b32.xlu0 %v1592_v19, %s3213_s2  ;;  %1664 = vrot.lane.b32.xlu1 %v1561_v7, %s3214_s21  ;;  %v1468_v45 = vld [vmem:[#allocation2 + $0x51] sm:$0xff] }
 0x278   :  { %1438 = vst.msk [vmem:[#allocation2 + $0x60] sm:$0xff] %vm751_vm4, %v1406_v46  ;;  %v4281_v5 = vmax.f32 %v1404_v61, %v1468_v45  ;;  %v1941_v61 = vld [vmem:[%s5423_s5 + $0x18] sm:$0xff] }
 0x279   :  { %v1562_v52 = vld [vmem:[#allocation2 + $0x42] sm:$0xff]  ;;  %2062 = vmatpush.msrb.mxu2 %v1941_v61 }
 0x27a   :  { %1532 = vst.msk [vmem:[#allocation2 + $0x50] sm:$0xff] %vm751_vm4, %v4281_v5  ;;  %v1594_v53 = vld [vmem:[#allocation2 + $0x44] sm:$0xff] }
 0x27b   :  { %v1337_v26 = vpop.f32.mrf.mxu1  ;;  %2063 = vmatpush.msrb.mxu2 %v1940_v2 }
 0x27c   :  { %v1338_v27 = vadd.f32 %v4093_v12, %v1337_v26 }
 0x27d   :  { %2064 = vmatpush.msrb.mxu2 %v1939_v57 }
 0x27e   :  { %1792 = vrot.lane.b32.xlu2 %v1593_v10, %s3213_s2  ;;  %v1407_v15 = vmax.f32 %v1338_v27, 0.0 }
 0x27f   :  { %1666 = vrot.lane.b32.xlu0 %v1562_v52, %s3214_s21  ;;  %1794 = vrot.lane.b32.xlu1 %v1594_v53, %s3213_s2  ;;  %v1469_v63 = vld [vmem:[#allocation2 + $0x59] sm:$0xff] }
 0x280   :  { %1439 = vst.msk [vmem:[#allocation2 + $0x68] sm:$0xff] %vm751_vm4, %v1407_v15  ;;  %v4299_v32 = vmax.f32 %v1405_v16, %v1469_v63  ;;  %2065 = vmatpush.msrb.mxu2 %v1938_v4 }
 0x281   :  { %v1563_v22 = vld [vmem:[#allocation2 + $0x4a] sm:$0xff] }
 0x282   :  { %1533 = vst.msk [vmem:[#allocation2 + $0x58] sm:$0xff] %vm751_vm4, %v4299_v32  ;;  %v1595_v60 = vld [vmem:[#allocation2 + $0x4c] sm:$0xff] }
 0x283   :  { %v1340_v31 = vpop.f32.mrf.mxu1 }
 0x284   :  { %v1341_v0 = vadd.f32 %v4093_v12, %v1340_v31 }
 0x286   :  { %1668 = vrot.lane.b32.xlu2 %v1563_v22, %s3214_s21  ;;  %v1408_v49 = vmax.f32 %v1341_v0, 0.0 }
 0x287   :  { %1796 = vrot.lane.b32.xlu0 %v1595_v60, %s3213_s2  ;;  %v1470_v51 = vld [vmem:[#allocation2 + $0x61] sm:$0xff] }
 0x288   :  { %1440 = vst.msk [vmem:[#allocation2 + $0x70] sm:$0xff] %vm751_vm4, %v1408_v49  ;;  %v4319_v1 = vmax.f32 %v1406_v46, %v1470_v51 }
 0x289   :  { %v1564_v43 = vld [vmem:[#allocation2 + $0x52] sm:$0xff] }
 0x28a   :  { %1670 = vrot.lane.b32.xlu1 %v1564_v43, %s3214_s21  ;;  %1534 = vst.msk [vmem:[#allocation2 + $0x60] sm:$0xff] %vm751_vm4, %v4319_v1  ;;  %v1596_v41 = vld [vmem:[#allocation2 + $0x54] sm:$0xff] }
 0x28b   :  { %v1343_v44 = vpop.f32.mrf.mxu1 }
 0x28c   :  { %v1344_v14 = vadd.f32 %v4093_v12, %v1343_v44 }
 0x28e   :  { %1798 = vrot.lane.b32.xlu2 %v1596_v41, %s3213_s2  ;;  %v1409_v8 = vmax.f32 %v1344_v14, 0.0 }
 0x28f   :  { %v1471_v48 = vld [vmem:[#allocation2 + $0x69] sm:$0xff] }
 0x290   :  { %1441 = vst.msk [vmem:[#allocation2 + $0x78] sm:$0xff] %vm751_vm4, %v1409_v8  ;;  %v4339_v16 = vmax.f32 %v1407_v15, %v1471_v48 }
 0x291   :  { %v1597_v17 = vld [vmem:[#allocation2 + $0x5c] sm:$0xff] }
 0x292   :  { %v1565_v13 = vld [vmem:[#allocation2 + $0x5a] sm:$0xff]  ;;  %1800 = vrot.lane.b32.xlu1 %v1597_v17, %s3213_s2  ;;  %1535 = vst.msk [vmem:[#allocation2 + $0x68] sm:$0xff] %vm751_vm4, %v4339_v16  ;;  %v935_v52 = vpop.permute.xlu2 %934 }
 0x293   :  { %1672 = vrot.lane.b32.xlu0 %v1565_v13, %s3214_s21  ;;  %v1346_v25 = vpop.f32.mrf.mxu1  ;;  %v1131_v0 = vsel %vm751_vm4, %v746_v55, %v935_v52 }
 0x294   :  { %v1347_v50 = vadd.f32 %v4093_v12, %v1346_v25 }
 0x296   :  { %v1410_v19 = vmax.f32 %v1347_v50, 0.0 }
 0x297   :  { %v1472_v46 = vld [vmem:[#allocation2 + $0x71] sm:$0xff] }
 0x298   :  { %1442 = vst.msk [vmem:[#allocation2 + $0x80] sm:$0xff] %vm751_vm4, %v1410_v19  ;;  %v4350_v7 = vmax.f32 %v1408_v49, %v1472_v46 }
 0x299   :  { %v1566_v45 = vld [vmem:[#allocation2 + $0x62] sm:$0xff] }
 0x29a   :  { %v1598_v26 = vld [vmem:[#allocation2 + $0x64] sm:$0xff]  ;;  %1674 = vrot.lane.b32.xlu2 %v1566_v45, %s3214_s21  ;;  %1536 = vst.msk [vmem:[#allocation2 + $0x70] sm:$0xff] %vm751_vm4, %v4350_v7  ;;  %v1651_v9 = vpop.permute.xlu2 %1650 }
 0x29b   :  { %1802 = vrot.lane.b32.xlu0 %v1598_v26, %s3213_s2  ;;  %v1349_v47 = vpop.f32.mrf.mxu1  ;;  %v1874_v44 = vsel %vm751_vm4, %v4116_v28, %v1651_v9 }
 0x29c   :  { %v1350_v27 = vadd.f32 %v4093_v12, %v1349_v47 }
 0x29e   :  { %v1411_v10 = vmax.f32 %v1350_v27, 0.0 }
 0x29f   :  { %v1473_v21 = vld [vmem:[#allocation2 + $0x79] sm:$0xff] }
 0x2a0   :  { %1443 = vst.msk [vmem:[#allocation2 + $0x88] sm:$0xff] %vm751_vm4, %v1411_v10  ;;  %v4358_v15 = vmax.f32 %v1409_v8, %v1473_v21 }
 0x2a1   :  { %v1599_v53 = vld [vmem:[#allocation2 + $0x6c] sm:$0xff] }
 0x2a2   :  { %v1567_v63 = vld [vmem:[#allocation2 + $0x6a] sm:$0xff]  ;;  %1804 = vrot.lane.b32.xlu2 %v1599_v53, %s3213_s2  ;;  %1537 = vst.msk [vmem:[#allocation2 + $0x78] sm:$0xff] %vm751_vm4, %v4358_v15 }
 0x2a3   :  { %1676 = vrot.lane.b32.xlu1 %v1567_v63, %s3214_s21  ;;  %v1352_v37 = vpop.f32.mrf.mxu1 }
 0x2a4   :  { %v1353_v58 = vadd.f32 %v4093_v12, %v1352_v37 }
 0x2a6   :  { %v1412_v31 = vmax.f32 %v1353_v58, 0.0 }
 0x2a7   :  { %v1474_v20 = vld [vmem:[#allocation2 + $0x81] sm:$0xff] }
 0x2a8   :  { %1444 = vst.msk [vmem:[#allocation2 + $0x90] sm:$0xff] %vm751_vm4, %v1412_v31  ;;  %v4369_v60 = vmax.f32 %v1410_v19, %v1474_v20  ;;  %v4383_v41 = vpop.permute.xlu2 %1066 }
 0x2a9   :  { %v1063_v22 = vpop.permute.xlu0 %1062  ;;  %v1600_v51 = vld [vmem:[#allocation2 + $0x74] sm:$0xff] }
 0x2aa   :  { %v1163_v49 = vsel %vm48_vm5, %v1131_v0, %v1063_v22  ;;  %v1568_v6 = vld [vmem:[#allocation2 + $0x72] sm:$0xff]  ;;  %1538 = vst.msk [vmem:[#allocation2 + $0x80] sm:$0xff] %vm751_vm4, %v4369_v60 }
 0x2ab   :  { %1806 = vrot.lane.b32.xlu1 %v1600_v51, %s3213_s2  ;;  %1678 = vrot.lane.b32.xlu0 %v1568_v6, %s3214_s21  ;;  %v1355_v34 = vpop.f32.mrf.mxu1 }
 0x2ac   :  { %3095 = vmatmul.msk.f32.gmra.mxu1 %vm1184_vm6, %v1163_v49  ;;  %v1356_v55 = vadd.f32 %v4093_v12, %v1355_v34 }
 0x2ae   :  { %v1413_v43 = vmax.f32 %v1356_v55, 0.0 }
 0x2af   :  { %v1475_v29 = vld [vmem:[#allocation2 + $0x89] sm:$0xff] }
 0x2b0   :  { %1445 = vst.msk [vmem:[#allocation2 + $0x98] sm:$0xff] %vm751_vm4, %v1413_v43  ;;  %v4381_v14 = vmax.f32 %v1411_v10, %v1475_v29  ;;  %v1783_v27 = vpop.permute.xlu2 %1782 }
 0x2b1   :  { %v1779_v61 = vpop.permute.xlu0 %1778  ;;  %v1065_v8 = vpop.permute.xlu1 %1064  ;;  %v1569_v48 = vld [vmem:[#allocation2 + $0x7a] sm:$0xff] }
 0x2b2   :  { %v1906_v2 = vsel %vm48_vm5, %v1874_v44, %v1779_v61  ;;  %v1601_v57 = vld [vmem:[#allocation2 + $0x7c] sm:$0xff]  ;;  %1680 = vrot.lane.b32.xlu2 %v1569_v48, %s3214_s21  ;;  %1539 = vst.msk [vmem:[#allocation2 + $0x88] sm:$0xff] %vm751_vm4, %v4381_v14 }
 0x2b3   :  { %1808 = vrot.lane.b32.xlu0 %v1601_v57, %s3213_s2  ;;  %v1358_v28 = vpop.f32.mrf.mxu1  ;;  %3100 = vmatmul.msk.f32.vlgmr.msrb.gmra.mxu2 %vm1184_vm6, %v1906_v2 }
 0x2b4   :  { %v1359_v17 = vadd.f32 %v4093_v12, %v1358_v28 }
 0x2b6   :  { %v1414_v13 = vmax.f32 %v1359_v17, 0.0 }
 0x2b7   :  { %v1476_v4 = vld [vmem:[#allocation2 + $0x91] sm:$0xff] }
 0x2b8   :  { %1446 = vst.msk [vmem:[#allocation2 + $0xa0] sm:$0xff] %vm751_vm4, %v1414_v13  ;;  %v4393_v50 = vmax.f32 %v1412_v31, %v1476_v4  ;;  %v1657_v49 = vpop.permute.xlu2 %1656 }
 0x2b9   :  { %v1653_v25 = vpop.permute.xlu0 %1652  ;;  %v1781_v46 = vpop.permute.xlu1 %1780  ;;  %v1602_v45 = vld [vmem:[#allocation2 + $0x84] sm:$0xff]  ;;  %v1877_v6 = vsel %vm751_vm4, %v4165_v30, %v1657_v49 }
 0x2ba   :  { %v1875_v19 = vsel %vm751_vm4, %v4127_v11, %v1653_v25  ;;  %v1570_v26 = vld [vmem:[#allocation2 + $0x82] sm:$0xff]  ;;  %1810 = vrot.lane.b32.xlu2 %v1602_v45, %s3213_s2  ;;  %1540 = vst.msk [vmem:[#allocation2 + $0x90] sm:$0xff] %vm751_vm4, %v4393_v50 }
 0x2bb   :  { %1682 = vrot.lane.b32.xlu1 %v1570_v26, %s3214_s21  ;;  %v1907_v47 = vsel %vm48_vm5, %v1875_v19, %v1781_v46  ;;  %v1361_v10 = vpop.f32.mrf.mxu1 }
 0x2bc   :  { %3101 = vmatmul.msk.f32.gmra.mxu2 %vm1184_vm6, %v1907_v47  ;;  %v1362_v52 = vadd.f32 %v4093_v12, %v1361_v10 }
 0x2be   :  { %v1415_v21 = vmax.f32 %v1362_v52, 0.0 }
 0x2bf   :  { %v1477_v11 = vld [vmem:[#allocation2 + $0x99] sm:$0xff] }
 0x2c0   :  { %1447 = vst.msk [vmem:[#allocation2 + $0xa8] sm:$0xff] %vm751_vm4, %v1415_v21  ;;  %v4405_v63 = vmax.f32 %v1413_v43, %v1477_v11 }
 0x2c1   :  { %v937_v53 = vpop.permute.xlu0 %936  ;;  %v1655_v58 = vpop.permute.xlu1 %1654  ;;  %v1603_v31 = vld [vmem:[#allocation2 + $0x8c] sm:$0xff] }
 0x2c2   :  { %v1132_v37 = vsel %vm751_vm4, %v747_v33, %v937_v53  ;;  %v1571_v20 = vld [vmem:[#allocation2 + $0x8a] sm:$0xff]  ;;  %v1876_v0 = vsel %vm751_vm4, %v4145_v23, %v1655_v58  ;;  %1541 = vst.msk [vmem:[#allocation2 + $0x98] sm:$0xff] %vm751_vm4, %v4405_v63 }
 0x2c3   :  { %1812 = vrot.lane.b32.xlu1 %v1603_v31, %s3213_s2  ;;  %1684 = vrot.lane.b32.xlu0 %v1571_v20, %s3214_s21  ;;  %v1164_v22 = vsel %vm48_vm5, %v1132_v37, %v1065_v8  ;;  %v1364_v9 = vpop.f32.mrf.mxu1  ;;  %v1908_v18 = vsel %vm48_vm5, %v1876_v0, %v1783_v27 }
 0x2c4   :  { %3096 = vmatmul.msk.f32.gmra.mxu1 %vm1184_vm6, %v1164_v22  ;;  %v1365_v33 = vadd.f32 %v4093_v12, %v1364_v9  ;;  %3102 = vmatmul.msk.f32.gmra.mxu2 %vm1184_vm6, %v1908_v18 }
 0x2c6   :  { %v1416_v23 = vmax.f32 %v1365_v33, 0.0 }
 0x2c7   :  { %v1478_v51 = vld [vmem:[#allocation2 + $0xa1] sm:$0xff] }
 0x2c8   :  { %1448 = vst.msk [vmem:[#allocation2 + $0xb0] sm:$0xff] %vm751_vm4, %v1416_v23  ;;  %v4424_v55 = vmax.f32 %v1414_v13, %v1478_v51 }
 0x2c9   :  { %v1785_v34 = vpop.permute.xlu0 %1784  ;;  %v939_v43 = vpop.permute.xlu1 %938  ;;  %v1572_v29 = vld [vmem:[#allocation2 + $0x92] sm:$0xff] }
 0x2ca   :  { %v1604_v44 = vld [vmem:[#allocation2 + $0x94] sm:$0xff]  ;;  %v1909_v61 = vsel %vm48_vm5, %v1877_v6, %v1785_v34  ;;  %v1133_v2 = vsel %vm751_vm4, %v748_v3, %v939_v43  ;;  %1686 = vrot.lane.b32.xlu2 %v1572_v29, %s3214_s21  ;;  %1542 = vst.msk [vmem:[#allocation2 + $0xa0] sm:$0xff] %vm751_vm4, %v4424_v55  ;;  %v941_v3 = vpop.permute.xlu2 %940 }
 0x2cb   :  { %1814 = vrot.lane.b32.xlu0 %v1604_v44, %s3213_s2  ;;  %v1367_v30 = vpop.f32.mrf.mxu1  ;;  %v1165_v8 = vsel %vm48_vm5, %v1133_v2, %v4383_v41 }
 0x2cc   :  { %v1368_v48 = vadd.f32 %v4093_v12, %v1367_v30  ;;  %3097 = vmatmul.msk.f32.gmra.mxu1 %vm1184_vm6, %v1165_v8  ;;  %3103 = vmatmul.msk.f32.gmra.mxu2 %vm1184_vm6, %v1909_v61 }
 0x2ce   :  { %v1417_v40 = vmax.f32 %v1368_v48, 0.0 }
 0x2cf   :  { %v1479_v57 = vld [vmem:[#allocation2 + $0xa9] sm:$0xff] }
 0x2d0   :  { %1449 = vst.msk [vmem:[#allocation2 + $0xb8] sm:$0xff] %vm751_vm4, %v1417_v40  ;;  %v4440_v17 = vmax.f32 %v1415_v21, %v1479_v57 }
 0x2d1   :  { %v1659_v28 = vpop.permute.xlu0 %1658  ;;  %v1787_v4 = vpop.permute.xlu1 %1786  ;;  %v1605_v25 = vld [vmem:[#allocation2 + $0x9c] sm:$0xff] }
 0x2d2   :  { %v1878_v13 = vsel %vm751_vm4, %v4184_v38, %v1659_v28  ;;  %v1573_v41 = vld [vmem:[#allocation2 + $0x9a] sm:$0xff]  ;;  %1816 = vrot.lane.b32.xlu2 %v1605_v25, %s3213_s2  ;;  %1543 = vst.msk [vmem:[#allocation2 + $0xa8] sm:$0xff] %vm751_vm4, %v4440_v17  ;;  %v1134_v38 = vsel %vm751_vm4, %v749_v36, %v941_v3  ;;  %v1789_v37 = vpop.permute.xlu2 %1788 }
 0x2d3   :  { %1688 = vrot.lane.b32.xlu1 %v1573_v41, %s3214_s21  ;;  %v1910_v19 = vsel %vm48_vm5, %v1878_v13, %v1787_v4  ;;  %v1370_v46 = vpop.f32.mrf.mxu1 }
 0x2d4   :  { %v1371_v45 = vadd.f32 %v4093_v12, %v1370_v46  ;;  %3104 = vmatmul.msk.f32.gmra.mxu2 %vm1184_vm6, %v1910_v19 }
 0x2d6   :  { %v1418_v26 = vmax.f32 %v1371_v45, 0.0 }
 0x2d7   :  { %v1480_v47 = vld [vmem:[#allocation2 + $0xb1] sm:$0xff] }
 0x2d8   :  { %1450 = vst.msk [vmem:[#allocation2 + $0xc0] sm:$0xff] %vm751_vm4, %v1418_v26  ;;  %v4455_v10 = vmax.f32 %v1416_v23, %v1480_v47 }
 0x2d9   :  { %v1069_v27 = vpop.permute.xlu0 %1068  ;;  %v1661_v21 = vpop.permute.xlu1 %1660  ;;  %v1606_v11 = vld [vmem:[#allocation2 + $0xa4] sm:$0xff] }
 0x2da   :  { %v1166_v52 = vsel %vm48_vm5, %v1134_v38, %v1069_v27  ;;  %v1574_v53 = vld [vmem:[#allocation2 + $0xa2] sm:$0xff]  ;;  %v1879_v58 = vsel %vm751_vm4, %v4202_v39, %v1661_v21  ;;  %1544 = vst.msk [vmem:[#allocation2 + $0xb0] sm:$0xff] %vm751_vm4, %v4455_v10  ;;  %v1663_v59 = vpop.permute.xlu2 %1662 }
 0x2db   :  { %1818 = vrot.lane.b32.xlu1 %v1606_v11, %s3213_s2  ;;  %1690 = vrot.lane.b32.xlu0 %v1574_v53, %s3214_s21  ;;  %v1373_v35 = vpop.f32.mrf.mxu1  ;;  %v1911_v36 = vsel %vm48_vm5, %v1879_v58, %v1789_v37  ;;  %v1880_v43 = vsel %vm751_vm4, %v4235_v56, %v1663_v59  ;;  %v2468_v59 = vld [vmem:[%s5425_s7 + $0x88] sm:$0xff] }
 0x2dc   :  { %3098 = vmatmul.msk.f32.gmra.mxu1 %vm1184_vm6, %v1166_v52  ;;  %v1374_v31 = vadd.f32 %v4093_v12, %v1373_v35  ;;  %3105 = vmatmul.msk.f32.gmra.mxu2 %vm1184_vm6, %v1911_v36 }
 0x2de   :  { %v1419_v20 = vmax.f32 %v1374_v31, 0.0  ;;  %v2474_v31 = vld [vmem:[%s5425_s7 + $0xb8] sm:$0xff] }
 0x2df   :  { %v1481_v0 = vld [vmem:[#allocation2 + $0xb9] sm:$0xff]  ;;  %2696 = vmatpush.msrb.mxu0 %v2474_v31 }
 0x2e0   :  { %1451 = vst.msk [vmem:[#allocation2 + $0xc8] sm:$0xff] %vm751_vm4, %v1419_v20  ;;  %v4469_v22 = vmax.f32 %v1417_v40, %v1481_v0 }
 0x2e1   :  { %v943_v39 = vpop.permute.xlu0 %942  ;;  %v1071_v18 = vpop.permute.xlu1 %1070  ;;  %v1575_v33 = vld [vmem:[#allocation2 + $0xaa] sm:$0xff] }
 0x2e2   :  { %v1135_v9 = vsel %vm751_vm4, %v750_v24, %v943_v39  ;;  %v1607_v49 = vld [vmem:[#allocation2 + $0xac] sm:$0xff]  ;;  %1692 = vrot.lane.b32.xlu2 %v1575_v33, %s3214_s21  ;;  %1545 = vst.msk [vmem:[#allocation2 + $0xb8] sm:$0xff] %vm751_vm4, %v4469_v22  ;;  %v1793_v40 = vpop.permute.xlu2 %1792 }
 0x2e3   :  { %v1167_v23 = vsel %vm48_vm5, %v1135_v9, %v1071_v18  ;;  %1820 = vrot.lane.b32.xlu0 %v1607_v49, %s3213_s2  ;;  %v1376_v51 = vpop.f32.mrf.mxu1  ;;  %v2471_v9 = vld [vmem:[%s5425_s7 + $0xa0] sm:$0xff]  ;;  %v2469_v33 = vld [vmem:[%s5425_s7 + $0x90] sm:$0xff] }
 0x2e4   :  { %3099 = vmatmul.msk.f32.gmra.mxu1 %vm1184_vm6, %v1167_v23  ;;  %v4481_v6 = vadd.f32 %v4093_v12, %v1376_v51 }
 0x2e6   :  { %v1420_v24 = vmax.f32 %v4481_v6, 0.0 }
 0x2e7   :  { %v1482_v34 = vld [vmem:[#allocation2 + $0xc1] sm:$0xff] }
 0x2e8   :  { %1452 = vst.msk [vmem:[#allocation2 + $0xd0] sm:$0xff] %vm751_vm4, %v1420_v24  ;;  %v4489_v44 = vmax.f32 %v1418_v26, %v1482_v34  ;;  %v4559_v34 = vld [vmem:[%s5422_s4] ss:$0 sm:$0xff] }
 0x2e9   :  { %v1791_v29 = vpop.permute.xlu0 %1790  ;;  %v1608_v61 = vld [vmem:[#allocation2 + $0xb4] sm:$0xff]  ;;  %v1665_v12 = vpop.permute.xlu1 %1664 }
 0x2ea   :  { %v1576_v2 = vld [vmem:[#allocation2 + $0xb2] sm:$0xff]  ;;  %v1912_v30 = vsel %vm48_vm5, %v1880_v43, %v1791_v29  ;;  %1822 = vrot.lane.b32.xlu2 %v1608_v61, %s3213_s2  ;;  %1546 = vst.msk [vmem:[#allocation2 + $0xc0] sm:$0xff] %vm751_vm4, %v4489_v44  ;;  %v1881_v56 = vsel %vm751_vm4, %v4249_v42, %v1665_v12  ;;  %v1669_v46 = vpop.permute.xlu2 %1668 }
 0x2eb   :  { %1694 = vrot.lane.b32.xlu1 %v1576_v2, %s3214_s21  ;;  %3106 = vmatmul.msk.f32.gmra.mxu2 %vm1184_vm6, %v1912_v30  ;;  %v1913_v28 = vsel %vm48_vm5, %v1881_v56, %v1793_v40  ;;  %v1883_v26 = vsel %vm751_vm4, %v4272_v54, %v1669_v46 }
 0x2ef   :  { %v1483_v8 = vld [vmem:[#allocation2 + $0xc9] sm:$0xff] }
 0x2f0   :  { %v4499_v48 = vmax.f32 %v1419_v20, %v1483_v8  ;;  %v4575_v8 = vld [vmem:[%s5424_s6] ss:$0 sm:$0xff] }
 0x2f1   :  { %v1609_v57 = vld [vmem:[#allocation2 + $0xbc] sm:$0xff]  ;;  %v1667_v13 = vpop.permute.xlu0 %1666  ;;  %v1795_v4 = vpop.permute.xlu1 %1794 }
 0x2f2   :  { %v1577_v3 = vld [vmem:[#allocation2 + $0xba] sm:$0xff]  ;;  %1547 = vst.msk [vmem:[#allocation2 + $0xc8] sm:$0xff] %vm751_vm4, %v4499_v48  ;;  %v1882_v42 = vsel %vm751_vm4, %v4263_v62, %v1667_v13  ;;  %v1799_v27 = vpop.permute.xlu2 %1798 }
 0x2f3   :  { %1824 = vrot.lane.b32.xlu1 %v1609_v57, %s3213_s2  ;;  %1696 = vrot.lane.b32.xlu0 %v1577_v3, %s3214_s21  ;;  %v1914_v19 = vsel %vm48_vm5, %v1882_v42, %v1795_v4 }
 0x2f4   :  { %3107 = vmatmul.msk.f32.gmra.mxu2 %vm1184_vm6, %v1913_v28 }
 0x2f9   :  { %v1610_v25 = vld [vmem:[#allocation2 + $0xc4] sm:$0xff]  ;;  %v1797_v45 = vpop.permute.xlu0 %1796 }
 0x2fa   :  { %v1578_v41 = vld [vmem:[#allocation2 + $0xc2] sm:$0xff]  ;;  %v1915_v47 = vsel %vm48_vm5, %v1883_v26, %v1797_v45  ;;  %v1675_v37 = vpop.permute.xlu2 %1674 }
 0x2fb   :  { %1826 = vrot.lane.b32.xlu0 %v1610_v25, %s3213_s2  ;;  %1698 = vrot.lane.b32.xlu2 %v1578_v41, %s3214_s21  ;;  %v1886_v35 = vsel %vm751_vm4, %v4319_v1, %v1675_v37  ;;  %v2472_v1 = vld [vmem:[%s5425_s7 + $0xa8] sm:$0xff] }
 0x2fc   :  { %3108 = vmatmul.msk.f32.gmra.mxu2 %vm1184_vm6, %v1914_v19  ;;  %v1671_v62 = vpop.permute.xlu1 %1670 }
 0x2fd   :  { %v1884_v38 = vsel %vm751_vm4, %v4281_v5, %v1671_v62 }
 0x2fe   :  { %v1916_v52 = vsel %vm48_vm5, %v1884_v38, %v1799_v27 }
 0x302   :  { %v1805_v0 = vpop.permute.xlu2 %1804 }
 0x304   :  { %3109 = vmatmul.msk.f32.gmra.mxu2 %vm1184_vm6, %v1915_v47  ;;  %v1801_v53 = vpop.permute.xlu1 %1800 }
 0x305   :  { %v1673_v21 = vpop.permute.xlu0 %1672 }
 0x306   :  { %v1885_v11 = vsel %vm751_vm4, %v4299_v32, %v1673_v21  ;;  %v2473_v32 = vld [vmem:[%s5425_s7 + $0xb0] sm:$0xff] }
 0x307   :  { %v1917_v54 = vsel %vm48_vm5, %v1885_v11, %v1801_v53  ;;  %2697 = vmatpush.msrb.mxu0 %v2473_v32 }
 0x309   :  { %2698 = vmatpush.msrb.mxu0 %v2472_v1 }
 0x30b   :  { %2699 = vmatpush.msrb.mxu0 %v2471_v9 }
 0x30c   :  { %3110 = vmatmul.msk.f32.gmra.mxu2 %vm1184_vm6, %v1916_v52  ;;  %v1681_v2 = vpop.permute.xlu2 %1680 }
 0x30d   :  { %v1803_v58 = vpop.permute.xlu0 %1802  ;;  %v1889_v12 = vsel %vm751_vm4, %v4358_v15, %v1681_v2 }
 0x30e   :  { %v1918_v5 = vsel %vm48_vm5, %v1886_v35, %v1803_v58 }
 0x314   :  { %3111 = vmatmul.msk.f32.gmra.mxu2 %vm1184_vm6, %v1917_v54  ;;  %v1811_v42 = vpop.permute.xlu2 %1810 }
 0x315   :  { %v1677_v36 = vpop.permute.xlu1 %1676 }
 0x316   :  { %v1887_v20 = vsel %vm751_vm4, %v4339_v16, %v1677_v36  ;;  %v2470_v16 = vld [vmem:[%s5425_s7 + $0x98] sm:$0xff] }
 0x317   :  { %v1919_v39 = vsel %vm48_vm5, %v1887_v20, %v1805_v0  ;;  %2700 = vmatpush.msrb.mxu0 %v2470_v16 }
 0x319   :  { %2701 = vmatpush.msrb.mxu0 %v2469_v33 }
 0x31b   :  { %2702 = vmatpush.msrb.mxu0 %v2468_v59 }
 0x31c   :  { %3112 = vmatmul.msk.f32.gmra.mxu2 %vm1184_vm6, %v1918_v5 }
 0x31d   :  { %v1679_v18 = vpop.permute.xlu0 %1678  ;;  %v1807_v23 = vpop.permute.xlu1 %1806 }
 0x31e   :  { %v1888_v49 = vsel %vm751_vm4, %v4350_v7, %v1679_v18  ;;  %v2467_v7 = vld [vmem:[%s5425_s7 + $0x80] sm:$0xff] }
 0x31f   :  { %v1920_v29 = vsel %vm48_vm5, %v1888_v49, %v1807_v23  ;;  %2703 = vmatpush.msrb.mxu0 %v2467_v7 }
 0x324   :  { %3113 = vmatmul.msk.f32.gmra.mxu2 %vm1184_vm6, %v1919_v39  ;;  %v1687_v27 = vpop.permute.xlu2 %1686 }
 0x325   :  { %v1809_v30 = vpop.permute.xlu0 %1808  ;;  %v1892_v53 = vsel %vm751_vm4, %v4393_v50, %v1687_v27 }
 0x326   :  { %v1921_v56 = vsel %vm48_vm5, %v1889_v12, %v1809_v30 }
 0x329   :  { %v1379_v51 = vpop.f32.mrf.mxu1 }
 0x32a   :  { %v1380_v43 = vadd.f32 %v4559_v34, %v1379_v51 }
 0x32c   :  { %v1421_v61 = vmax.f32 %v1380_v43, 0.0  ;;  %3114 = vmatmul.msk.f32.gmra.mxu2 %vm1184_vm6, %v1920_v29  ;;  %v1817_v39 = vpop.permute.xlu2 %1816 }
 0x32d   :  { %v1683_v40 = vpop.permute.xlu1 %1682 }
 0x32e   :  { %1453 = vst.msk [vmem:[#allocation2 + $0xd8] sm:$0xff] %vm751_vm4, %v1421_v61  ;;  %v1890_v13 = vsel %vm751_vm4, %v4369_v60, %v1683_v40 }
 0x32f   :  { %v1922_v25 = vsel %vm48_vm5, %v1890_v13, %v1811_v42 }
 0x334   :  { %3115 = vmatmul.msk.f32.gmra.mxu2 %vm1184_vm6, %v1921_v56 }
 0x335   :  { %v1484_v57 = vld [vmem:[#allocation2 + $0xd1] sm:$0xff]  ;;  %v1685_v6 = vpop.permute.xlu0 %1684  ;;  %v1813_v46 = vpop.permute.xlu1 %1812 }
 0x336   :  { %v4579_v3 = vmax.f32 %v1420_v24, %v1484_v57  ;;  %v2067_v28 = vpop.f32.mrf.mxu2  ;;  %v1891_v19 = vsel %vm751_vm4, %v4381_v14, %v1685_v6 }
 0x337   :  { %v4584_v15 = vadd.f32 %v4575_v8, %v2067_v28  ;;  %v1923_v38 = vsel %vm48_vm5, %v1891_v19, %v1813_v46 }
 0x338   :  { %1548 = vst.msk [vmem:[#allocation2 + $0xd0] sm:$0xff] %vm751_vm4, %v4579_v3 }
 0x339   :  { %v2163_v4 = vmax.f32 %v4584_v15, 0.0 }
 0x33b   :  { %2195 = vst.msk [vmem:[#allocation2] sm:$0xff] %vm48_vm5, %v2163_v4 }
 0x33c   :  { %3116 = vmatmul.msk.f32.gmra.mxu2 %vm1184_vm6, %v1922_v25  ;;  %v1693_v42 = vpop.permute.xlu2 %1692 }
 0x33d   :  { %v1815_v52 = vpop.permute.xlu0 %1814  ;;  %v1895_v19 = vsel %vm751_vm4, %v4440_v17, %v1693_v42 }
 0x33e   :  { %v1924_v37 = vsel %vm48_vm5, %v1892_v53, %v1815_v52 }
 0x33f   :  { %v1611_v24 = vld [vmem:[#allocation2 + $0xcc] sm:$0xff]  ;;  %v2070_v41 = vpop.f32.mrf.mxu2 }
 0x340   :  { %v1579_v60 = vld [vmem:[#allocation2 + $0xca] sm:$0xff]  ;;  %1828 = vrot.lane.b32.xlu0 %v1611_v24, %s3213_s2  ;;  %v4599_v45 = vadd.f32 %v4575_v8, %v2070_v41 }
 0x341   :  { %1700 = vrot.lane.b32.xlu2 %v1579_v60, %s3214_s21  ;;  %v1382_v26 = vpop.f32.mrf.mxu1 }
 0x342   :  { %v2164_v47 = vmax.f32 %v4599_v45, 0.0  ;;  %v1383_v62 = vadd.f32 %v4559_v34, %v1382_v26 }
 0x344   :  { %2196 = vst.msk [vmem:[#allocation2 + $0x8] sm:$0xff] %vm48_vm5, %v2164_v47  ;;  %v1422_v14 = vmax.f32 %v1383_v62, 0.0  ;;  %3117 = vmatmul.msk.f32.gmra.mxu2 %vm1184_vm6, %v1923_v38 }
 0x345   :  { %v1689_v36 = vpop.permute.xlu1 %1688 }
 0x346   :  { %1454 = vst.msk [vmem:[#allocation2 + $0xe0] sm:$0xff] %vm751_vm4, %v1422_v14  ;;  %v1893_v20 = vsel %vm751_vm4, %v4405_v63, %v1689_v36 }
 0x347   :  { %v2073_v21 = vpop.f32.mrf.mxu2  ;;  %v1925_v18 = vsel %vm48_vm5, %v1893_v20, %v1817_v39 }
 0x348   :  { %v4610_v11 = vadd.f32 %v4575_v8, %v2073_v21 }
 0x349   :  { %v1385_v54 = vpop.f32.mrf.mxu1 }
 0x34a   :  { %v2165_v58 = vmax.f32 %v4610_v11, 0.0  ;;  %v4617_v35 = vadd.f32 %v4559_v34, %v1385_v54  ;;  %v1823_v54 = vpop.permute.xlu2 %1822 }
 0x34b   :  { %v2259_v5 = vld [vmem:[#allocation2 + $0x4] sm:$0xff] }
 0x34c   :  { %3118 = vmatmul.msk.f32.gmra.mxu2 %vm1184_vm6, %v1924_v37  ;;  %3132 = vmatmul.msk.f32.vlgmr.msrb.gmra.mxu0 %vm48_vm5, %v2259_v5  ;;  %2197 = vst.msk [vmem:[#allocation2 + $0x10] sm:$0xff] %vm48_vm5, %v2165_v58  ;;  %v1423_v50 = vmax.f32 %v4617_v35, 0.0  ;;  %v2227_v33 = vld [vmem:[#allocation2 + $0x2] sm:$0xff] }
 0x34d   :  { %v1485_v31 = vld [vmem:[#allocation2 + $0xd9] sm:$0xff]  ;;  %v1691_v23 = vpop.permute.xlu0 %1690  ;;  %v1819_v7 = vpop.permute.xlu1 %1818 }
 0x34e   :  { %v4625_v32 = vmax.f32 %v1421_v61, %v1485_v31  ;;  %1455 = vst.msk [vmem:[#allocation2 + $0xe8] sm:$0xff] %vm751_vm4, %v1423_v50  ;;  %v1894_v29 = vsel %vm751_vm4, %v4424_v55, %v1691_v23 }
 0x34f   :  { %v2076_v1 = vpop.f32.mrf.mxu2  ;;  %v1926_v56 = vsel %vm48_vm5, %v1894_v29, %v1819_v7 }
 0x350   :  { %1549 = vst.msk [vmem:[#allocation2 + $0xd8] sm:$0xff] %vm751_vm4, %v4625_v32  ;;  %v4635_v0 = vadd.f32 %v4575_v8, %v2076_v1 }
 0x352   :  { %v2166_v9 = vmax.f32 %v4635_v0, 0.0 }
 0x353   :  { %v2260_v16 = vld [vmem:[#allocation2 + $0xc] sm:$0xff] }
 0x354   :  { %3119 = vmatmul.msk.f32.gmra.mxu2 %vm1184_vm6, %v1925_v18  ;;  %v2228_v49 = vld [vmem:[#allocation2 + $0xa] sm:$0xff]  ;;  %2198 = vst.msk [vmem:[#allocation2 + $0x18] sm:$0xff] %vm48_vm5, %v2166_v9  ;;  %3133 = vmatmul.msk.f32.gmra.mxu0 %vm48_vm5, %v2260_v16 }
 0x355   :  { %v3174_v63 = vpack.i.bf16 %v2228_v49, %v2227_v33  ;;  %v1486_v51 = vld [vmem:[#allocation2 + $0xe1] sm:$0xff]  ;;  %v1821_v25 = vpop.permute.xlu0 %1820 }
 0x356   :  { %v4645_v43 = vmax.f32 %v1422_v14, %v1486_v51  ;;  %v1927_v26 = vsel %vm48_vm5, %v1895_v19, %v1821_v25  ;;  %v1699_v51 = vpop.permute.xlu2 %1698 }
 0x357   :  { %3175 = vrot.lane.b32.xlu1 %v3174_v63, %s3213_s2  ;;  %v1612_v59 = vld [vmem:[#allocation2 + $0xd4] sm:$0xff]  ;;  %v2079_v61 = vpop.f32.mrf.mxu2 }
 0x358   :  { %1830 = vrot.lane.b32.xlu2 %v1612_v59, %s3213_s2  ;;  %v4651_v2 = vadd.f32 %v4575_v8, %v2079_v61  ;;  %1550 = vst.msk [vmem:[#allocation2 + $0xe0] sm:$0xff] %vm751_vm4, %v4645_v43  ;;  %v1580_v13 = vld [vmem:[#allocation2 + $0xd2] sm:$0xff] }
 0x359   :  { %v1388_v30 = vpop.f32.mrf.mxu1 }
 0x35a   :  { %v1389_v12 = vadd.f32 %v4559_v34, %v1388_v30  ;;  %v2167_v40 = vmax.f32 %v4651_v2, 0.0 }
 0x35b   :  { %v2261_v55 = vld [vmem:[#allocation2 + $0x14] sm:$0xff] }
 0x35c   :  { %v1424_v57 = vmax.f32 %v1389_v12, 0.0  ;;  %3120 = vmatmul.msk.f32.gmra.mxu2 %vm1184_vm6, %v1926_v56  ;;  %v2229_v28 = vld [vmem:[#allocation2 + $0x12] sm:$0xff]  ;;  %2199 = vst.msk [vmem:[#allocation2 + $0x20] sm:$0xff] %vm48_vm5, %v2167_v40  ;;  %3134 = vmatmul.msk.f32.gmra.mxu0 %vm48_vm5, %v2261_v55  ;;  %v1898_v12 = vsel %vm751_vm4, %v4489_v44, %v1699_v51 }
 0x35d   :  { %2327 = vrot.lane.b32.xlu0 %v2229_v28, %s3213_s2  ;;  %v1695_v52 = vpop.permute.xlu1 %1694  ;;  %v2458_v51 = vld [vmem:[%s5425_s7 + $0x38] sm:$0xff] }
 0x35e   :  { %1456 = vst.msk [vmem:[#allocation2 + $0xf0] sm:$0xff] %vm751_vm4, %v1424_v57  ;;  %v1896_v53 = vsel %vm751_vm4, %v4455_v10, %v1695_v52  ;;  %v2466_v52 = vld [vmem:[%s5425_s7 + $0x78] sm:$0xff] }
 0x35f   :  { %1702 = vrot.lane.b32.xlu1 %v1580_v13, %s3214_s21  ;;  %v2082_v6 = vpop.f32.mrf.mxu2  ;;  %v1613_v24 = vld [vmem:[#allocation2 + $0xdc] sm:$0xff]  ;;  %v1928_v37 = vsel %vm48_vm5, %v1896_v53, %v1823_v54  ;;  %2575 = vmatpush.msra.mxu3 %v2466_v52  ;;  %v2465_v53 = vld [vmem:[%s5425_s7 + $0x70] sm:$0xff] }
 0x360   :  { %v4667_v60 = vadd.f32 %v4575_v8, %v2082_v6  ;;  %1832 = vrot.lane.b32.xlu2 %v1613_v24, %s3213_s2 }
 0x361   :  { %v1391_v41 = vpop.f32.mrf.mxu1  ;;  %2576 = vmatpush.msra.mxu3 %v2465_v53 }
 0x362   :  { %v1392_v46 = vadd.f32 %v4559_v34, %v1391_v41  ;;  %v2168_v62 = vmax.f32 %v4667_v60, 0.0  ;;  %v1581_v34 = vld [vmem:[#allocation2 + $0xda] sm:$0xff] }
 0x363   :  { %v2262_v14 = vld [vmem:[#allocation2 + $0x1c] sm:$0xff] }
 0x364   :  { %v1425_v38 = vmax.f32 %v1392_v46, 0.0  ;;  %3121 = vmatmul.msk.f32.gmra.mxu2 %vm1184_vm6, %v1927_v26  ;;  %v2230_v27 = vld [vmem:[#allocation2 + $0x1a] sm:$0xff]  ;;  %2200 = vst.msk [vmem:[#allocation2 + $0x28] sm:$0xff] %vm48_vm5, %v2168_v62  ;;  %3135 = vmatmul.msk.f32.gmra.mxu0 %vm48_vm5, %v2262_v14 }
 0x365   :  { %2329 = vrot.lane.b32.xlu0 %v2230_v27, %s3213_s2  ;;  %v1487_v17 = vld [vmem:[#allocation2 + $0xe9] sm:$0xff]  ;;  %v1697_v35 = vpop.permute.xlu0 %1696  ;;  %v1825_v33 = vpop.permute.xlu1 %1824 }
 0x366   :  { %1457 = vst.msk [vmem:[#allocation2 + $0xf8] sm:$0xff] %vm751_vm4, %v1425_v38  ;;  %v4684_v21 = vmax.f32 %v1423_v50, %v1487_v17  ;;  %v1897_v16 = vsel %vm751_vm4, %v4469_v22, %v1697_v35 }
 0x367   :  { %1704 = vrot.lane.b32.xlu1 %v1581_v34, %s3214_s21  ;;  %v1929_v63 = vsel %vm48_vm5, %v1897_v16, %v1825_v33  ;;  %v2460_v16 = vld [vmem:[%s5425_s7 + $0x48] sm:$0xff] }
 0x368   :  { %1551 = vst.msk [vmem:[#allocation2 + $0xe8] sm:$0xff] %vm751_vm4, %v4684_v21 }
 0x36b   :  { %v2263_v5 = vld [vmem:[#allocation2 + $0x24] sm:$0xff] }
 0x36c   :  { %3122 = vmatmul.msk.f32.gmra.mxu2 %vm1184_vm6, %v1928_v37  ;;  %v2231_v36 = vld [vmem:[#allocation2 + $0x22] sm:$0xff]  ;;  %3136 = vmatmul.msk.f32.gmra.mxu0 %vm48_vm5, %v2263_v5 }
 0x36d   :  { %v1488_v31 = vld [vmem:[#allocation2 + $0xf1] sm:$0xff]  ;;  %v1489_v20 = vld [vmem:[#allocation2 + $0xf9] sm:$0xff]  ;;  %2331 = vrot.lane.b32.xlu0 %v2231_v36, %s3213_s2  ;;  %v1827_v61 = vpop.permute.xlu0 %1826  ;;  %v2464_v37 = vld [vmem:[%s5425_s7 + $0x68] sm:$0xff] }
 0x36e   :  { %v4695_v50 = vmax.f32 %v1424_v57, %v1488_v31  ;;  %v4697_v10 = vmax.f32 %v1425_v38, %v1489_v20  ;;  %v2085_v1 = vpop.f32.mrf.mxu2  ;;  %v1930_v55 = vsel %vm48_vm5, %v1898_v12, %v1827_v61  ;;  %2577 = vmatpush.msra.mxu3 %v2464_v37  ;;  %v2463_v31 = vld [vmem:[%s5425_s7 + $0x60] sm:$0xff]  ;;  %v2462_v20 = vld [vmem:[%s5425_s7 + $0x58] sm:$0xff]  ;;  %v2457_v61 = vld [vmem:[%s5425_s7 + $0x30] sm:$0xff] }
 0x36f   :  { %v1614_v39 = vld [vmem:[#allocation2 + $0xe4] sm:$0xff]  ;;  %v4704_v49 = vadd.f32 %v4575_v8, %v2085_v1 }
 0x370   :  { %v1582_v18 = vld [vmem:[#allocation2 + $0xe2] sm:$0xff]  ;;  %1553 = vst.msk [vmem:[#allocation2 + $0xf8] sm:$0xff] %vm751_vm4, %v4697_v10  ;;  %1834 = vrot.lane.b32.xlu2 %v1614_v39, %s3213_s2  ;;  %2578 = vmatpush.msra.mxu3 %v2463_v31  ;;  %v2461_v39 = vld [vmem:[%s5425_s7 + $0x50] sm:$0xff] }
 0x371   :  { %1706 = vrot.lane.b32.xlu1 %v1582_v18, %s3214_s21  ;;  %1552 = vst.msk [vmem:[#allocation2 + $0xf0] sm:$0xff] %vm751_vm4, %v4695_v50  ;;  %v2169_v23 = vmax.f32 %v4704_v49, 0.0 }
 0x372   :  { %2579 = vmatpush.msra.mxu3 %v2462_v20 }
 0x373   :  { %2201 = vst.msk [vmem:[#allocation2 + $0x30] sm:$0xff] %vm48_vm5, %v2169_v23 }
 0x374   :  { %3123 = vmatmul.msk.f32.gmra.mxu2 %vm1184_vm6, %v1929_v63  ;;  %2580 = vmatpush.msra.mxu3 %v2461_v39 }
 0x376   :  { %2581 = vmatpush.msra.mxu3 %v2460_v16 }
 0x377   :  { %v2088_v22 = vpop.f32.mrf.mxu2  ;;  %v1617_v46 = vld [vmem:[#allocation2 + $0xfc] sm:$0xff] }
 0x378   :  { %v4717_v59 = vadd.f32 %v4575_v8, %v2088_v22  ;;  %v1615_v29 = vld [vmem:[#allocation2 + $0xec] sm:$0xff]  ;;  %v1616_v42 = vld [vmem:[#allocation2 + $0xf4] sm:$0xff]  ;;  %v2459_v22 = vld [vmem:[%s5425_s7 + $0x40] sm:$0xff] }
 0x379   :  { %v1583_v7 = vld [vmem:[#allocation2 + $0xea] sm:$0xff]  ;;  %1836 = vrot.lane.b32.xlu2 %v1615_v29, %s3213_s2  ;;  %v1584_v44 = vld [vmem:[#allocation2 + $0xf2] sm:$0xff]  ;;  %v1585_v26 = vld [vmem:[#allocation2 + $0xfa] sm:$0xff]  ;;  %2582 = vmatpush.msra.mxu3 %v2459_v22 }
 0x37a   :  { %1708 = vrot.lane.b32.xlu1 %v1583_v7, %s3214_s21  ;;  %v2170_v30 = vmax.f32 %v4717_v59, 0.0  ;;  %v2264_v56 = vld [vmem:[#allocation2 + $0x2c] sm:$0xff] }
 0x37b   :  { %v2232_v57 = vld [vmem:[#allocation2 + $0x2a] sm:$0xff]  ;;  %3137 = vmatmul.msk.f32.gmra.mxu0 %vm48_vm5, %v2264_v56  ;;  %2583 = vmatpush.msra.mxu3 %v2458_v51 }
 0x37c   :  { %2202 = vst.msk [vmem:[#allocation2 + $0x38] sm:$0xff] %vm48_vm5, %v2170_v30  ;;  %2333 = vrot.lane.b32.xlu0 %v2232_v57, %s3213_s2  ;;  %3124 = vmatmul.msk.f32.gmra.mxu2 %vm1184_vm6, %v1930_v55  ;;  %v2456_v56 = vld [vmem:[%s5425_s7 + $0x28] sm:$0xff] }
 0x37d   :  { %2584 = vmatpush.msra.mxu3 %v2457_v61 }
 0x37f   :  { %v2091_v28 = vpop.f32.mrf.mxu2  ;;  %2585 = vmatpush.msra.mxu3 %v2456_v56 }
 0x380   :  { %v4732_v13 = vadd.f32 %v4575_v8, %v2091_v28  ;;  %v2455_v28 = vld [vmem:[%s5425_s7 + $0x20] sm:$0xff] }
 0x381   :  { %1838 = vrot.lane.b32.xlu2 %v1616_v42, %s3213_s2  ;;  %v2454_v42 = vld [vmem:[%s5425_s7 + $0x18] sm:$0xff]  ;;  %2586 = vmatpush.msra.mxu3 %v2455_v28 }
 0x382   :  { %1710 = vrot.lane.b32.xlu1 %v1584_v44, %s3214_s21  ;;  %v2171_v25 = vmax.f32 %v4732_v13, 0.0 }
 0x383   :  { %v2265_v6 = vld [vmem:[#allocation2 + $0x34] sm:$0xff]  ;;  %2587 = vmatpush.msra.mxu3 %v2454_v42 }
 0x384   :  { %v2233_v24 = vld [vmem:[#allocation2 + $0x32] sm:$0xff]  ;;  %2203 = vst.msk [vmem:[#allocation2 + $0x40] sm:$0xff] %vm48_vm5, %v2171_v25  ;;  %3138 = vmatmul.msk.f32.gmra.mxu0 %vm48_vm5, %v2265_v6 }
 0x385   :  { %2335 = vrot.lane.b32.xlu0 %v2233_v24, %s3213_s2  ;;  %v2453_v24 = vld [vmem:[%s5425_s7 + $0x10] sm:$0xff] }
 0x386   :  { %2588 = vmatpush.msra.mxu3 %v2453_v24 }
 0x387   :  { %v2094_v41 = vpop.f32.mrf.mxu2 }
 0x388   :  { %v4743_v19 = vadd.f32 %v4575_v8, %v2094_v41 }
 0x389   :  { %1840 = vrot.lane.b32.xlu2 %v1617_v46, %s3213_s2  ;;  %v2452_v46 = vld [vmem:[%s5425_s7 + $0x8] sm:$0xff] }
 0x38a   :  { %1712 = vrot.lane.b32.xlu1 %v1585_v26, %s3214_s21  ;;  %v2172_v38 = vmax.f32 %v4743_v19, 0.0  ;;  %2589 = vmatpush.msra.mxu3 %v2452_v46 }
 0x38b   :  { %v2266_v14 = vld [vmem:[#allocation2 + $0x3c] sm:$0xff] }
 0x38c   :  { %v2234_v27 = vld [vmem:[#allocation2 + $0x3a] sm:$0xff]  ;;  %2204 = vst.msk [vmem:[#allocation2 + $0x48] sm:$0xff] %vm48_vm5, %v2172_v38  ;;  %3139 = vmatmul.msk.f32.gmra.mxu0 %vm48_vm5, %v2266_v14 }
 0x38d   :  { %2337 = vrot.lane.b32.xlu0 %v2234_v27, %s3213_s2  ;;  %v2451_v27 = vld [vmem:[%s5425_s7] sm:$0xff] }
 0x38e   :  { %2590 = vmatpush.msra.mxu3 %v2451_v27 }
 0x38f   :  { %v2097_v17 = vpop.f32.mrf.mxu2 }
 0x390   :  { %v4757_v34 = vadd.f32 %v4575_v8, %v2097_v17 }
 0x392   :  { %v2173_v54 = vmax.f32 %v4757_v34, 0.0 }
 0x393   :  { %v2267_v5 = vld [vmem:[#allocation2 + $0x44] sm:$0xff] }
 0x394   :  { %v2235_v36 = vld [vmem:[#allocation2 + $0x42] sm:$0xff]  ;;  %2205 = vst.msk [vmem:[#allocation2 + $0x50] sm:$0xff] %vm48_vm5, %v2173_v54  ;;  %3140 = vmatmul.msk.f32.gmra.mxu0 %vm48_vm5, %v2267_v5 }
 0x395   :  { %2339 = vrot.lane.b32.xlu1 %v2235_v36, %s3213_s2 }
 0x397   :  { %v2100_v35 = vpop.f32.mrf.mxu2 }
 0x398   :  { %v4778_v1 = vadd.f32 %v4575_v8, %v2100_v35 }
 0x39a   :  { %v2174_v18 = vmax.f32 %v4778_v1, 0.0 }
 0x39b   :  { %v2268_v33 = vld [vmem:[#allocation2 + $0x4c] sm:$0xff]  ;;  %v1701_v52 = vpop.permute.xlu2 %1700 }
 0x39c   :  { %v2236_v63 = vld [vmem:[#allocation2 + $0x4a] sm:$0xff]  ;;  %2206 = vst.msk [vmem:[#allocation2 + $0x58] sm:$0xff] %vm48_vm5, %v2174_v18  ;;  %3141 = vmatmul.msk.f32.gmra.mxu0 %vm48_vm5, %v2268_v33  ;;  %v1899_v37 = vsel %vm751_vm4, %v4499_v48, %v1701_v52 }
 0x39d   :  { %2341 = vrot.lane.b32.xlu2 %v2236_v63, %s3213_s2 }
 0x39f   :  { %v2103_v29 = vpop.f32.mrf.mxu2 }
 0x3a0   :  { %v4799_v7 = vadd.f32 %v4575_v8, %v2103_v29 }
 0x3a2   :  { %v2175_v12 = vmax.f32 %v4799_v7, 0.0 }
 0x3a3   :  { %v2269_v57 = vld [vmem:[#allocation2 + $0x54] sm:$0xff] }
 0x3a4   :  { %v2237_v55 = vld [vmem:[#allocation2 + $0x52] sm:$0xff]  ;;  %2207 = vst.msk [vmem:[#allocation2 + $0x60] sm:$0xff] %vm48_vm5, %v2175_v12  ;;  %3142 = vmatmul.msk.f32.gmra.mxu0 %vm48_vm5, %v2269_v57 }
 0x3a5   :  { %2343 = vrot.lane.b32.xlu0 %v2237_v55, %s3213_s2 }
 0x3a7   :  { %v2106_v44 = vpop.f32.mrf.mxu2 }
 0x3a8   :  { %v4820_v6 = vadd.f32 %v4575_v8, %v2106_v44 }
 0x3aa   :  { %v2176_v41 = vmax.f32 %v4820_v6, 0.0 }
 0x3ab   :  { %v2270_v26 = vld [vmem:[#allocation2 + $0x5c] sm:$0xff] }
 0x3ac   :  { %v2238_v14 = vld [vmem:[#allocation2 + $0x5a] sm:$0xff]  ;;  %2208 = vst.msk [vmem:[#allocation2 + $0x68] sm:$0xff] %vm48_vm5, %v2176_v41  ;;  %3143 = vmatmul.msk.f32.gmra.mxu0 %vm48_vm5, %v2270_v26 }
 0x3ad   :  { %2345 = vrot.lane.b32.xlu1 %v2238_v14, %s3213_s2 }
 0x3af   :  { %v2109_v17 = vpop.f32.mrf.mxu2 }
 0x3b0   :  { %v4838_v53 = vadd.f32 %v4575_v8, %v2109_v17 }
 0x3b2   :  { %v2177_v5 = vmax.f32 %v4838_v53, 0.0  ;;  %v1829_v36 = vpop.permute.xlu0 %1828  ;;  %v1831_v26 = vpop.permute.xlu2 %1830 }
 0x3b3   :  { %v1931_v31 = vsel %vm48_vm5, %v1899_v37, %v1829_v36  ;;  %v2271_v20 = vld [vmem:[#allocation2 + $0x64] sm:$0xff] }
 0x3b4   :  { %v2239_v35 = vld [vmem:[#allocation2 + $0x62] sm:$0xff]  ;;  %2209 = vst.msk [vmem:[#allocation2 + $0x70] sm:$0xff] %vm48_vm5, %v2177_v5  ;;  %3144 = vmatmul.msk.f32.gmra.mxu0 %vm48_vm5, %v2271_v20  ;;  %3125 = vmatmul.msk.f32.gmra.mxu2 %vm1184_vm6, %v1931_v31 }
 0x3b5   :  { %2347 = vrot.lane.b32.xlu2 %v2239_v35, %s3213_s2 }
 0x3b7   :  { %v2112_v39 = vpop.f32.mrf.mxu2 }
 0x3b8   :  { %v4851_v48 = vadd.f32 %v4575_v8, %v2112_v39 }
 0x3ba   :  { %v2178_v16 = vmax.f32 %v4851_v48, 0.0 }
 0x3bb   :  { %v2272_v33 = vld [vmem:[#allocation2 + $0x6c] sm:$0xff] }
 0x3bc   :  { %v2240_v63 = vld [vmem:[#allocation2 + $0x6a] sm:$0xff]  ;;  %2210 = vst.msk [vmem:[#allocation2 + $0x78] sm:$0xff] %vm48_vm5, %v2178_v16  ;;  %3145 = vmatmul.msk.f32.gmra.mxu0 %vm48_vm5, %v2272_v33 }
 0x3bd   :  { %2349 = vrot.lane.b32.xlu0 %v2240_v63, %s3213_s2 }
 0x3bf   :  { %v2115_v22 = vpop.f32.mrf.mxu2 }
 0x3c0   :  { %v4860_v51 = vadd.f32 %v4575_v8, %v2115_v22 }
 0x3c2   :  { %v2179_v29 = vmax.f32 %v4860_v51, 0.0 }
 0x3c3   :  { %v2273_v61 = vld [vmem:[#allocation2 + $0x74] sm:$0xff] }
 0x3c4   :  { %v2241_v56 = vld [vmem:[#allocation2 + $0x72] sm:$0xff]  ;;  %2211 = vst.msk [vmem:[#allocation2 + $0x80] sm:$0xff] %vm48_vm5, %v2179_v29  ;;  %3146 = vmatmul.msk.f32.gmra.mxu0 %vm48_vm5, %v2273_v61 }
 0x3c5   :  { %2351 = vrot.lane.b32.xlu1 %v2241_v56, %s3213_s2 }
 0x3c7   :  { %v2118_v57 = vpop.f32.mrf.mxu2 }
 0x3c8   :  { %v4869_v55 = vadd.f32 %v4575_v8, %v2118_v57 }
 0x3c9   :  { %v3176_v28 = vpop.permute.xlu1 %3175 }
 0x3ca   :  { %v2180_v42 = vmax.f32 %v4869_v55, 0.0  ;;  %v3177_v44 = vunpack.i.l.bf16 %v3176_v28  ;;  %v3178_v52 = vunpack.i.h.bf16 %v3176_v28 }
 0x3cb   :  { %v2274_v24 = vld [vmem:[#allocation2 + $0x7c] sm:$0xff] }
 0x3cc   :  { %v2242_v46 = vld [vmem:[#allocation2 + $0x7a] sm:$0xff]  ;;  %2212 = vst.msk [vmem:[#allocation2 + $0x88] sm:$0xff] %vm48_vm5, %v2180_v42  ;;  %3147 = vmatmul.msk.f32.gmra.mxu0 %vm48_vm5, %v2274_v24  ;;  %v2419_v14 = vsel %vm48_vm5, %v2163_v4, %v3177_v44  ;;  %v2420_v15 = vsel %vm48_vm5, %v2164_v47, %v3178_v52 }
 0x3cd   :  { %2353 = vrot.lane.b32.xlu2 %v2242_v46, %s3213_s2  ;;  %2591 = vmatmul.f32.vlgmr.msra.gmra.mxu3 %v2419_v14 }
 0x3cf   :  { %v2121_v27 = vpop.f32.mrf.mxu2  ;;  %v2328_v36 = vpop.permute.xlu0 %2327 }
 0x3d0   :  { %v4881_v17 = vadd.f32 %v4575_v8, %v2121_v27  ;;  %v2421_v47 = vsel %vm48_vm5, %v2165_v58, %v2328_v36 }
 0x3d1   :  { %v1703_v37 = vpop.permute.xlu1 %1702 }
 0x3d2   :  { %v2181_v31 = vmax.f32 %v4881_v17, 0.0  ;;  %v1900_v20 = vsel %vm751_vm4, %v4579_v3, %v1703_v37  ;;  %v1833_v3 = vpop.permute.xlu2 %1832 }
 0x3d3   :  { %v2275_v35 = vld [vmem:[#allocation2 + $0x84] sm:$0xff]  ;;  %v1932_v33 = vsel %vm48_vm5, %v1900_v20, %v1831_v26 }
 0x3d4   :  { %v2243_v39 = vld [vmem:[#allocation2 + $0x82] sm:$0xff]  ;;  %2213 = vst.msk [vmem:[#allocation2 + $0x90] sm:$0xff] %vm48_vm5, %v2181_v31  ;;  %3148 = vmatmul.msk.f32.gmra.mxu0 %vm48_vm5, %v2275_v35  ;;  %3126 = vmatmul.msk.f32.gmra.mxu2 %vm1184_vm6, %v1932_v33 }
 0x3d5   :  { %2355 = vrot.lane.b32.xlu0 %v2243_v39, %s3213_s2  ;;  %2594 = vmatmul.f32.gmra.mxu3 %v2420_v15 }
 0x3d7   :  { %v2124_v4 = vpop.f32.mrf.mxu2  ;;  %v2330_v44 = vpop.permute.xlu0 %2329 }
 0x3d8   :  { %v4897_v63 = vadd.f32 %v4575_v8, %v2124_v4  ;;  %v2422_v58 = vsel %vm48_vm5, %v2166_v9, %v2330_v44 }
 0x3d9   :  { %v1705_v22 = vpop.permute.xlu1 %1704 }
 0x3da   :  { %v2182_v61 = vmax.f32 %v4897_v63, 0.0  ;;  %v1901_v56 = vsel %vm751_vm4, %v4625_v32, %v1705_v22  ;;  %v1835_v32 = vpop.permute.xlu2 %1834 }
 0x3db   :  { %v2276_v57 = vld [vmem:[#allocation2 + $0x8c] sm:$0xff]  ;;  %v1933_v45 = vsel %vm48_vm5, %v1901_v56, %v1833_v3 }
 0x3dc   :  { %v2244_v28 = vld [vmem:[#allocation2 + $0x8a] sm:$0xff]  ;;  %2214 = vst.msk [vmem:[#allocation2 + $0x98] sm:$0xff] %vm48_vm5, %v2182_v61  ;;  %3149 = vmatmul.msk.f32.gmra.mxu0 %vm48_vm5, %v2276_v57  ;;  %3127 = vmatmul.msk.f32.gmra.mxu2 %vm1184_vm6, %v1933_v45 }
 0x3dd   :  { %2357 = vrot.lane.b32.xlu1 %v2244_v28, %s3213_s2  ;;  %2597 = vmatmul.f32.gmra.mxu3 %v2421_v47 }
 0x3df   :  { %v2127_v24 = vpop.f32.mrf.mxu2 }
 0x3e0   :  { %v4913_v46 = vadd.f32 %v4575_v8, %v2127_v24 }
 0x3e2   :  { %v2183_v26 = vmax.f32 %v4913_v46, 0.0  ;;  %v1837_v20 = vpop.permute.xlu2 %1836 }
 0x3e3   :  { %v1707_v14 = vpop.permute.xlu1 %1706  ;;  %v2277_v52 = vld [vmem:[#allocation2 + $0x94] sm:$0xff] }
 0x3e4   :  { %v1902_v27 = vsel %vm751_vm4, %v4645_v43, %v1707_v14  ;;  %v2245_v37 = vld [vmem:[#allocation2 + $0x92] sm:$0xff]  ;;  %2215 = vst.msk [vmem:[#allocation2 + $0xa0] sm:$0xff] %vm48_vm5, %v2183_v26  ;;  %3150 = vmatmul.msk.f32.gmra.mxu0 %vm48_vm5, %v2277_v52  ;;  %v2332_v43 = vpop.permute.xlu0 %2331 }
 0x3e5   :  { %2359 = vrot.lane.b32.xlu2 %v2245_v37, %s3213_s2  ;;  %v1934_v11 = vsel %vm48_vm5, %v1902_v27, %v1835_v32  ;;  %2600 = vmatmul.f32.gmra.mxu3 %v2422_v58  ;;  %v2423_v9 = vsel %vm48_vm5, %v2167_v40, %v2332_v43 }
 0x3e6   :  { %3128 = vmatmul.msk.f32.gmra.mxu2 %vm1184_vm6, %v1934_v11 }
 0x3e7   :  { %v2130_v36 = vpop.f32.mrf.mxu2 }
 0x3e8   :  { %v4929_v35 = vadd.f32 %v4575_v8, %v2130_v36 }
 0x3ea   :  { %v2184_v39 = vmax.f32 %v4929_v35, 0.0  ;;  %v1839_v28 = vpop.permute.xlu2 %1838 }
 0x3eb   :  { %v2278_v15 = vld [vmem:[#allocation2 + $0x9c] sm:$0xff] }
 0x3ec   :  { %v1709_v33 = vpop.permute.xlu1 %1708  ;;  %v2246_v3 = vld [vmem:[#allocation2 + $0x9a] sm:$0xff]  ;;  %2216 = vst.msk [vmem:[#allocation2 + $0xa8] sm:$0xff] %vm48_vm5, %v2184_v39  ;;  %3151 = vmatmul.msk.f32.gmra.mxu0 %vm48_vm5, %v2278_v15 }
 0x3ed   :  { %v1903_v0 = vsel %vm751_vm4, %v4684_v21, %v1709_v33  ;;  %2361 = vrot.lane.b32.xlu0 %v2246_v3, %s3213_s2  ;;  %2603 = vmatmul.f32.gmra.mxu3 %v2423_v9 }
 0x3ee   :  { %v1935_v4 = vsel %vm48_vm5, %v1903_v0, %v1837_v20  ;;  %v2334_v22 = vpop.permute.xlu0 %2333 }
 0x3ef   :  { %3129 = vmatmul.msk.f32.gmra.mxu2 %vm1184_vm6, %v1935_v4  ;;  %v2133_v56 = vpop.f32.mrf.mxu2  ;;  %v2424_v40 = vsel %vm48_vm5, %v2168_v62, %v2334_v22 }
 0x3f0   :  { %v4945_v57 = vadd.f32 %v4575_v8, %v2133_v56 }
 0x3f2   :  { %v2185_v21 = vmax.f32 %v4945_v57, 0.0  ;;  %v1841_v58 = vpop.permute.xlu2 %1840 }
 0x3f3   :  { %v2279_v44 = vld [vmem:[#allocation2 + $0xa4] sm:$0xff] }
 0x3f4   :  { %v1711_v45 = vpop.permute.xlu1 %1710  ;;  %v2247_v47 = vld [vmem:[#allocation2 + $0xa2] sm:$0xff]  ;;  %2217 = vst.msk [vmem:[#allocation2 + $0xb0] sm:$0xff] %vm48_vm5, %v2185_v21  ;;  %3152 = vmatmul.msk.f32.gmra.mxu0 %vm48_vm5, %v2279_v44 }
 0x3f5   :  { %v1904_v2 = vsel %vm751_vm4, %v4695_v50, %v1711_v45  ;;  %2363 = vrot.lane.b32.xlu1 %v2247_v47, %s3213_s2  ;;  %2606 = vmatmul.f32.gmra.mxu3 %v2424_v40 }
 0x3f6   :  { %v1936_v32 = vsel %vm48_vm5, %v1904_v2, %v1839_v28 }
 0x3f7   :  { %3130 = vmatmul.msk.f32.gmra.mxu2 %vm1184_vm6, %v1936_v32  ;;  %v2336_v24 = vpop.permute.xlu0 %2335  ;;  %v2136_v14 = vpop.f32.mrf.mxu2 }
 0x3f8   :  { %v4961_v27 = vadd.f32 %v4575_v8, %v2136_v14  ;;  %v2425_v62 = vsel %vm48_vm5, %v2169_v23, %v2336_v24 }
 0x3fa   :  { %v2186_v50 = vmax.f32 %v4961_v27, 0.0  ;;  %v2342_v59 = vpop.permute.xlu2 %2341 }
 0x3fb   :  { %v2280_v37 = vld [vmem:[#allocation2 + $0xac] sm:$0xff] }
 0x3fc   :  { %v1713_v52 = vpop.permute.xlu1 %1712  ;;  %v2248_v11 = vld [vmem:[#allocation2 + $0xaa] sm:$0xff]  ;;  %2218 = vst.msk [vmem:[#allocation2 + $0xb8] sm:$0xff] %vm48_vm5, %v2186_v50  ;;  %3153 = vmatmul.msk.f32.gmra.mxu0 %vm48_vm5, %v2280_v37 }
 0x3fd   :  { %v1905_v60 = vsel %vm751_vm4, %v4697_v10, %v1713_v52  ;;  %2365 = vrot.lane.b32.xlu2 %v2248_v11, %s3213_s2  ;;  %2609 = vmatmul.f32.gmra.mxu3 %v2425_v62 }
 0x3fe   :  { %v1937_v43 = vsel %vm48_vm5, %v1905_v60, %v1841_v58 }
 0x3ff   :  { %3131 = vmatmul.msk.f32.gmra.mxu2 %vm1184_vm6, %v1937_v43  ;;  %v2139_v36 = vpop.f32.mrf.mxu2  ;;  %v2338_v20 = vpop.permute.xlu0 %2337 }
 0x400   :  { %v4977_v33 = vadd.f32 %v4575_v8, %v2139_v36  ;;  %v2426_v49 = vsel %vm48_vm5, %v2170_v30, %v2338_v20  ;;  %v2428_v30 = vsel %vm48_vm5, %v2172_v38, %v2342_v59 }
 0x402   :  { %v2187_v10 = vmax.f32 %v4977_v33, 0.0 }
 0x403   :  { %v2281_v15 = vld [vmem:[#allocation2 + $0xb4] sm:$0xff] }
 0x404   :  { %v2249_v3 = vld [vmem:[#allocation2 + $0xb2] sm:$0xff]  ;;  %3154 = vmatmul.msk.f32.gmra.mxu0 %vm48_vm5, %v2281_v15  ;;  %2219 = vst.msk [vmem:[#allocation2 + $0xc0] sm:$0xff] %vm48_vm5, %v2187_v10 }
 0x405   :  { %2367 = vrot.lane.b32.xlu0 %v2249_v3, %s3213_s2  ;;  %2612 = vmatmul.f32.gmra.mxu3 %v2426_v49 }
 0x407   :  { %v2340_v23 = vpop.permute.xlu1 %2339 }
 0x408   :  { %v2427_v4 = vsel %vm48_vm5, %v2171_v25, %v2340_v23 }
 0x40b   :  { %v2282_v0 = vld [vmem:[#allocation2 + $0xbc] sm:$0xff] }
 0x40c   :  { %v2250_v9 = vld [vmem:[#allocation2 + $0xba] sm:$0xff]  ;;  %3155 = vmatmul.msk.f32.gmra.mxu0 %vm48_vm5, %v2282_v0 }
 0x40d   :  { %2369 = vrot.lane.b32.xlu1 %v2250_v9, %s3213_s2  ;;  %2615 = vmatmul.f32.gmra.mxu3 %v2427_v4 }
 0x40f   :  { %v2348_v25 = vpop.permute.xlu2 %2347 }
 0x410   :  { %v2431_v19 = vsel %vm48_vm5, %v2175_v12, %v2348_v25 }
 0x415   :  { %2618 = vmatmul.f32.gmra.mxu3 %v2428_v30 }
 0x417   :  { %v2344_v22 = vpop.permute.xlu0 %2343 }
 0x418   :  { %v2429_v56 = vsel %vm48_vm5, %v2173_v54, %v2344_v22  ;;  %v5008_v54 = vpop.f32.mrf.mxu0 }
 0x41d   :  { %2621 = vmatmul.f32.gmra.mxu3 %v2429_v56 }
 0x41f   :  { %v2346_v28 = vpop.permute.xlu1 %2345 }
 0x420   :  { %v2430_v13 = vsel %vm48_vm5, %v2174_v18, %v2346_v28  ;;  %v5020_v12 = vpop.f32.mrf.mxu0 }
 0x425   :  { %2624 = vmatmul.f32.gmra.mxu3 %v2430_v13 }
 0x427   :  { %v2354_v6 = vpop.permute.xlu2 %2353 }
 0x428   :  { %v2434_v2 = vsel %vm48_vm5, %v2178_v16, %v2354_v6  ;;  %v5027_v32 = vpop.f32.mrf.mxu0 }
 0x42d   :  { %2627 = vmatmul.f32.gmra.mxu3 %v2431_v19 }
 0x42f   :  { %v2350_v38 = vpop.permute.xlu0 %2349 }
 0x430   :  { %v2432_v34 = vsel %vm48_vm5, %v2176_v41, %v2350_v38  ;;  %v5034_v14 = vpop.f32.mrf.mxu0 }
 0x435   :  { %2630 = vmatmul.f32.gmra.mxu3 %v2432_v34 }
 0x437   :  { %v2142_v45 = vpop.f32.mrf.mxu2  ;;  %v2352_v18 = vpop.permute.xlu1 %2351 }
 0x438   :  { %v5011_v1 = vadd.f32 %v4575_v8, %v2142_v45  ;;  %v2433_v7 = vsel %vm48_vm5, %v2177_v5, %v2352_v18 }
 0x43a   :  { %v2188_v44 = vmax.f32 %v5011_v1, 0.0 }
 0x43c   :  { %2220 = vst.msk [vmem:[#allocation2 + $0xc8] sm:$0xff] %vm48_vm5, %v2188_v44 }
 0x43d   :  { %2633 = vmatmul.f32.gmra.mxu3 %v2433_v7 }
 0x43f   :  { %v2360_v51 = vpop.permute.xlu2 %2359 }
 0x440   :  { %v2437_v55 = vsel %vm48_vm5, %v2181_v31, %v2360_v51 }
 0x443   :  { %v2251_v41 = vld [vmem:[#allocation2 + $0xc2] sm:$0xff] }
 0x444   :  { %v2283_v47 = vld [vmem:[#allocation2 + $0xc4] sm:$0xff]  ;;  %2371 = vrot.lane.b32.xlu2 %v2251_v41, %s3213_s2 }
 0x445   :  { %3156 = vmatmul.msk.f32.gmra.mxu0 %vm48_vm5, %v2283_v47  ;;  %2636 = vmatmul.f32.gmra.mxu3 %v2434_v2 }
 0x447   :  { %v2356_v40 = vpop.permute.xlu0 %2355 }
 0x448   :  { %v2435_v53 = vsel %vm48_vm5, %v2179_v29, %v2356_v40 }
 0x44d   :  { %2639 = vmatmul.f32.gmra.mxu3 %v2435_v53 }
 0x44f   :  { %v2358_v24 = vpop.permute.xlu1 %2357 }
 0x450   :  { %v5032_v5 = vpop.f32.mrf.mxu3  ;;  %v2436_v48 = vsel %vm48_vm5, %v2180_v42, %v2358_v24  ;;  %v5051_v42 = vpop.f32.mrf.mxu0 }
 0x455   :  { %2642 = vmatmul.f32.gmra.mxu3 %v2436_v48 }
 0x457   :  { %v2145_v16 = vpop.f32.mrf.mxu2  ;;  %v2366_v22 = vpop.permute.xlu2 %2365 }
 0x458   :  { %v5039_v52 = vpop.f32.mrf.mxu3  ;;  %v5042_v37 = vadd.f32 %v4575_v8, %v2145_v16  ;;  %v5067_v31 = vpop.f32.mrf.mxu0  ;;  %v2440_v46 = vsel %vm48_vm5, %v2184_v39, %v2366_v22 }
 0x45a   :  { %v2189_v29 = vmax.f32 %v5042_v37, 0.0 }
 0x45c   :  { %2221 = vst.msk [vmem:[#allocation2 + $0xd0] sm:$0xff] %vm48_vm5, %v2189_v29 }
 0x45d   :  { %2645 = vmatmul.f32.gmra.mxu3 %v2437_v55 }
 0x45f   :  { %v2148_v11 = vpop.f32.mrf.mxu2  ;;  %v2362_v62 = vpop.permute.xlu0 %2361 }
 0x460   :  { %v5053_v58 = vpop.f32.mrf.mxu3  ;;  %v5056_v60 = vadd.f32 %v4575_v8, %v2148_v11  ;;  %v2438_v17 = vsel %vm48_vm5, %v2182_v61, %v2362_v62  ;;  %v5085_v59 = vpop.f32.mrf.mxu0 }
 0x462   :  { %v2190_v43 = vmax.f32 %v5056_v60, 0.0 }
 0x463   :  { %v2284_v36 = vld [vmem:[#allocation2 + $0xcc] sm:$0xff] }
 0x464   :  { %v2252_v20 = vld [vmem:[#allocation2 + $0xca] sm:$0xff]  ;;  %2222 = vst.msk [vmem:[#allocation2 + $0xd8] sm:$0xff] %vm48_vm5, %v2190_v43  ;;  %3157 = vmatmul.msk.f32.gmra.mxu0 %vm48_vm5, %v2284_v36 }
 0x465   :  { %2373 = vrot.lane.b32.xlu0 %v2252_v20, %s3213_s2  ;;  %2648 = vmatmul.f32.gmra.mxu3 %v2438_v17 }
 0x467   :  { %v2364_v23 = vpop.permute.xlu1 %2363 }
 0x468   :  { %v5069_v3 = vpop.f32.mrf.mxu3  ;;  %v2439_v63 = vsel %vm48_vm5, %v2183_v26, %v2364_v23  ;;  %v5104_v45 = vpop.f32.mrf.mxu0 }
 0x469   :  { %v2151_v15 = vpop.f32.mrf.mxu2 }
 0x46a   :  { %v5072_v49 = vadd.f32 %v4575_v8, %v2151_v15 }
 0x46b   :  { %v2285_v9 = vld [vmem:[#allocation2 + $0xd4] sm:$0xff] }
 0x46c   :  { %v2191_v0 = vmax.f32 %v5072_v49, 0.0  ;;  %v2253_v4 = vld [vmem:[#allocation2 + $0xd2] sm:$0xff]  ;;  %3158 = vmatmul.msk.f32.gmra.mxu0 %vm48_vm5, %v2285_v9 }
 0x46d   :  { %2375 = vrot.lane.b32.xlu1 %v2253_v4, %s3213_s2  ;;  %2651 = vmatmul.f32.gmra.mxu3 %v2439_v63 }
 0x46e   :  { %2223 = vst.msk [vmem:[#allocation2 + $0xe0] sm:$0xff] %vm48_vm5, %v2191_v0 }
 0x470   :  { %v5083_v61 = vpop.f32.mrf.mxu3 }
 0x472   :  { %v2154_v30 = vpop.f32.mrf.mxu2 }
 0x473   :  { %v5088_v56 = vadd.f32 %v4575_v8, %v2154_v30 }
 0x475   :  { %v2192_v28 = vmax.f32 %v5088_v56, 0.0  ;;  %v2286_v13 = vld [vmem:[#allocation2 + $0xdc] sm:$0xff]  ;;  %2654 = vmatmul.f32.gmra.mxu3 %v2440_v46 }
 0x476   :  { %v2254_v25 = vld [vmem:[#allocation2 + $0xda] sm:$0xff]  ;;  %3159 = vmatmul.msk.f32.gmra.mxu0 %vm48_vm5, %v2286_v13 }
 0x477   :  { %2377 = vrot.lane.b32.xlu2 %v2254_v25, %s3213_s2  ;;  %2224 = vst.msk [vmem:[#allocation2 + $0xe8] sm:$0xff] %vm48_vm5, %v2192_v28  ;;  %v2368_v38 = vpop.permute.xlu0 %2367  ;;  %v5141_v25 = vld [vmem:[%s5426_s8] ss:$0 sm:$0xff] }
 0x478   :  { %v5099_v26 = vpop.f32.mrf.mxu3  ;;  %v2441_v35 = vsel %vm48_vm5, %v2185_v21, %v2368_v38  ;;  %v5121_v21 = vpop.f32.mrf.mxu0  ;;  %v2602_v1 = vadd.f32 %v5141_v25, %v5069_v3 }
 0x47a   :  { %v2157_v19 = vpop.f32.mrf.mxu2 }
 0x47b   :  { %v5102_v34 = vadd.f32 %v4575_v8, %v2157_v19 }
 0x47d   :  { %v2193_v18 = vmax.f32 %v5102_v34, 0.0  ;;  %2657 = vmatmul.f32.gmra.mxu3 %v2441_v35 }
 0x47e   :  { %v2287_v39 = vld [vmem:[#allocation2 + $0xe4] sm:$0xff] }
 0x47f   :  { %v2255_v7 = vld [vmem:[#allocation2 + $0xe2] sm:$0xff]  ;;  %2225 = vst.msk [vmem:[#allocation2 + $0xf0] sm:$0xff] %vm48_vm5, %v2193_v18  ;;  %3160 = vmatmul.msk.f32.gmra.mxu0 %vm48_vm5, %v2287_v39  ;;  %v2370_v47 = vpop.permute.xlu1 %2369 }
 0x480   :  { %2379 = vrot.lane.b32.xlu0 %v2255_v7, %s3213_s2  ;;  %v5115_v6 = vpop.f32.mrf.mxu3  ;;  %v2442_v40 = vsel %vm48_vm5, %v2186_v50, %v2370_v47  ;;  %v2732_v27 = vpop.f32.mrf.mxu0 }
 0x482   :  { %v2160_v41 = vpop.f32.mrf.mxu2 }
 0x483   :  { %v5118_v2 = vadd.f32 %v4575_v8, %v2160_v41 }
 0x485   :  { %v2194_v57 = vmax.f32 %v5118_v2, 0.0  ;;  %2660 = vmatmul.f32.gmra.mxu3 %v2442_v40 }
 0x486   :  { %v2288_v53 = vld [vmem:[#allocation2 + $0xec] sm:$0xff] }
 0x487   :  { %v2256_v24 = vld [vmem:[#allocation2 + $0xea] sm:$0xff]  ;;  %2226 = vst.msk [vmem:[#allocation2 + $0xf8] sm:$0xff] %vm48_vm5, %v2194_v57  ;;  %3161 = vmatmul.msk.f32.gmra.mxu0 %vm48_vm5, %v2288_v53 }
 0x488   :  { %2381 = vrot.lane.b32.xlu1 %v2256_v24, %s3213_s2  ;;  %v2613_v8 = vpop.f32.mrf.mxu3  ;;  %v2735_v11 = vpop.f32.mrf.mxu0 }
 0x48e   :  { %v2289_v48 = vld [vmem:[#allocation2 + $0xf4] sm:$0xff]  ;;  %v2290_v55 = vld [vmem:[#allocation2 + $0xfc] sm:$0xff] }
 0x48f   :  { %v2258_v16 = vld [vmem:[#allocation2 + $0xfa] sm:$0xff]  ;;  %v2257_v51 = vld [vmem:[#allocation2 + $0xf2] sm:$0xff]  ;;  %3162 = vmatmul.msk.f32.gmra.mxu0 %vm48_vm5, %v2289_v48 }
 0x490   :  { %2385 = vrot.lane.b32.xlu0 %v2258_v16, %s3213_s2  ;;  %2383 = vrot.lane.b32.xlu2 %v2257_v51, %s3213_s2  ;;  %v2616_v50 = vpop.f32.mrf.mxu3  ;;  %v2738_v15 = vpop.f32.mrf.mxu0 }
 0x497   :  { %3163 = vmatmul.msk.f32.gmra.mxu0 %vm48_vm5, %v2290_v55 }
 0x498   :  { %v2619_v62 = vpop.f32.mrf.mxu3  ;;  %v2741_v9 = vpop.f32.mrf.mxu0 }
 0x499   :  { %v2620_v16 = vadd.f32 %v5141_v25, %v2619_v62  ;;  %v2611_v62 = vadd.f32 %v5141_v25, %v5115_v6 }
 0x49b   :  { %v2724_v6 = vadd.f32 %v5085_v59, %v2611_v62 }
 0x49d   :  { %v2807_v59 = vmax.f32 %v2724_v6, 0.0 }
 0x49e   :  { %v2372_v36 = vpop.permute.xlu2 %2371 }
 0x49f   :  { %v2443_v20 = vsel %vm48_vm5, %v2187_v10, %v2372_v36  ;;  %v2617_v36 = vadd.f32 %v5141_v25, %v2616_v50 }
 0x4a0   :  { %v2622_v17 = vpop.f32.mrf.mxu3  ;;  %2663 = vmatmul.f32.gmra.mxu3 %v2443_v20  ;;  %v2744_v63 = vpop.f32.mrf.mxu0 }
 0x4a1   :  { %v2623_v53 = vadd.f32 %v5141_v25, %v2622_v17 }
 0x4a3   :  { %v2736_v20 = vadd.f32 %v2735_v11, %v2623_v53 }
 0x4a5   :  { %v2811_v11 = vmax.f32 %v2736_v20, 0.0 }
 0x4a8   :  { %v2625_v23 = vpop.f32.mrf.mxu3  ;;  %v2747_v22 = vpop.f32.mrf.mxu0 }
 0x4a9   :  { %v2626_v41 = vadd.f32 %v5141_v25, %v2625_v23  ;;  %v2733_v23 = vadd.f32 %v2732_v27, %v2620_v16 }
 0x4ab   :  { %v2739_v51 = vadd.f32 %v2738_v15, %v2626_v41  ;;  %v2730_v15 = vadd.f32 %v5121_v21, %v2617_v36 }
 0x4ad   :  { %v2809_v21 = vmax.f32 %v2730_v15, 0.0 }
 0x4b0   :  { %v2628_v4 = vpop.f32.mrf.mxu3  ;;  %v2750_v38 = vpop.f32.mrf.mxu0 }
 0x4b1   :  { %v2629_v35 = vadd.f32 %v5141_v25, %v2628_v4 }
 0x4b3   :  { %v2742_v24 = vadd.f32 %v2741_v9, %v2629_v35 }
 0x4b5   :  { %v2813_v4 = vmax.f32 %v2742_v24, 0.0 }
 0x4b8   :  { %v2631_v30 = vpop.f32.mrf.mxu3  ;;  %v5154_v9 = vpop.f32.mrf.mxu0 }
 0x4b9   :  { %v2632_v10 = vadd.f32 %v5141_v25, %v2631_v30  ;;  %v2614_v30 = vadd.f32 %v5141_v25, %v2613_v8  ;;  %v2608_v8 = vadd.f32 %v5141_v25, %v5099_v26  ;;  %v2599_v26 = vadd.f32 %v5141_v25, %v5053_v58 }
 0x4bb   :  { %v2745_v47 = vadd.f32 %v2744_v63, %v2632_v10  ;;  %v2812_v63 = vmax.f32 %v2739_v51, 0.0  ;;  %v2727_v27 = vadd.f32 %v5104_v45, %v2614_v30  ;;  %v2712_v35 = vadd.f32 %v5027_v32, %v2599_v26 }
 0x4bd   :  { %v2814_v55 = vmax.f32 %v2745_v47, 0.0  ;;  %v2803_v41 = vmax.f32 %v2712_v35, 0.0 }
 0x4c0   :  { %v2634_v13 = vpop.f32.mrf.mxu3  ;;  %v5181_v3 = vpop.f32.mrf.mxu0 }
 0x4c1   :  { %v2635_v46 = vadd.f32 %v5141_v25, %v2634_v13  ;;  %v2810_v13 = vmax.f32 %v2733_v23, 0.0 }
 0x4c3   :  { %v2748_v39 = vadd.f32 %v2747_v22, %v2635_v46  ;;  %v2605_v46 = vadd.f32 %v5141_v25, %v5083_v61 }
 0x4c5   :  { %v2815_v48 = vmax.f32 %v2748_v39, 0.0  ;;  %v2718_v45 = vadd.f32 %v5051_v42, %v2605_v46  ;;  %v2593_v42 = vadd.f32 %v5141_v25, %v5032_v5 }
 0x4c7   :  { %v2805_v37 = vmax.f32 %v2718_v45, 0.0 }
 0x4c8   :  { %v2637_v33 = vpop.f32.mrf.mxu3  ;;  %v5194_v5 = vpop.f32.mrf.mxu0 }
 0x4c9   :  { %v2638_v19 = vadd.f32 %v5141_v25, %v2637_v33  ;;  %v2808_v33 = vmax.f32 %v2727_v27, 0.0 }
 0x4cb   :  { %v2751_v7 = vadd.f32 %v2750_v38, %v2638_v19  ;;  %v2715_v38 = vadd.f32 %v5034_v14, %v2602_v1 }
 0x4cd   :  { %v2816_v40 = vmax.f32 %v2751_v7, 0.0  ;;  %v2804_v7 = vmax.f32 %v2715_v38, 0.0 }
 0x4cf   :  { %2835 = vmatpush.msra.mxu1 %v2816_v40 }
 0x4d0   :  { %v5152_v22 = vpop.f32.mrf.mxu3 }
 0x4d1   :  { %2836 = vmatpush.msra.mxu1 %v2815_v48  ;;  %v2378_v39 = vpop.permute.xlu2 %2377 }
 0x4d2   :  { %v2446_v14 = vsel %vm48_vm5, %v2190_v43, %v2378_v39  ;;  %v5201_v43 = vpop.f32.mrf.mxu0 }
 0x4d3   :  { %2837 = vmatpush.msra.mxu1 %v2814_v55 }
 0x4d5   :  { %2838 = vmatpush.msra.mxu1 %v2813_v4 }
 0x4d7   :  { %v2374_v17 = vpop.permute.xlu0 %2373  ;;  %2839 = vmatpush.msra.mxu1 %v2812_v63 }
 0x4d8   :  { %v2444_v50 = vsel %vm48_vm5, %v2188_v44, %v2374_v17  ;;  %v2721_v44 = vadd.f32 %v5067_v31, %v2608_v8  ;;  %v5174_v19 = vpop.f32.mrf.mxu3  ;;  %v2596_v31 = vadd.f32 %v5141_v25, %v5039_v52  ;;  %v2706_v52 = vadd.f32 %v5008_v54, %v2593_v42  ;;  %v2957_v42 = vld [vmem:[%s5429_s11 + $0x78] sm:$0xff] }
 0x4d9   :  { %2666 = vmatmul.f32.gmra.mxu3 %v2444_v50  ;;  %2840 = vmatpush.msra.mxu1 %v2811_v11 }
 0x4da   :  { %v2806_v58 = vmax.f32 %v2721_v44, 0.0  ;;  %v2801_v40 = vmax.f32 %v2706_v52, 0.0  ;;  %v5208_v51 = vpop.f32.mrf.mxu0  ;;  %2978 = vmatpush.msra.mxu2 %v2957_v42  ;;  %v2973_v42 = vld [vmem:[%s5429_s11 + $0xf8] sm:$0xff] }
 0x4db   :  { %2841 = vmatpush.msra.mxu1 %v2810_v13 }
 0x4dd   :  { %2842 = vmatpush.msra.mxu1 %v2809_v21 }
 0x4df   :  { %v2376_v10 = vpop.permute.xlu1 %2375  ;;  %2843 = vmatpush.msra.mxu1 %v2808_v33 }
 0x4e0   :  { %v2445_v61 = vsel %vm48_vm5, %v2189_v29, %v2376_v10  ;;  %v2709_v29 = vadd.f32 %v5020_v12, %v2596_v31  ;;  %v5192_v47 = vpop.f32.mrf.mxu3 }
 0x4e1   :  { %2669 = vmatmul.f32.gmra.mxu3 %v2445_v61  ;;  %2844 = vmatpush.msra.mxu1 %v2807_v59 }
 0x4e2   :  { %v2802_v32 = vmax.f32 %v2709_v29, 0.0  ;;  %v5215_v36 = vpop.f32.mrf.mxu0  ;;  %v2956_v29 = vld [vmem:[%s5429_s11 + $0x70] sm:$0xff] }
 0x4e3   :  { %2845 = vmatpush.msra.mxu1 %v2806_v58  ;;  %v2833_v58 = vld [vmem:[%s5431_s13] sm:$0xff]  ;;  %2979 = vmatpush.msra.mxu2 %v2956_v29 }
 0x4e4   :  { %v2946_v29 = vld [vmem:[%s5429_s11 + $0x20] sm:$0xff] }
 0x4e5   :  { %2846 = vmatpush.msra.mxu1 %v2805_v37 }
 0x4e7   :  { %2847 = vmatpush.msra.mxu1 %v2804_v7 }
 0x4e8   :  { %v5199_v60 = vpop.f32.mrf.mxu3 }
 0x4e9   :  { %2672 = vmatmul.f32.gmra.mxu3 %v2446_v14  ;;  %2848 = vmatpush.msra.mxu1 %v2803_v41  ;;  %v2955_v41 = vld [vmem:[%s5429_s11 + $0x68] sm:$0xff] }
 0x4ea   :  { %v2384_v16 = vpop.permute.xlu2 %2383  ;;  %v5220_v20 = vpop.f32.mrf.mxu0  ;;  %2980 = vmatpush.msra.mxu2 %v2955_v41  ;;  %v2944_v41 = vld [vmem:[%s5429_s11 + $0x10] sm:$0xff] }
 0x4eb   :  { %2849 = vmatpush.msra.mxu1 %v2802_v32  ;;  %v2449_v49 = vsel %vm48_vm5, %v2193_v18, %v2384_v16  ;;  %v2953_v16 = vld [vmem:[%s5429_s11 + $0x58] sm:$0xff] }
 0x4ed   :  { %2850 = vmatpush.msra.mxu1 %v2801_v40 }
 0x4ee   :  { %2851 = vmatmul.f32.vlgmr.msra.gmra.mxu1 %v2833_v58  ;;  %v2948_v58 = vld [vmem:[%s5429_s11 + $0x30] sm:$0xff] }
 0x4f0   :  { %v5206_v48 = vpop.f32.mrf.mxu3 }
 0x4f2   :  { %v2380_v12 = vpop.permute.xlu0 %2379  ;;  %v5222_v30 = vpop.f32.mrf.mxu0 }
 0x4f3   :  { %v2447_v54 = vsel %vm48_vm5, %v2191_v0, %v2380_v12  ;;  %v2954_v12 = vld [vmem:[%s5429_s11 + $0x60] sm:$0xff] }
 0x4f4   :  { %2675 = vmatmul.f32.gmra.mxu3 %v2447_v54  ;;  %2981 = vmatpush.msra.mxu2 %v2954_v12  ;;  %v2967_v12 = vld [vmem:[%s5429_s11 + $0xc8] sm:$0xff] }
 0x4f6   :  { %2982 = vmatpush.msra.mxu2 %v2953_v16  ;;  %v2964_v16 = vld [vmem:[%s5429_s11 + $0xb0] sm:$0xff] }
 0x4f8   :  { %v5213_v55 = vpop.f32.mrf.mxu3 }
 0x4fa   :  { %v2382_v53 = vpop.permute.xlu1 %2381  ;;  %v2777_v23 = vpop.f32.mrf.mxu0 }
 0x4fb   :  { %v2448_v24 = vsel %vm48_vm5, %v2192_v28, %v2382_v53 }
 0x4fc   :  { %2678 = vmatmul.f32.gmra.mxu3 %v2448_v24 }
 0x500   :  { %v2658_v28 = vpop.f32.mrf.mxu3 }
 0x502   :  { %v2386_v0 = vpop.permute.xlu0 %2385  ;;  %v2780_v17 = vpop.f32.mrf.mxu0 }
 0x503   :  { %v2450_v56 = vsel %vm48_vm5, %v2194_v57, %v2386_v0 }
 0x504   :  { %2681 = vmatmul.f32.gmra.mxu3 %v2449_v49  ;;  %v2659_v49 = vadd.f32 %v5141_v25, %v2658_v28  ;;  %v2951_v28 = vld [vmem:[%s5429_s11 + $0x48] sm:$0xff] }
 0x508   :  { %v2661_v4 = vpop.f32.mrf.mxu3 }
 0x509   :  { %v2662_v54 = vadd.f32 %v5141_v25, %v2661_v4  ;;  %v2890_v4 = vld [vmem:[%s5427_s9 + $0x78] sm:$0xff] }
 0x50a   :  { %v2783_v15 = vpop.f32.mrf.mxu0  ;;  %2928 = vmatpush.msrb.mxu1 %v2890_v4 }
 0x50c   :  { %2684 = vmatmul.f32.gmra.mxu3 %v2450_v56  ;;  %v2952_v56 = vld [vmem:[%s5429_s11 + $0x50] sm:$0xff] }
 0x50d   :  { %2983 = vmatpush.msra.mxu2 %v2952_v56 }
 0x50f   :  { %2984 = vmatpush.msra.mxu2 %v2951_v28  ;;  %v2959_v28 = vld [vmem:[%s5429_s11 + $0x88] sm:$0xff] }
 0x512   :  { %v2786_v2 = vpop.f32.mrf.mxu0 }
 0x51a   :  { %v2789_v57 = vpop.f32.mrf.mxu0 }
 0x522   :  { %v2792_v27 = vpop.f32.mrf.mxu0 }
 0x523   :  { %v2664_v34 = vpop.f32.mrf.mxu3 }
 0x524   :  { %v2665_v18 = vadd.f32 %v5141_v25, %v2664_v34  ;;  %v2656_v34 = vadd.f32 %v5141_v25, %v5213_v55 }
 0x526   :  { %v5225_v63 = vadd.f32 %v2777_v23, %v2665_v18  ;;  %v2775_v23 = vadd.f32 %v5222_v30, %v2662_v54  ;;  %v2650_v30 = vadd.f32 %v5141_v25, %v5199_v60  ;;  %v2641_v60 = vadd.f32 %v5141_v25, %v5152_v22  ;;  %v2889_v22 = vld [vmem:[%s5427_s9 + $0x70] sm:$0xff]  ;;  %v2966_v54 = vld [vmem:[%s5429_s11 + $0xc0] sm:$0xff] }
 0x528   :  { %v2825_v55 = vmax.f32 %v5225_v63, 0.0  ;;  %v2644_v63 = vadd.f32 %v5141_v25, %v5174_v19 }
 0x52a   :  { %v2795_v46 = vpop.f32.mrf.mxu0 }
 0x532   :  { %v2798_v10 = vpop.f32.mrf.mxu0 }
 0x55c   :  { %v2667_v62 = vpop.f32.mrf.mxu3 }
 0x55d   :  { %v2668_v7 = vadd.f32 %v5141_v25, %v2667_v62  ;;  %v2653_v62 = vadd.f32 %v5141_v25, %v5206_v48 }
 0x55f   :  { %v2781_v24 = vadd.f32 %v2780_v17, %v2668_v7  ;;  %v2888_v17 = vld [vmem:[%s5427_s9 + $0x68] sm:$0xff]  ;;  %v2766_v48 = vadd.f32 %v5208_v51, %v2653_v62  ;;  %v2970_v7 = vld [vmem:[%s5429_s11 + $0xe0] sm:$0xff] }
 0x560   :  { %2929 = vmatpush.msrb.mxu1 %v2888_v17  ;;  %v2958_v17 = vld [vmem:[%s5429_s11 + $0x80] sm:$0xff] }
 0x561   :  { %v2826_v18 = vmax.f32 %v2781_v24, 0.0  ;;  %v2965_v24 = vld [vmem:[%s5429_s11 + $0xb8] sm:$0xff]  ;;  %v2891_v62 = vld [vmem:[%s5428_s10] sm:$0x3]  ;;  %s3026_s10 = sshll.u32 %s5432_s14, 4  ;;  %s3027_s10 = int_to_ptr.hbm [resolvable:$true] %s3026_s10 }
 0x564   :  { %v2670_v50 = vpop.f32.mrf.mxu3 }
 0x565   :  { %v2671_v35 = vadd.f32 %v5141_v25, %v2670_v50  ;;  %v2824_v50 = vmax.f32 %v2775_v23, 0.0  ;;  %v2960_v23 = vld [vmem:[%s5429_s11 + $0x90] sm:$0xff] }
 0x567   :  { %v2784_v40 = vadd.f32 %v2783_v15, %v2671_v35  ;;  %v2772_v15 = vadd.f32 %v5220_v20, %v2659_v49  ;;  %v2972_v35 = vld [vmem:[%s5429_s11 + $0xf0] sm:$0xff]  ;;  %v2963_v49 = vld [vmem:[%s5429_s11 + $0xa8] sm:$0xff] }
 0x569   :  { %v2827_v0 = vmax.f32 %v2784_v40, 0.0  ;;  %v2943_v40 = vld [vmem:[%s5429_s11 + $0x8] sm:$0xff] }
 0x56b   :  { %v2852_v56 = vpop.f32.mrf.mxu1 }
 0x56c   :  { %v2673_v11 = vpop.f32.mrf.mxu3 }
 0x56d   :  { %v2674_v59 = vadd.f32 %v5141_v25, %v2673_v11  ;;  %v2647_v11 = vadd.f32 %v5141_v25, %v5192_v47 }
 0x56f   :  { %v2787_v14 = vadd.f32 %v2786_v2, %v2674_v59  ;;  %v2769_v2 = vadd.f32 %v5215_v36, %v2656_v34  ;;  %v2760_v36 = vadd.f32 %v5194_v5, %v2647_v11  ;;  %v2883_v5 = vld [vmem:[%s5427_s9 + $0x40] sm:$0xff]  ;;  %v2876_v59 = vld [vmem:[%s5427_s9 + $0x8] sm:$0xff] }
 0x571   :  { %v2828_v53 = vmax.f32 %v2787_v14, 0.0  ;;  %v2822_v20 = vmax.f32 %v2769_v2, 0.0  ;;  %v2819_v51 = vmax.f32 %v2760_v36, 0.0  ;;  %v2969_v14 = vld [vmem:[%s5429_s11 + $0xd8] sm:$0xff] }
 0x577   :  { %v2676_v8 = vpop.f32.mrf.mxu3 }
 0x578   :  { %v2677_v26 = vadd.f32 %v5141_v25, %v2676_v8  ;;  %v2763_v8 = vadd.f32 %v5201_v43, %v2650_v30  ;;  %v2881_v43 = vld [vmem:[%s5427_s9 + $0x30] sm:$0xff] }
 0x57a   :  { %v2790_v39 = vadd.f32 %v2789_v57, %v2677_v26  ;;  %v2823_v57 = vmax.f32 %v2772_v15, 0.0  ;;  %v2820_v47 = vmax.f32 %v2763_v8, 0.0  ;;  %v2877_v26 = vld [vmem:[%s5427_s9 + $0x10] sm:$0xff] }
 0x57c   :  { %v2829_v32 = vmax.f32 %v2790_v39, 0.0  ;;  %v2971_v39 = vld [vmem:[%s5429_s11 + $0xe8] sm:$0xff] }
 0x57f   :  { %v2679_v13 = vpop.f32.mrf.mxu3 }
 0x580   :  { %v2680_v44 = vadd.f32 %v5141_v25, %v2679_v13  ;;  %v2757_v13 = vadd.f32 %v5181_v3, %v2644_v63  ;;  %v2887_v3 = vld [vmem:[%s5427_s9 + $0x60] sm:$0xff] }
 0x581   :  { %v3183_v63 = vld [vmem:[%s5430_s12] ss:$0 sm:$0xff] }
 0x582   :  { %v2793_v38 = vadd.f32 %v2792_v27, %v2680_v44  ;;  %v2821_v27 = vmax.f32 %v2766_v48, 0.0  ;;  %v2818_v19 = vmax.f32 %v2757_v13, 0.0  ;;  %v2884_v44 = vld [vmem:[%s5427_s9 + $0x48] sm:$0xff] }
 0x584   :  { %v2830_v52 = vmax.f32 %v2793_v38, 0.0  ;;  %v2949_v38 = vld [vmem:[%s5429_s11 + $0x38] sm:$0xff] }
 0x587   :  { %v2682_v6 = vpop.f32.mrf.mxu3 }
 0x588   :  { %v2683_v21 = vadd.f32 %v5141_v25, %v2682_v6 }
 0x58a   :  { %v2796_v61 = vadd.f32 %v2795_v46, %v2683_v21  ;;  %v2754_v46 = vadd.f32 %v5154_v9, %v2641_v60  ;;  %v2885_v9 = vld [vmem:[%s5427_s9 + $0x50] sm:$0xff]  ;;  %v2879_v21 = vld [vmem:[%s5427_s9 + $0x20] sm:$0xff] }
 0x58c   :  { %v2831_v37 = vmax.f32 %v2796_v61, 0.0  ;;  %v2817_v6 = vmax.f32 %v2754_v46, 0.0  ;;  %v2875_v61 = vld [vmem:[%s5427_s9] sm:$0xff] }
 0x58f   :  { %v2685_v1 = vpop.f32.mrf.mxu3 }
 0x590   :  { %v2686_v33 = vadd.f32 %v5141_v25, %v2685_v1  ;;  %v2834_v25 = vld [vmem:[%s5431_s13 + $0x8] sm:$0xff]  ;;  %v2886_v1 = vld [vmem:[%s5427_s9 + $0x58] sm:$0xff] }
 0x591   :  { %2930 = vmatpush.msrb.mxu1 %v2886_v1 }
 0x592   :  { %v2799_v45 = vadd.f32 %v2798_v10, %v2686_v33  ;;  %v2882_v33 = vld [vmem:[%s5427_s9 + $0x38] sm:$0xff]  ;;  %v2880_v10 = vld [vmem:[%s5427_s9 + $0x28] sm:$0xff] }
 0x593   :  { %2931 = vmatpush.msrb.mxu1 %v2884_v44 }
 0x594   :  { %v2832_v31 = vmax.f32 %v2799_v45, 0.0  ;;  %v2878_v45 = vld [vmem:[%s5427_s9 + $0x18] sm:$0xff] }
 0x595   :  { %2932 = vmatpush.msrb.mxu1 %v2882_v33 }
 0x596   :  { %2855 = vmatpush.msrb.mxu3 %v2832_v31  ;;  %v2950_v31 = vld [vmem:[%s5429_s11 + $0x40] sm:$0xff] }
 0x597   :  { %2933 = vmatpush.msrb.mxu1 %v2880_v10  ;;  %2985 = vmatpush.msra.mxu2 %v2950_v31 }
 0x598   :  { %2856 = vmatpush.msrb.mxu3 %v2831_v37  ;;  %v2947_v37 = vld [vmem:[%s5429_s11 + $0x28] sm:$0xff] }
 0x599   :  { %2934 = vmatpush.msrb.mxu1 %v2878_v45  ;;  %2986 = vmatpush.msra.mxu2 %v2949_v38 }
 0x59a   :  { %2857 = vmatpush.msrb.mxu3 %v2830_v52  ;;  %v2945_v52 = vld [vmem:[%s5429_s11 + $0x18] sm:$0xff] }
 0x59b   :  { %2935 = vmatpush.msrb.mxu1 %v2876_v59  ;;  %2987 = vmatpush.msra.mxu2 %v2948_v58 }
 0x59c   :  { %2858 = vmatpush.msrb.mxu3 %v2829_v32  ;;  %v2968_v32 = vld [vmem:[%s5429_s11 + $0xd0] sm:$0xff] }
 0x59d   :  { %2988 = vmatpush.msra.mxu2 %v2947_v37 }
 0x59e   :  { %2859 = vmatpush.msrb.mxu3 %v2828_v53  ;;  %v2942_v53 = vld [vmem:[%s5429_s11] sm:$0xff] }
 0x59f   :  { %2989 = vmatpush.msra.mxu2 %v2946_v29 }
 0x5a0   :  { %2860 = vmatpush.msrb.mxu3 %v2827_v0  ;;  %v2962_v0 = vld [vmem:[%s5429_s11 + $0xa0] sm:$0xff] }
 0x5a1   :  { %2990 = vmatpush.msra.mxu2 %v2945_v52 }
 0x5a2   :  { %2861 = vmatpush.msrb.mxu3 %v2826_v18  ;;  %v2961_v18 = vld [vmem:[%s5429_s11 + $0x98] sm:$0xff]  ;;  %s3216_s11 = smov [#allocation3]  }
 0x5a3   :  { %2991 = vmatpush.msra.mxu2 %v2944_v41  ;;  %s3024_s2 = sshll.u32 %s3216_s11, 4  ;;  %s3025_s2 = int_to_ptr.vmem [resolvable:$true] %s3024_s2 }
 0x5a4   :  { %2862 = vmatpush.msrb.mxu3 %v2825_v55  ;;  %v2894_v55 = vperm.slane %v2891_v62, 1 }
 0x5a5   :  { %2992 = vmatpush.msra.mxu2 %v2943_v40 }
 0x5a6   :  { %2863 = vmatpush.msrb.mxu3 %v2824_v50  ;;  %v2893_v50 = vperm.slane %v2891_v62, 0 }
 0x5a7   :  { %2993 = vmatpush.msra.mxu2 %v2942_v53 }
 0x5a8   :  { %2864 = vmatpush.msrb.mxu3 %v2823_v57 }
 0x5aa   :  { %2865 = vmatpush.msrb.mxu3 %v2822_v20 }
 0x5ac   :  { %2866 = vmatpush.msrb.mxu3 %v2821_v27 }
 0x5ae   :  { %2867 = vmatpush.msrb.mxu3 %v2820_v47 }
 0x5b0   :  { %2868 = vmatpush.msrb.mxu3 %v2819_v51 }
 0x5b2   :  { %2869 = vmatpush.msrb.mxu3 %v2818_v19 }
 0x5b4   :  { %2870 = vmatpush.msrb.mxu3 %v2817_v6 }
 0x5b5   :  { %2871 = vmatmul.f32.vlgmr.msrb.gmra.mxu3 %v2834_v25 }
 0x5b6   :  { %2908 = vmatpush.msra.mxu3 %v2889_v22 }
 0x5b8   :  { %2909 = vmatpush.msra.mxu3 %v2887_v3 }
 0x5ba   :  { %2910 = vmatpush.msra.mxu3 %v2885_v9 }
 0x5bc   :  { %2911 = vmatpush.msra.mxu3 %v2883_v5 }
 0x5be   :  { %2912 = vmatpush.msra.mxu3 %v2881_v43 }
 0x5c0   :  { %2913 = vmatpush.msra.mxu3 %v2879_v21 }
 0x5c2   :  { %2914 = vmatpush.msra.mxu3 %v2877_v26 }
 0x5c4   :  { %2915 = vmatpush.msra.mxu3 %v2875_v61 }
 0x5c6   :  { %2998 = vmatpush.msrb.mxu3 %v2973_v42 }
 0x5c8   :  { %2999 = vmatpush.msrb.mxu3 %v2972_v35 }
 0x5ca   :  { %3000 = vmatpush.msrb.mxu3 %v2971_v39 }
 0x5cc   :  { %3001 = vmatpush.msrb.mxu3 %v2970_v7 }
 0x5ce   :  { %3002 = vmatpush.msrb.mxu3 %v2969_v14 }
 0x5d0   :  { %3003 = vmatpush.msrb.mxu3 %v2968_v32 }
 0x5d2   :  { %3004 = vmatpush.msrb.mxu3 %v2967_v12 }
 0x5d4   :  { %3005 = vmatpush.msrb.mxu3 %v2966_v54 }
 0x5d6   :  { %3006 = vmatpush.msrb.mxu3 %v2965_v24 }
 0x5d8   :  { %3007 = vmatpush.msrb.mxu3 %v2964_v16 }
 0x5da   :  { %3008 = vmatpush.msrb.mxu3 %v2963_v49 }
 0x5dc   :  { %3009 = vmatpush.msrb.mxu3 %v2962_v0 }
 0x5de   :  { %3010 = vmatpush.msrb.mxu3 %v2961_v18 }
 0x5e0   :  { %3011 = vmatpush.msrb.mxu3 %v2960_v23 }
 0x5e2   :  { %3012 = vmatpush.msrb.mxu3 %v2959_v28 }
 0x5e4   :  { %3013 = vmatpush.msrb.mxu3 %v2958_v17 }
 0x638   :  { %v2872_v4 = vpop.f32.mrf.mxu3 }
 0x639   :  { %v2873_v34 = vadd.f32 %v2872_v4, %v2852_v56 }
 0x63b   :  { %3164 = vmatmul.msk.f32.vlgmr.msra.gmra.mxu3 %vm48_vm5, %v2873_v34  ;;  %3165 = vmatmul.msk.f32.vlgmr.msrb.gmra.mxu1 %vm48_vm5, %v2873_v34 }
 0x6b8   :  { %v2937_v15 = vpop.f32.mrf.mxu1 }
 0x6b9   :  { %v2938_v30 = vadd.f32 %v2937_v15, %v2894_v55 }
 0x6bb   :  { %v2941_v2 = vmax.f32 %v2938_v30, 0.0 }
 0x6bd   :  { %3014 = vmatmul.f32.vlgmr.msrb.gmra.mxu3 %v2941_v2 }
 0x6be   :  { %v2917_v11 = vpop.f32.mrf.mxu3 }
 0x6bf   :  { %v2918_v57 = vadd.f32 %v2917_v11, %v2893_v50 }
 0x6c1   :  { %v2940_v48 = vmax.f32 %v2918_v57, 0.0 }
 0x6c3   :  { %2994 = vmatmul.f32.vlgmr.msra.gmra.mxu2 %v2940_v48 }
 0x740   :  { %v3015_v60 = vpop.f32.mrf.mxu3 }
 0x746   :  { %v2995_v20 = vpop.f32.mrf.mxu2 }
 0x747   :  { %v2996_v8 = vadd.f32 %v3183_v63, %v2995_v20 }
 0x749   :  { %v3016_v27 = vadd.f32 %v3015_v60, %v2996_v8 }
 0x74b   :  { %3018 = vst [vmem:[#allocation3] sm:$0xff] %v3016_v27 }
 0x74c   :  { %3029 = dma.vmem_to_hbm [thread:$0]  %s3025_s2, 128, %s3027_s10, [#allocation4]  }
 0x74d   :  { %3209 = dma.done.wait [#allocation4], 128  }
 0x74e   :  { %3210 = vsyncadd [#allocation4], 4294967168 }
 0x74f   :  { %3034 = vsyncpa [#allocation4], 1 }

</bundles_post_ra>
